<compile_context>
chip_gen: v7x
topology: tpu7x:2x2x1
jax: 0.10.0
libtpu: 0.0.40
codegen_flags: <defaults>
</compile_context>

<pallas_src>
import functools
import math

import jax
import jax.numpy as jnp
from jax.experimental import pallas as pl
from jax.experimental.pallas import tpu as pltpu  # noqa: F401  (TPU backend, VMEM-resident call)


# ----------------------------- fused Pallas kernel -----------------------------

def _layernorm(x, g, b, eps):
    mu = jnp.mean(x, axis=-1, keepdims=True)
    xc = x - mu
    var = jnp.mean(xc * xc, axis=-1, keepdims=True)
    return xc * jax.lax.rsqrt(var + eps) * g + b


def _fused_forward_kernel(
    # activations / constants
    x_ref, mark_ref, pe_ref, avg_ref, shift_ref, mask_ref,
    # embedding weights
    wtok_ref, wtemp_ref,
    # stacked per-layer encoder weights
    wqkv_ref, bqkv_ref, wo_ref, bo_ref, ln1g_ref, ln1b_ref,
    wff1_ref, bff1_ref, wff2_ref, bff2_ref, ln2g_ref, ln2b_ref,
    # final norm + prediction head
    normg_ref, normb_ref, headw_ref, headb_ref,
    # output
    out_ref,
    *, e_layers, n_heads, d_model, activation, ln_eps, revin_eps):

    f32 = jnp.float32
    bf16 = jnp.bfloat16

    def mm(a, b):
        # bf16 MXU matmul with f32 accumulation.
        return jnp.dot(a.astype(bf16), b.astype(bf16), preferred_element_type=f32)

    def mm_nt(a, b):
        # a @ b.T without an explicit transpose (contract last dims of both).
        return jax.lax.dot_general(
            a.astype(bf16), b.astype(bf16),
            dimension_numbers=(((1,), (1,)), ((), ())),
            preferred_element_type=f32)

    # ---- RevIN 'norm' (affine=False): per-batch, per-channel stats over time,
    #      computed via a block-averaging matmul so rows stay packed as (B*L, C).
    x = x_ref[...]                                               # (B*L, C) f32
    avg = avg_ref[...]                                           # (B*L, B*L)
    mean = jnp.dot(avg, x, preferred_element_type=f32)           # replicated per row
    xc = x - mean
    var = jnp.dot(avg, xc * xc, preferred_element_type=f32)      # ddof=0
    inv_std = jax.lax.rsqrt(var + revin_eps)
    stdev = (var + revin_eps) * inv_std                          # == sqrt(var+eps)
    xn = xc * inv_std

    bl = x.shape[0]

    # ---- DataEmbedding:
    #   TokenEmbedding Conv1d(C, D, k=3, circular pad, no bias) realized via one
    #   stacked circular-shift permutation matmul (rows 0:BL -> x[t-1],
    #   rows BL:2BL -> x[t+1]) + 3 tap matmuls (all in VMEM, MXU is idle anyway),
    #   plus TimeFeatureEmbedding (Linear, no bias) and sinusoidal PE. dropout=0.
    sh = jnp.dot(shift_ref[...], xn, preferred_element_type=f32)       # (2*B*L, C)
    x_prev = sh[:bl]
    x_next = sh[bl:]
    wtok = wtok_ref[...]                                               # (3, C, D) f32
    tok = (jnp.dot(x_prev, wtok[0], preferred_element_type=f32)
           + jnp.dot(xn, wtok[1], preferred_element_type=f32)
           + jnp.dot(x_next, wtok[2], preferred_element_type=f32))
    temp = jnp.dot(mark_ref[...], wtemp_ref[...], preferred_element_type=f32)
    h = tok + temp + pe_ref[...]                                       # (B*L, D)

    mask = mask_ref[...]                  # additive batch-separation mask (0 / -1e9)
    dh = d_model // n_heads

    # ---- Encoder layers (FullAttention; sub/out resembling spaces disabled)
    for li in range(e_layers):
        qkv = mm(h, wqkv_ref[li]) + bqkv_ref[li]          # fused QKV: (B*L, 3D)
        wo = wo_ref[li]                                   # (D, D) f32
        attn = None
        for hh in range(n_heads):
            qh = qkv[:, hh * dh:(hh + 1) * dh]                                # (B*L, dh)
            kh = qkv[:, d_model + hh * dh:d_model + (hh + 1) * dh]
            vh = qkv[:, 2 * d_model + hh * dh:2 * d_model + (hh + 1) * dh]
            # 1/sqrt(dh) scale already folded into Wq/bq (host side)
            s = mm_nt(qh, kh) + mask                                          # (B*L, B*L)
            m = jnp.max(s, axis=-1, keepdims=True)
            p = jnp.exp(s - m)
            p = p * pl.reciprocal(jnp.sum(p, axis=-1, keepdims=True), approx=True)
            oh = mm(p, vh)                                                    # (B*L, dh)
            contrib = mm(oh, wo[hh * dh:(hh + 1) * dh, :])                    # out proj
            attn = contrib if attn is None else attn + contrib
        attn = attn + bo_ref[li]

        y = _layernorm(h + attn, ln1g_ref[li], ln1b_ref[li], ln_eps)          # norm1
        ff = mm(y, wff1_ref[li]) + bff1_ref[li]
        if activation == "relu":
            ff = jnp.maximum(ff, 0.0)
        else:
            ff = jax.nn.gelu(ff)
        ff = mm(ff, wff2_ref[li]) + bff2_ref[li]
        h = _layernorm(y + ff, ln2g_ref[li], ln2b_ref[li], ln_eps)            # norm2

    # ---- Final encoder LayerNorm + pred head + RevIN 'denorm'
    enc = _layernorm(h, normg_ref[...], normb_ref[...], ln_eps)
    out = mm(enc, headw_ref[...]) + headb_ref[...]            # (B*L, c_out), c_out == C
    out_ref[...] = (out * stdev + mean).astype(out_ref.dtype)


# ----------------------------- parameters & constants -----------------------------

def sinusoidal_pe(max_len, d_model):
    pos = jnp.arange(max_len, dtype=jnp.float32)[:, None]
    div = jnp.exp(jnp.arange(0, d_model, 2, dtype=jnp.float32)
                  * (-math.log(10000.0) / d_model))
    pe = jnp.zeros((max_len, d_model), jnp.float32)
    pe = pe.at[:, 0::2].set(jnp.sin(pos * div))
    pe = pe.at[:, 1::2].set(jnp.cos(pos * div))
    return pe


def build_constants(B, L, D):
    """Precomputed constant matrices that let the fused kernel keep all rows packed
    as (B*L, ·): per-batch averaging, stacked circular shifts, batch-separation mask."""
    f32 = jnp.float32
    eye_b = jnp.eye(B, dtype=f32)
    eye_l = jnp.eye(L, dtype=f32)
    avg = jnp.kron(eye_b, jnp.ones((L, L), f32) / L)                   # per-batch mean
    rprev = jnp.kron(eye_b, jnp.roll(eye_l, -1, axis=1))               # row t -> x[t-1]
    rnext = jnp.kron(eye_b, jnp.roll(eye_l, 1, axis=1))                # row t -> x[t+1]
    shift = jnp.concatenate([rprev, rnext], axis=0)                    # (2*B*L, B*L)
    block = jnp.kron(eye_b, jnp.ones((L, L), f32))
    mask = jnp.where(block > 0, 0.0, -1e9).astype(f32)                 # additive mask
    pe_tiled = jnp.tile(sinusoidal_pe(max(L, 64), D)[:L], (B, 1))      # (B*L, D)
    return dict(avg=avg, shift=shift, mask=mask, pe_tiled=pe_tiled)


def init_params(key, cfg):
    D, C, F = cfg["d_model"], cfg["enc_in"], cfg["d_ff"]
    E = cfg["e_layers"]
    H = cfg["n_heads"]
    mark_dim = cfg["mark_dim"]
    scale = 1.0 / math.sqrt(D // H)          # attention scale, folded into Wq/bq
    keys = jax.random.split(key, 4 + E)
    f32, bf16 = jnp.float32, jnp.bfloat16

    def dense(k, fan_in, fan_out, s=0.02):
        return s * jax.random.normal(k, (fan_in, fan_out), f32)

    # TokenEmbedding: Conv1d(C, D, kernel=3, circular pad, bias=False); torch weight (D, C, 3).
    w_conv = 0.02 * jax.random.normal(keys[0], (D, C, 3), f32)
    wtok = jnp.transpose(w_conv, (2, 1, 0))        # (3, C, D): tap k pairs with x[t-1+k]
    # TimeFeatureEmbedding: Linear(mark_dim, D, bias=False)   (embed='timeF', freq='h')
    wtemp = dense(keys[1], mark_dim, D)

    wqkv, bqkv, wo, bo = [], [], [], []
    ln1g, ln1b, ln2g, ln2b = [], [], [], []
    wff1, bff1, wff2, bff2 = [], [], [], []
    for li in range(E):
        lk = jax.random.split(keys[2 + li], 8)
        wq, wk, wv = dense(lk[0], D, D), dense(lk[1], D, D), dense(lk[2], D, D)
        bq = jnp.zeros((1, D), f32)
        # fused QKV (D, 3D) with the 1/sqrt(d_head) score scale folded into Q
        wqkv.append(jnp.concatenate([wq * scale, wk, wv], axis=1))
        bqkv.append(jnp.concatenate([bq * scale, jnp.zeros((1, 2 * D), f32)], axis=1))
        wo.append(dense(lk[3], D, D))
        bo.append(jnp.zeros((1, D), f32))
        ln1g.append(jnp.ones((1, D), f32)); ln1b.append(jnp.zeros((1, D), f32))
        wff1.append(dense(lk[4], D, F)); bff1.append(jnp.zeros((1, F), f32))
        wff2.append(dense(lk[5], F, D)); bff2.append(jnp.zeros((1, D), f32))
        ln2g.append(jnp.ones((1, D), f32)); ln2b.append(jnp.zeros((1, D), f32))

    return dict(
        wtok=wtok, wtemp=wtemp,
        wqkv=jnp.stack(wqkv).astype(bf16), bqkv=jnp.stack(bqkv),
        wo=jnp.stack(wo), bo=jnp.stack(bo),                 # wo kept f32 (sliced per head)
        ln1_g=jnp.stack(ln1g), ln1_b=jnp.stack(ln1b),
        wff1=jnp.stack(wff1).astype(bf16), bff1=jnp.stack(bff1),
        wff2=jnp.stack(wff2).astype(bf16), bff2=jnp.stack(bff2),
        ln2_g=jnp.stack(ln2g), ln2_b=jnp.stack(ln2b),
        norm_g=jnp.ones((1, D), f32), norm_b=jnp.zeros((1, D), f32),
        head_w=dense(keys[2 + E], D, cfg["c_out"]).astype(bf16),
        head_b=jnp.zeros((1, cfg["c_out"]), f32),
    )


# ----------------------------- forward pass -----------------------------

def transformer_daeo_forward(params, consts, cfg, target_x, target_y, target_mark):
    del target_y  # unused by the reference forward
    B, L, C = target_x.shape
    BL = B * L
    D, H = cfg["d_model"], cfg["n_heads"]

    kern = functools.partial(
        _fused_forward_kernel,
        e_layers=cfg["e_layers"], n_heads=H, d_model=D,
        activation=cfg["activation"], ln_eps=1e-5, revin_eps=1e-5)

    out2d = pl.pallas_call(
        kern,
        out_shape=jax.ShapeDtypeStruct((BL, cfg["c_out"]), jnp.float32),
    )(
        target_x.reshape(BL, C).astype(jnp.float32),
        target_mark.reshape(BL, -1).astype(jnp.float32),
        consts["pe_tiled"], consts["avg"], consts["shift"], consts["mask"],
        params["wtok"], params["wtemp"],
        params["wqkv"], params["bqkv"], params["wo"], params["bo"],
        params["ln1_g"], params["ln1_b"],
        params["wff1"], params["bff1"], params["wff2"], params["bff2"],
        params["ln2_g"], params["ln2_b"],
        params["norm_g"], params["norm_b"], params["head_w"], params["head_b"],
    )

    out = out2d.reshape(B, L, cfg["c_out"])[:, -cfg["pred_len"]:, :]
    # sub_space/out_space disabled -> every disagreement is None -> zero contribution
    disagreement_loss = jnp.zeros((), jnp.float32) * cfg["diversity_weight"]
    return {"output": out, "disagreement_loss": disagreement_loss}


# ----------------------------- main -----------------------------

if __name__ == "__main__":
    cfg = dict(
        enc_in=4, c_out=4, seq_len=16, pred_len=8,
        d_model=32, n_heads=4, d_ff=64, e_layers=2,
        mark_dim=4,               # embed='timeF', freq='h'
        activation="relu", diversity_weight=0.1,
    )
    B = 2

    params = init_params(jax.random.PRNGKey(0), cfg)
    consts = build_constants(B, cfg["seq_len"], cfg["d_model"])

    kx, ky, km = jax.random.split(jax.random.PRNGKey(0), 3)
    target_x = jax.random.normal(kx, (B, cfg["seq_len"], cfg["enc_in"]), jnp.float32)
    target_y = jax.random.normal(ky, (B, cfg["seq_len"], cfg["enc_in"]), jnp.float32)
    target_mark = jax.random.normal(km, (B, cfg["seq_len"], cfg["mark_dim"]), jnp.float32)

    fwd = jax.jit(lambda p, c, tx, ty, tm:
                  transformer_daeo_forward(p, c, cfg, tx, ty, tm))
    result = fwd(params, consts, target_x, target_y, target_mark)
    jax.block_until_ready(result["output"])
    jax.block_until_ready(result["disagreement_loss"])

    assert result["output"].shape == (B, cfg["pred_len"], cfg["c_out"])
    assert bool(jnp.all(jnp.isfinite(result["output"])))
    print("KERNEL_OK")
</pallas_src>

<mosaic_0001>
module attributes {stable_mosaic.version = 11 : i64} {
  func.func @_fused_forward_kernel(%arg0: memref<32x4xf32, #tpu.memory_space<vmem>>, %arg1: memref<32x4xf32, #tpu.memory_space<vmem>>, %arg2: memref<32x32xf32, #tpu.memory_space<vmem>>, %arg3: memref<32x32xf32, #tpu.memory_space<vmem>>, %arg4: memref<64x32xf32, #tpu.memory_space<vmem>>, %arg5: memref<32x32xf32, #tpu.memory_space<vmem>>, %arg6: memref<3x4x32xf32, #tpu.memory_space<vmem>>, %arg7: memref<4x32xf32, #tpu.memory_space<vmem>>, %arg8: memref<2x32x96xbf16, #tpu.memory_space<vmem>>, %arg9: memref<2x1x96xf32, #tpu.memory_space<vmem>>, %arg10: memref<2x32x32xf32, #tpu.memory_space<vmem>>, %arg11: memref<2x1x32xf32, #tpu.memory_space<vmem>>, %arg12: memref<2x1x32xf32, #tpu.memory_space<vmem>>, %arg13: memref<2x1x32xf32, #tpu.memory_space<vmem>>, %arg14: memref<2x32x64xbf16, #tpu.memory_space<vmem>>, %arg15: memref<2x1x64xf32, #tpu.memory_space<vmem>>, %arg16: memref<2x64x32xbf16, #tpu.memory_space<vmem>>, %arg17: memref<2x1x32xf32, #tpu.memory_space<vmem>>, %arg18: memref<2x1x32xf32, #tpu.memory_space<vmem>>, %arg19: memref<2x1x32xf32, #tpu.memory_space<vmem>>, %arg20: memref<1x32xf32, #tpu.memory_space<vmem>>, %arg21: memref<1x32xf32, #tpu.memory_space<vmem>>, %arg22: memref<32x4xbf16, #tpu.memory_space<vmem>>, %arg23: memref<1x4xf32, #tpu.memory_space<vmem>>, %arg24: memref<32x4xf32, #tpu.memory_space<vmem>>) attributes {dimension_semantics = [], scalar_prefetch = 0 : i64, scratch_operands = 0 : i64, tpu.core_type = #tpu.core_type<tc>} {
    %c0 = arith.constant 0 : index
    %c0_0 = arith.constant 0 : index
    %0 = vector.load %arg0[%c0, %c0_0] : memref<32x4xf32, #tpu.memory_space<vmem>>, vector<32x4xf32>
    %c0_1 = arith.constant 0 : index
    %c0_2 = arith.constant 0 : index
    %1 = vector.load %arg3[%c0_1, %c0_2] : memref<32x32xf32, #tpu.memory_space<vmem>>, vector<32x32xf32>
    %cst = arith.constant dense<0.000000e+00> : vector<32x4xf32>
    %2 = tpu.matmul %1, %0, %cst {dimension_numbers = #tpu.dot_dimension_numbers<[1], [0], [0], [1], [0, 0, 1, 1], [], []>} : vector<32x32xf32>, vector<32x4xf32>, vector<32x4xf32> -> vector<32x4xf32>
    %3 = arith.subf %0, %2 : vector<32x4xf32>
    %4 = arith.mulf %3, %3 : vector<32x4xf32>
    %cst_3 = arith.constant dense<0.000000e+00> : vector<32x4xf32>
    %5 = tpu.matmul %1, %4, %cst_3 {dimension_numbers = #tpu.dot_dimension_numbers<[1], [0], [0], [1], [0, 0, 1, 1], [], []>} : vector<32x32xf32>, vector<32x4xf32>, vector<32x4xf32> -> vector<32x4xf32>
    %cst_4 = arith.constant 9.99999974E-6 : f32
    %6 = vector.broadcast %cst_4 : f32 to vector<32x4xf32>
    %7 = arith.addf %5, %6 : vector<32x4xf32>
    %8 = math.rsqrt %7 : vector<32x4xf32>
    %cst_5 = arith.constant 9.99999974E-6 : f32
    %9 = vector.broadcast %cst_5 : f32 to vector<32x4xf32>
    %10 = arith.addf %5, %9 : vector<32x4xf32>
    %11 = arith.mulf %10, %8 : vector<32x4xf32>
    %12 = arith.mulf %3, %8 : vector<32x4xf32>
    %c0_6 = arith.constant 0 : index
    %c0_7 = arith.constant 0 : index
    %13 = vector.load %arg4[%c0_6, %c0_7] : memref<64x32xf32, #tpu.memory_space<vmem>>, vector<64x32xf32>
    %cst_8 = arith.constant dense<0.000000e+00> : vector<64x4xf32>
    %14 = tpu.matmul %13, %12, %cst_8 {dimension_numbers = #tpu.dot_dimension_numbers<[1], [0], [0], [1], [0, 0, 1, 1], [], []>} : vector<64x32xf32>, vector<32x4xf32>, vector<64x4xf32> -> vector<64x4xf32>
    %15 = vector.extract_strided_slice %14 {offsets = [0, 0], sizes = [32, 4], strides = [1, 1]} : vector<64x4xf32> to vector<32x4xf32>
    %16 = vector.extract_strided_slice %14 {offsets = [32, 0], sizes = [32, 4], strides = [1, 1]} : vector<64x4xf32> to vector<32x4xf32>
    %c0_9 = arith.constant 0 : index
    %c0_10 = arith.constant 0 : index
    %c0_11 = arith.constant 0 : index
    %17 = vector.load %arg6[%c0_9, %c0_10, %c0_11] : memref<3x4x32xf32, #tpu.memory_space<vmem>>, vector<3x4x32xf32>
    %18 = vector.extract_strided_slice %17 {offsets = [0, 0, 0], sizes = [1, 4, 32], strides = [1, 1, 1]} : vector<3x4x32xf32> to vector<1x4x32xf32>
    %19 = vector.shape_cast %18 : vector<1x4x32xf32> to vector<4x32xf32>
    %cst_12 = arith.constant dense<0.000000e+00> : vector<32x32xf32>
    %20 = tpu.matmul %15, %19, %cst_12 {dimension_numbers = #tpu.dot_dimension_numbers<[1], [0], [0], [1], [0, 0, 1, 1], [], []>} : vector<32x4xf32>, vector<4x32xf32>, vector<32x32xf32> -> vector<32x32xf32>
    %21 = vector.extract_strided_slice %17 {offsets = [1, 0, 0], sizes = [1, 4, 32], strides = [1, 1, 1]} : vector<3x4x32xf32> to vector<1x4x32xf32>
    %22 = vector.shape_cast %21 : vector<1x4x32xf32> to vector<4x32xf32>
    %cst_13 = arith.constant dense<0.000000e+00> : vector<32x32xf32>
    %23 = tpu.matmul %12, %22, %cst_13 {dimension_numbers = #tpu.dot_dimension_numbers<[1], [0], [0], [1], [0, 0, 1, 1], [], []>} : vector<32x4xf32>, vector<4x32xf32>, vector<32x32xf32> -> vector<32x32xf32>
    %24 = arith.addf %20, %23 : vector<32x32xf32>
    %25 = vector.extract_strided_slice %17 {offsets = [2, 0, 0], sizes = [1, 4, 32], strides = [1, 1, 1]} : vector<3x4x32xf32> to vector<1x4x32xf32>
    %26 = vector.shape_cast %25 : vector<1x4x32xf32> to vector<4x32xf32>
    %cst_14 = arith.constant dense<0.000000e+00> : vector<32x32xf32>
    %27 = tpu.matmul %16, %26, %cst_14 {dimension_numbers = #tpu.dot_dimension_numbers<[1], [0], [0], [1], [0, 0, 1, 1], [], []>} : vector<32x4xf32>, vector<4x32xf32>, vector<32x32xf32> -> vector<32x32xf32>
    %28 = arith.addf %24, %27 : vector<32x32xf32>
    %c0_15 = arith.constant 0 : index
    %c0_16 = arith.constant 0 : index
    %29 = vector.load %arg1[%c0_15, %c0_16] : memref<32x4xf32, #tpu.memory_space<vmem>>, vector<32x4xf32>
    %c0_17 = arith.constant 0 : index
    %c0_18 = arith.constant 0 : index
    %30 = vector.load %arg7[%c0_17, %c0_18] : memref<4x32xf32, #tpu.memory_space<vmem>>, vector<4x32xf32>
    %cst_19 = arith.constant dense<0.000000e+00> : vector<32x32xf32>
    %31 = tpu.matmul %29, %30, %cst_19 {dimension_numbers = #tpu.dot_dimension_numbers<[1], [0], [0], [1], [0, 0, 1, 1], [], []>} : vector<32x4xf32>, vector<4x32xf32>, vector<32x32xf32> -> vector<32x32xf32>
    %32 = arith.addf %28, %31 : vector<32x32xf32>
    %c0_20 = arith.constant 0 : index
    %c0_21 = arith.constant 0 : index
    %33 = vector.load %arg2[%c0_20, %c0_21] : memref<32x32xf32, #tpu.memory_space<vmem>>, vector<32x32xf32>
    %34 = arith.addf %32, %33 : vector<32x32xf32>
    %c0_22 = arith.constant 0 : index
    %c0_23 = arith.constant 0 : index
    %35 = vector.load %arg5[%c0_22, %c0_23] : memref<32x32xf32, #tpu.memory_space<vmem>>, vector<32x32xf32>
    %c0_24 = arith.constant 0 : index
    %c0_25 = arith.constant 0 : index
    %c0_26 = arith.constant 0 : index
    %36 = vector.load %arg8[%c0_24, %c0_25, %c0_26] : memref<2x32x96xbf16, #tpu.memory_space<vmem>>, vector<1x32x96xbf16>
    %37 = vector.shape_cast %36 : vector<1x32x96xbf16> to vector<32x96xbf16>
    %38 = arith.truncf %34 : vector<32x32xf32> to vector<32x32xbf16>
    %cst_27 = arith.constant dense<0.000000e+00> : vector<32x96xf32>
    %39 = tpu.matmul %38, %37, %cst_27 {dimension_numbers = #tpu.dot_dimension_numbers<[1], [0], [0], [1], [0, 0, 1, 1], [], []>} : vector<32x32xbf16>, vector<32x96xbf16>, vector<32x96xf32> -> vector<32x96xf32>
    %c0_28 = arith.constant 0 : index
    %c0_29 = arith.constant 0 : index
    %c0_30 = arith.constant 0 : index
    %40 = vector.load %arg9[%c0_28, %c0_29, %c0_30] : memref<2x1x96xf32, #tpu.memory_space<vmem>>, vector<1x1x96xf32>
    %41 = vector.shape_cast %40 : vector<1x1x96xf32> to vector<1x96xf32>
    %42 = vector.broadcast %41 : vector<1x96xf32> to vector<32x96xf32>
    %43 = arith.addf %39, %42 : vector<32x96xf32>
    %c0_31 = arith.constant 0 : index
    %c0_32 = arith.constant 0 : index
    %c0_33 = arith.constant 0 : index
    %44 = vector.load %arg10[%c0_31, %c0_32, %c0_33] : memref<2x32x32xf32, #tpu.memory_space<vmem>>, vector<1x32x32xf32>
    %45 = vector.shape_cast %44 : vector<1x32x32xf32> to vector<32x32xf32>
    %46 = vector.extract_strided_slice %43 {offsets = [0, 0], sizes = [32, 8], strides = [1, 1]} : vector<32x96xf32> to vector<32x8xf32>
    %47 = vector.extract_strided_slice %43 {offsets = [0, 32], sizes = [32, 8], strides = [1, 1]} : vector<32x96xf32> to vector<32x8xf32>
    %48 = vector.extract_strided_slice %43 {offsets = [0, 64], sizes = [32, 8], strides = [1, 1]} : vector<32x96xf32> to vector<32x8xf32>
    %49 = arith.truncf %46 : vector<32x8xf32> to vector<32x8xbf16>
    %50 = arith.truncf %47 : vector<32x8xf32> to vector<32x8xbf16>
    %cst_34 = arith.constant dense<0.000000e+00> : vector<32x32xf32>
    %51 = tpu.matmul %49, %50, %cst_34 {dimension_numbers = #tpu.dot_dimension_numbers<[1], [1], [0], [0], [0, 0, 1, 0], [], []>} : vector<32x8xbf16>, vector<32x8xbf16>, vector<32x32xf32> -> vector<32x32xf32>
    %52 = arith.addf %51, %35 : vector<32x32xf32>
    %cst_35 = arith.constant dense<0xFF800000> : vector<32xf32>
    %53 = vector.multi_reduction <maximumf>, %52, %cst_35 [1] : vector<32x32xf32> to vector<32xf32>
    %54 = vector.shape_cast %53 : vector<32xf32> to vector<32x1xf32>
    %55 = vector.broadcast %54 : vector<32x1xf32> to vector<32x32xf32>
    %56 = arith.subf %52, %55 : vector<32x32xf32>
    %57 = math.exp %56 : vector<32x32xf32>
    %cst_36 = arith.constant dense<0.000000e+00> : vector<32xf32>
    %58 = vector.multi_reduction <add>, %57, %cst_36 [1] : vector<32x32xf32> to vector<32xf32>
    %59 = vector.shape_cast %58 : vector<32xf32> to vector<32x1xf32>
    %60 = tpu.reciprocal %59 {approx = true} : vector<32x1xf32> -> vector<32x1xf32>
    %61 = vector.broadcast %60 : vector<32x1xf32> to vector<32x32xf32>
    %62 = arith.mulf %57, %61 : vector<32x32xf32>
    %63 = arith.truncf %62 : vector<32x32xf32> to vector<32x32xbf16>
    %64 = arith.truncf %48 : vector<32x8xf32> to vector<32x8xbf16>
    %cst_37 = arith.constant dense<0.000000e+00> : vector<32x8xf32>
    %65 = tpu.matmul %63, %64, %cst_37 {dimension_numbers = #tpu.dot_dimension_numbers<[1], [0], [0], [1], [0, 0, 1, 1], [], []>} : vector<32x32xbf16>, vector<32x8xbf16>, vector<32x8xf32> -> vector<32x8xf32>
    %66 = vector.extract_strided_slice %45 {offsets = [0, 0], sizes = [8, 32], strides = [1, 1]} : vector<32x32xf32> to vector<8x32xf32>
    %67 = arith.truncf %65 : vector<32x8xf32> to vector<32x8xbf16>
    %68 = arith.truncf %66 : vector<8x32xf32> to vector<8x32xbf16>
    %cst_38 = arith.constant dense<0.000000e+00> : vector<32x32xf32>
    %69 = tpu.matmul %67, %68, %cst_38 {dimension_numbers = #tpu.dot_dimension_numbers<[1], [0], [0], [1], [0, 0, 1, 1], [], []>} : vector<32x8xbf16>, vector<8x32xbf16>, vector<32x32xf32> -> vector<32x32xf32>
    %70 = vector.extract_strided_slice %43 {offsets = [0, 8], sizes = [32, 8], strides = [1, 1]} : vector<32x96xf32> to vector<32x8xf32>
    %71 = vector.extract_strided_slice %43 {offsets = [0, 40], sizes = [32, 8], strides = [1, 1]} : vector<32x96xf32> to vector<32x8xf32>
    %72 = vector.extract_strided_slice %43 {offsets = [0, 72], sizes = [32, 8], strides = [1, 1]} : vector<32x96xf32> to vector<32x8xf32>
    %73 = arith.truncf %70 : vector<32x8xf32> to vector<32x8xbf16>
    %74 = arith.truncf %71 : vector<32x8xf32> to vector<32x8xbf16>
    %cst_39 = arith.constant dense<0.000000e+00> : vector<32x32xf32>
    %75 = tpu.matmul %73, %74, %cst_39 {dimension_numbers = #tpu.dot_dimension_numbers<[1], [1], [0], [0], [0, 0, 1, 0], [], []>} : vector<32x8xbf16>, vector<32x8xbf16>, vector<32x32xf32> -> vector<32x32xf32>
    %76 = arith.addf %75, %35 : vector<32x32xf32>
    %cst_40 = arith.constant dense<0xFF800000> : vector<32xf32>
    %77 = vector.multi_reduction <maximumf>, %76, %cst_40 [1] : vector<32x32xf32> to vector<32xf32>
    %78 = vector.shape_cast %77 : vector<32xf32> to vector<32x1xf32>
    %79 = vector.broadcast %78 : vector<32x1xf32> to vector<32x32xf32>
    %80 = arith.subf %76, %79 : vector<32x32xf32>
    %81 = math.exp %80 : vector<32x32xf32>
    %cst_41 = arith.constant dense<0.000000e+00> : vector<32xf32>
    %82 = vector.multi_reduction <add>, %81, %cst_41 [1] : vector<32x32xf32> to vector<32xf32>
    %83 = vector.shape_cast %82 : vector<32xf32> to vector<32x1xf32>
    %84 = tpu.reciprocal %83 {approx = true} : vector<32x1xf32> -> vector<32x1xf32>
    %85 = vector.broadcast %84 : vector<32x1xf32> to vector<32x32xf32>
    %86 = arith.mulf %81, %85 : vector<32x32xf32>
    %87 = arith.truncf %86 : vector<32x32xf32> to vector<32x32xbf16>
    %88 = arith.truncf %72 : vector<32x8xf32> to vector<32x8xbf16>
    %cst_42 = arith.constant dense<0.000000e+00> : vector<32x8xf32>
    %89 = tpu.matmul %87, %88, %cst_42 {dimension_numbers = #tpu.dot_dimension_numbers<[1], [0], [0], [1], [0, 0, 1, 1], [], []>} : vector<32x32xbf16>, vector<32x8xbf16>, vector<32x8xf32> -> vector<32x8xf32>
    %90 = vector.extract_strided_slice %45 {offsets = [8, 0], sizes = [8, 32], strides = [1, 1]} : vector<32x32xf32> to vector<8x32xf32>
    %91 = arith.truncf %89 : vector<32x8xf32> to vector<32x8xbf16>
    %92 = arith.truncf %90 : vector<8x32xf32> to vector<8x32xbf16>
    %cst_43 = arith.constant dense<0.000000e+00> : vector<32x32xf32>
    %93 = tpu.matmul %91, %92, %cst_43 {dimension_numbers = #tpu.dot_dimension_numbers<[1], [0], [0], [1], [0, 0, 1, 1], [], []>} : vector<32x8xbf16>, vector<8x32xbf16>, vector<32x32xf32> -> vector<32x32xf32>
    %94 = arith.addf %69, %93 : vector<32x32xf32>
    %95 = vector.extract_strided_slice %43 {offsets = [0, 16], sizes = [32, 8], strides = [1, 1]} : vector<32x96xf32> to vector<32x8xf32>
    %96 = vector.extract_strided_slice %43 {offsets = [0, 48], sizes = [32, 8], strides = [1, 1]} : vector<32x96xf32> to vector<32x8xf32>
    %97 = vector.extract_strided_slice %43 {offsets = [0, 80], sizes = [32, 8], strides = [1, 1]} : vector<32x96xf32> to vector<32x8xf32>
    %98 = arith.truncf %95 : vector<32x8xf32> to vector<32x8xbf16>
    %99 = arith.truncf %96 : vector<32x8xf32> to vector<32x8xbf16>
    %cst_44 = arith.constant dense<0.000000e+00> : vector<32x32xf32>
    %100 = tpu.matmul %98, %99, %cst_44 {dimension_numbers = #tpu.dot_dimension_numbers<[1], [1], [0], [0], [0, 0, 1, 0], [], []>} : vector<32x8xbf16>, vector<32x8xbf16>, vector<32x32xf32> -> vector<32x32xf32>
    %101 = arith.addf %100, %35 : vector<32x32xf32>
    %cst_45 = arith.constant dense<0xFF800000> : vector<32xf32>
    %102 = vector.multi_reduction <maximumf>, %101, %cst_45 [1] : vector<32x32xf32> to vector<32xf32>
    %103 = vector.shape_cast %102 : vector<32xf32> to vector<32x1xf32>
    %104 = vector.broadcast %103 : vector<32x1xf32> to vector<32x32xf32>
    %105 = arith.subf %101, %104 : vector<32x32xf32>
    %106 = math.exp %105 : vector<32x32xf32>
    %cst_46 = arith.constant dense<0.000000e+00> : vector<32xf32>
    %107 = vector.multi_reduction <add>, %106, %cst_46 [1] : vector<32x32xf32> to vector<32xf32>
    %108 = vector.shape_cast %107 : vector<32xf32> to vector<32x1xf32>
    %109 = tpu.reciprocal %108 {approx = true} : vector<32x1xf32> -> vector<32x1xf32>
    %110 = vector.broadcast %109 : vector<32x1xf32> to vector<32x32xf32>
    %111 = arith.mulf %106, %110 : vector<32x32xf32>
    %112 = arith.truncf %111 : vector<32x32xf32> to vector<32x32xbf16>
    %113 = arith.truncf %97 : vector<32x8xf32> to vector<32x8xbf16>
    %cst_47 = arith.constant dense<0.000000e+00> : vector<32x8xf32>
    %114 = tpu.matmul %112, %113, %cst_47 {dimension_numbers = #tpu.dot_dimension_numbers<[1], [0], [0], [1], [0, 0, 1, 1], [], []>} : vector<32x32xbf16>, vector<32x8xbf16>, vector<32x8xf32> -> vector<32x8xf32>
    %115 = vector.extract_strided_slice %45 {offsets = [16, 0], sizes = [8, 32], strides = [1, 1]} : vector<32x32xf32> to vector<8x32xf32>
    %116 = arith.truncf %114 : vector<32x8xf32> to vector<32x8xbf16>
    %117 = arith.truncf %115 : vector<8x32xf32> to vector<8x32xbf16>
    %cst_48 = arith.constant dense<0.000000e+00> : vector<32x32xf32>
    %118 = tpu.matmul %116, %117, %cst_48 {dimension_numbers = #tpu.dot_dimension_numbers<[1], [0], [0], [1], [0, 0, 1, 1], [], []>} : vector<32x8xbf16>, vector<8x32xbf16>, vector<32x32xf32> -> vector<32x32xf32>
    %119 = arith.addf %94, %118 : vector<32x32xf32>
    %120 = vector.extract_strided_slice %43 {offsets = [0, 24], sizes = [32, 8], strides = [1, 1]} : vector<32x96xf32> to vector<32x8xf32>
    %121 = vector.extract_strided_slice %43 {offsets = [0, 56], sizes = [32, 8], strides = [1, 1]} : vector<32x96xf32> to vector<32x8xf32>
    %122 = vector.extract_strided_slice %43 {offsets = [0, 88], sizes = [32, 8], strides = [1, 1]} : vector<32x96xf32> to vector<32x8xf32>
    %123 = arith.truncf %120 : vector<32x8xf32> to vector<32x8xbf16>
    %124 = arith.truncf %121 : vector<32x8xf32> to vector<32x8xbf16>
    %cst_49 = arith.constant dense<0.000000e+00> : vector<32x32xf32>
    %125 = tpu.matmul %123, %124, %cst_49 {dimension_numbers = #tpu.dot_dimension_numbers<[1], [1], [0], [0], [0, 0, 1, 0], [], []>} : vector<32x8xbf16>, vector<32x8xbf16>, vector<32x32xf32> -> vector<32x32xf32>
    %126 = arith.addf %125, %35 : vector<32x32xf32>
    %cst_50 = arith.constant dense<0xFF800000> : vector<32xf32>
    %127 = vector.multi_reduction <maximumf>, %126, %cst_50 [1] : vector<32x32xf32> to vector<32xf32>
    %128 = vector.shape_cast %127 : vector<32xf32> to vector<32x1xf32>
    %129 = vector.broadcast %128 : vector<32x1xf32> to vector<32x32xf32>
    %130 = arith.subf %126, %129 : vector<32x32xf32>
    %131 = math.exp %130 : vector<32x32xf32>
    %cst_51 = arith.constant dense<0.000000e+00> : vector<32xf32>
    %132 = vector.multi_reduction <add>, %131, %cst_51 [1] : vector<32x32xf32> to vector<32xf32>
    %133 = vector.shape_cast %132 : vector<32xf32> to vector<32x1xf32>
    %134 = tpu.reciprocal %133 {approx = true} : vector<32x1xf32> -> vector<32x1xf32>
    %135 = vector.broadcast %134 : vector<32x1xf32> to vector<32x32xf32>
    %136 = arith.mulf %131, %135 : vector<32x32xf32>
    %137 = arith.truncf %136 : vector<32x32xf32> to vector<32x32xbf16>
    %138 = arith.truncf %122 : vector<32x8xf32> to vector<32x8xbf16>
    %cst_52 = arith.constant dense<0.000000e+00> : vector<32x8xf32>
    %139 = tpu.matmul %137, %138, %cst_52 {dimension_numbers = #tpu.dot_dimension_numbers<[1], [0], [0], [1], [0, 0, 1, 1], [], []>} : vector<32x32xbf16>, vector<32x8xbf16>, vector<32x8xf32> -> vector<32x8xf32>
    %140 = vector.extract_strided_slice %45 {offsets = [24, 0], sizes = [8, 32], strides = [1, 1]} : vector<32x32xf32> to vector<8x32xf32>
    %141 = arith.truncf %139 : vector<32x8xf32> to vector<32x8xbf16>
    %142 = arith.truncf %140 : vector<8x32xf32> to vector<8x32xbf16>
    %cst_53 = arith.constant dense<0.000000e+00> : vector<32x32xf32>
    %143 = tpu.matmul %141, %142, %cst_53 {dimension_numbers = #tpu.dot_dimension_numbers<[1], [0], [0], [1], [0, 0, 1, 1], [], []>} : vector<32x8xbf16>, vector<8x32xbf16>, vector<32x32xf32> -> vector<32x32xf32>
    %144 = arith.addf %119, %143 : vector<32x32xf32>
    %c0_54 = arith.constant 0 : index
    %c0_55 = arith.constant 0 : index
    %c0_56 = arith.constant 0 : index
    %145 = vector.load %arg11[%c0_54, %c0_55, %c0_56] : memref<2x1x32xf32, #tpu.memory_space<vmem>>, vector<1x1x32xf32>
    %146 = vector.shape_cast %145 : vector<1x1x32xf32> to vector<1x32xf32>
    %147 = vector.broadcast %146 : vector<1x32xf32> to vector<32x32xf32>
    %148 = arith.addf %144, %147 : vector<32x32xf32>
    %149 = arith.addf %34, %148 : vector<32x32xf32>
    %c0_57 = arith.constant 0 : index
    %c0_58 = arith.constant 0 : index
    %c0_59 = arith.constant 0 : index
    %150 = vector.load %arg12[%c0_57, %c0_58, %c0_59] : memref<2x1x32xf32, #tpu.memory_space<vmem>>, vector<1x1x32xf32>
    %151 = vector.shape_cast %150 : vector<1x1x32xf32> to vector<1x32xf32>
    %c0_60 = arith.constant 0 : index
    %c0_61 = arith.constant 0 : index
    %c0_62 = arith.constant 0 : index
    %152 = vector.load %arg13[%c0_60, %c0_61, %c0_62] : memref<2x1x32xf32, #tpu.memory_space<vmem>>, vector<1x1x32xf32>
    %153 = vector.shape_cast %152 : vector<1x1x32xf32> to vector<1x32xf32>
    %cst_63 = arith.constant dense<0.000000e+00> : vector<32xf32>
    %154 = vector.multi_reduction <add>, %149, %cst_63 [1] : vector<32x32xf32> to vector<32xf32>
    %155 = vector.shape_cast %154 : vector<32xf32> to vector<32x1xf32>
    %cst_64 = arith.constant 3.200000e+01 : f32
    %156 = vector.broadcast %cst_64 : f32 to vector<32x1xf32>
    %157 = arith.divf %155, %156 : vector<32x1xf32>
    %158 = vector.broadcast %157 : vector<32x1xf32> to vector<32x32xf32>
    %159 = arith.subf %149, %158 : vector<32x32xf32>
    %160 = arith.mulf %159, %159 : vector<32x32xf32>
    %cst_65 = arith.constant dense<0.000000e+00> : vector<32xf32>
    %161 = vector.multi_reduction <add>, %160, %cst_65 [1] : vector<32x32xf32> to vector<32xf32>
    %162 = vector.shape_cast %161 : vector<32xf32> to vector<32x1xf32>
    %cst_66 = arith.constant 3.200000e+01 : f32
    %163 = vector.broadcast %cst_66 : f32 to vector<32x1xf32>
    %164 = arith.divf %162, %163 : vector<32x1xf32>
    %cst_67 = arith.constant 9.99999974E-6 : f32
    %165 = vector.broadcast %cst_67 : f32 to vector<32x1xf32>
    %166 = arith.addf %164, %165 : vector<32x1xf32>
    %167 = math.rsqrt %166 : vector<32x1xf32>
    %168 = vector.broadcast %167 : vector<32x1xf32> to vector<32x32xf32>
    %169 = arith.mulf %159, %168 : vector<32x32xf32>
    %170 = vector.broadcast %151 : vector<1x32xf32> to vector<32x32xf32>
    %171 = arith.mulf %169, %170 : vector<32x32xf32>
    %172 = vector.broadcast %153 : vector<1x32xf32> to vector<32x32xf32>
    %173 = arith.addf %171, %172 : vector<32x32xf32>
    %c0_68 = arith.constant 0 : index
    %c0_69 = arith.constant 0 : index
    %c0_70 = arith.constant 0 : index
    %174 = vector.load %arg14[%c0_68, %c0_69, %c0_70] : memref<2x32x64xbf16, #tpu.memory_space<vmem>>, vector<1x32x64xbf16>
    %175 = vector.shape_cast %174 : vector<1x32x64xbf16> to vector<32x64xbf16>
    %176 = arith.truncf %173 : vector<32x32xf32> to vector<32x32xbf16>
    %cst_71 = arith.constant dense<0.000000e+00> : vector<32x64xf32>
    %177 = tpu.matmul %176, %175, %cst_71 {dimension_numbers = #tpu.dot_dimension_numbers<[1], [0], [0], [1], [0, 0, 1, 1], [], []>} : vector<32x32xbf16>, vector<32x64xbf16>, vector<32x64xf32> -> vector<32x64xf32>
    %c0_72 = arith.constant 0 : index
    %c0_73 = arith.constant 0 : index
    %c0_74 = arith.constant 0 : index
    %178 = vector.load %arg15[%c0_72, %c0_73, %c0_74] : memref<2x1x64xf32, #tpu.memory_space<vmem>>, vector<1x1x64xf32>
    %179 = vector.shape_cast %178 : vector<1x1x64xf32> to vector<1x64xf32>
    %180 = vector.broadcast %179 : vector<1x64xf32> to vector<32x64xf32>
    %181 = arith.addf %177, %180 : vector<32x64xf32>
    %cst_75 = arith.constant 0.000000e+00 : f32
    %182 = vector.broadcast %cst_75 : f32 to vector<32x64xf32>
    %183 = arith.maximumf %181, %182 : vector<32x64xf32>
    %c0_76 = arith.constant 0 : index
    %c0_77 = arith.constant 0 : index
    %c0_78 = arith.constant 0 : index
    %184 = vector.load %arg16[%c0_76, %c0_77, %c0_78] : memref<2x64x32xbf16, #tpu.memory_space<vmem>>, vector<1x64x32xbf16>
    %185 = vector.shape_cast %184 : vector<1x64x32xbf16> to vector<64x32xbf16>
    %186 = arith.truncf %183 : vector<32x64xf32> to vector<32x64xbf16>
    %cst_79 = arith.constant dense<0.000000e+00> : vector<32x32xf32>
    %187 = tpu.matmul %186, %185, %cst_79 {dimension_numbers = #tpu.dot_dimension_numbers<[1], [0], [0], [1], [0, 0, 1, 1], [], []>} : vector<32x64xbf16>, vector<64x32xbf16>, vector<32x32xf32> -> vector<32x32xf32>
    %c0_80 = arith.constant 0 : index
    %c0_81 = arith.constant 0 : index
    %c0_82 = arith.constant 0 : index
    %188 = vector.load %arg17[%c0_80, %c0_81, %c0_82] : memref<2x1x32xf32, #tpu.memory_space<vmem>>, vector<1x1x32xf32>
    %189 = vector.shape_cast %188 : vector<1x1x32xf32> to vector<1x32xf32>
    %190 = vector.broadcast %189 : vector<1x32xf32> to vector<32x32xf32>
    %191 = arith.addf %187, %190 : vector<32x32xf32>
    %192 = arith.addf %173, %191 : vector<32x32xf32>
    %c0_83 = arith.constant 0 : index
    %c0_84 = arith.constant 0 : index
    %c0_85 = arith.constant 0 : index
    %193 = vector.load %arg18[%c0_83, %c0_84, %c0_85] : memref<2x1x32xf32, #tpu.memory_space<vmem>>, vector<1x1x32xf32>
    %194 = vector.shape_cast %193 : vector<1x1x32xf32> to vector<1x32xf32>
    %c0_86 = arith.constant 0 : index
    %c0_87 = arith.constant 0 : index
    %c0_88 = arith.constant 0 : index
    %195 = vector.load %arg19[%c0_86, %c0_87, %c0_88] : memref<2x1x32xf32, #tpu.memory_space<vmem>>, vector<1x1x32xf32>
    %196 = vector.shape_cast %195 : vector<1x1x32xf32> to vector<1x32xf32>
    %cst_89 = arith.constant dense<0.000000e+00> : vector<32xf32>
    %197 = vector.multi_reduction <add>, %192, %cst_89 [1] : vector<32x32xf32> to vector<32xf32>
    %198 = vector.shape_cast %197 : vector<32xf32> to vector<32x1xf32>
    %cst_90 = arith.constant 3.200000e+01 : f32
    %199 = vector.broadcast %cst_90 : f32 to vector<32x1xf32>
    %200 = arith.divf %198, %199 : vector<32x1xf32>
    %201 = vector.broadcast %200 : vector<32x1xf32> to vector<32x32xf32>
    %202 = arith.subf %192, %201 : vector<32x32xf32>
    %203 = arith.mulf %202, %202 : vector<32x32xf32>
    %cst_91 = arith.constant dense<0.000000e+00> : vector<32xf32>
    %204 = vector.multi_reduction <add>, %203, %cst_91 [1] : vector<32x32xf32> to vector<32xf32>
    %205 = vector.shape_cast %204 : vector<32xf32> to vector<32x1xf32>
    %cst_92 = arith.constant 3.200000e+01 : f32
    %206 = vector.broadcast %cst_92 : f32 to vector<32x1xf32>
    %207 = arith.divf %205, %206 : vector<32x1xf32>
    %cst_93 = arith.constant 9.99999974E-6 : f32
    %208 = vector.broadcast %cst_93 : f32 to vector<32x1xf32>
    %209 = arith.addf %207, %208 : vector<32x1xf32>
    %210 = math.rsqrt %209 : vector<32x1xf32>
    %211 = vector.broadcast %210 : vector<32x1xf32> to vector<32x32xf32>
    %212 = arith.mulf %202, %211 : vector<32x32xf32>
    %213 = vector.broadcast %194 : vector<1x32xf32> to vector<32x32xf32>
    %214 = arith.mulf %212, %213 : vector<32x32xf32>
    %215 = vector.broadcast %196 : vector<1x32xf32> to vector<32x32xf32>
    %216 = arith.addf %214, %215 : vector<32x32xf32>
    %c1 = arith.constant 1 : index
    %c0_94 = arith.constant 0 : index
    %c0_95 = arith.constant 0 : index
    %217 = vector.load %arg8[%c1, %c0_94, %c0_95] : memref<2x32x96xbf16, #tpu.memory_space<vmem>>, vector<1x32x96xbf16>
    %218 = vector.shape_cast %217 : vector<1x32x96xbf16> to vector<32x96xbf16>
    %219 = arith.truncf %216 : vector<32x32xf32> to vector<32x32xbf16>
    %cst_96 = arith.constant dense<0.000000e+00> : vector<32x96xf32>
    %220 = tpu.matmul %219, %218, %cst_96 {dimension_numbers = #tpu.dot_dimension_numbers<[1], [0], [0], [1], [0, 0, 1, 1], [], []>} : vector<32x32xbf16>, vector<32x96xbf16>, vector<32x96xf32> -> vector<32x96xf32>
    %c1_97 = arith.constant 1 : index
    %c0_98 = arith.constant 0 : index
    %c0_99 = arith.constant 0 : index
    %221 = vector.load %arg9[%c1_97, %c0_98, %c0_99] : memref<2x1x96xf32, #tpu.memory_space<vmem>>, vector<1x1x96xf32>
    %222 = vector.shape_cast %221 : vector<1x1x96xf32> to vector<1x96xf32>
    %223 = vector.broadcast %222 : vector<1x96xf32> to vector<32x96xf32>
    %224 = arith.addf %220, %223 : vector<32x96xf32>
    %c1_100 = arith.constant 1 : index
    %c0_101 = arith.constant 0 : index
    %c0_102 = arith.constant 0 : index
    %225 = vector.load %arg10[%c1_100, %c0_101, %c0_102] : memref<2x32x32xf32, #tpu.memory_space<vmem>>, vector<1x32x32xf32>
    %226 = vector.shape_cast %225 : vector<1x32x32xf32> to vector<32x32xf32>
    %227 = vector.extract_strided_slice %224 {offsets = [0, 0], sizes = [32, 8], strides = [1, 1]} : vector<32x96xf32> to vector<32x8xf32>
    %228 = vector.extract_strided_slice %224 {offsets = [0, 32], sizes = [32, 8], strides = [1, 1]} : vector<32x96xf32> to vector<32x8xf32>
    %229 = vector.extract_strided_slice %224 {offsets = [0, 64], sizes = [32, 8], strides = [1, 1]} : vector<32x96xf32> to vector<32x8xf32>
    %230 = arith.truncf %227 : vector<32x8xf32> to vector<32x8xbf16>
    %231 = arith.truncf %228 : vector<32x8xf32> to vector<32x8xbf16>
    %cst_103 = arith.constant dense<0.000000e+00> : vector<32x32xf32>
    %232 = tpu.matmul %230, %231, %cst_103 {dimension_numbers = #tpu.dot_dimension_numbers<[1], [1], [0], [0], [0, 0, 1, 0], [], []>} : vector<32x8xbf16>, vector<32x8xbf16>, vector<32x32xf32> -> vector<32x32xf32>
    %233 = arith.addf %232, %35 : vector<32x32xf32>
    %cst_104 = arith.constant dense<0xFF800000> : vector<32xf32>
    %234 = vector.multi_reduction <maximumf>, %233, %cst_104 [1] : vector<32x32xf32> to vector<32xf32>
    %235 = vector.shape_cast %234 : vector<32xf32> to vector<32x1xf32>
    %236 = vector.broadcast %235 : vector<32x1xf32> to vector<32x32xf32>
    %237 = arith.subf %233, %236 : vector<32x32xf32>
    %238 = math.exp %237 : vector<32x32xf32>
    %cst_105 = arith.constant dense<0.000000e+00> : vector<32xf32>
    %239 = vector.multi_reduction <add>, %238, %cst_105 [1] : vector<32x32xf32> to vector<32xf32>
    %240 = vector.shape_cast %239 : vector<32xf32> to vector<32x1xf32>
    %241 = tpu.reciprocal %240 {approx = true} : vector<32x1xf32> -> vector<32x1xf32>
    %242 = vector.broadcast %241 : vector<32x1xf32> to vector<32x32xf32>
    %243 = arith.mulf %238, %242 : vector<32x32xf32>
    %244 = arith.truncf %243 : vector<32x32xf32> to vector<32x32xbf16>
    %245 = arith.truncf %229 : vector<32x8xf32> to vector<32x8xbf16>
    %cst_106 = arith.constant dense<0.000000e+00> : vector<32x8xf32>
    %246 = tpu.matmul %244, %245, %cst_106 {dimension_numbers = #tpu.dot_dimension_numbers<[1], [0], [0], [1], [0, 0, 1, 1], [], []>} : vector<32x32xbf16>, vector<32x8xbf16>, vector<32x8xf32> -> vector<32x8xf32>
    %247 = vector.extract_strided_slice %226 {offsets = [0, 0], sizes = [8, 32], strides = [1, 1]} : vector<32x32xf32> to vector<8x32xf32>
    %248 = arith.truncf %246 : vector<32x8xf32> to vector<32x8xbf16>
    %249 = arith.truncf %247 : vector<8x32xf32> to vector<8x32xbf16>
    %cst_107 = arith.constant dense<0.000000e+00> : vector<32x32xf32>
    %250 = tpu.matmul %248, %249, %cst_107 {dimension_numbers = #tpu.dot_dimension_numbers<[1], [0], [0], [1], [0, 0, 1, 1], [], []>} : vector<32x8xbf16>, vector<8x32xbf16>, vector<32x32xf32> -> vector<32x32xf32>
    %251 = vector.extract_strided_slice %224 {offsets = [0, 8], sizes = [32, 8], strides = [1, 1]} : vector<32x96xf32> to vector<32x8xf32>
    %252 = vector.extract_strided_slice %224 {offsets = [0, 40], sizes = [32, 8], strides = [1, 1]} : vector<32x96xf32> to vector<32x8xf32>
    %253 = vector.extract_strided_slice %224 {offsets = [0, 72], sizes = [32, 8], strides = [1, 1]} : vector<32x96xf32> to vector<32x8xf32>
    %254 = arith.truncf %251 : vector<32x8xf32> to vector<32x8xbf16>
    %255 = arith.truncf %252 : vector<32x8xf32> to vector<32x8xbf16>
    %cst_108 = arith.constant dense<0.000000e+00> : vector<32x32xf32>
    %256 = tpu.matmul %254, %255, %cst_108 {dimension_numbers = #tpu.dot_dimension_numbers<[1], [1], [0], [0], [0, 0, 1, 0], [], []>} : vector<32x8xbf16>, vector<32x8xbf16>, vector<32x32xf32> -> vector<32x32xf32>
    %257 = arith.addf %256, %35 : vector<32x32xf32>
    %cst_109 = arith.constant dense<0xFF800000> : vector<32xf32>
    %258 = vector.multi_reduction <maximumf>, %257, %cst_109 [1] : vector<32x32xf32> to vector<32xf32>
    %259 = vector.shape_cast %258 : vector<32xf32> to vector<32x1xf32>
    %260 = vector.broadcast %259 : vector<32x1xf32> to vector<32x32xf32>
    %261 = arith.subf %257, %260 : vector<32x32xf32>
    %262 = math.exp %261 : vector<32x32xf32>
    %cst_110 = arith.constant dense<0.000000e+00> : vector<32xf32>
    %263 = vector.multi_reduction <add>, %262, %cst_110 [1] : vector<32x32xf32> to vector<32xf32>
    %264 = vector.shape_cast %263 : vector<32xf32> to vector<32x1xf32>
    %265 = tpu.reciprocal %264 {approx = true} : vector<32x1xf32> -> vector<32x1xf32>
    %266 = vector.broadcast %265 : vector<32x1xf32> to vector<32x32xf32>
    %267 = arith.mulf %262, %266 : vector<32x32xf32>
    %268 = arith.truncf %267 : vector<32x32xf32> to vector<32x32xbf16>
    %269 = arith.truncf %253 : vector<32x8xf32> to vector<32x8xbf16>
    %cst_111 = arith.constant dense<0.000000e+00> : vector<32x8xf32>
    %270 = tpu.matmul %268, %269, %cst_111 {dimension_numbers = #tpu.dot_dimension_numbers<[1], [0], [0], [1], [0, 0, 1, 1], [], []>} : vector<32x32xbf16>, vector<32x8xbf16>, vector<32x8xf32> -> vector<32x8xf32>
    %271 = vector.extract_strided_slice %226 {offsets = [8, 0], sizes = [8, 32], strides = [1, 1]} : vector<32x32xf32> to vector<8x32xf32>
    %272 = arith.truncf %270 : vector<32x8xf32> to vector<32x8xbf16>
    %273 = arith.truncf %271 : vector<8x32xf32> to vector<8x32xbf16>
    %cst_112 = arith.constant dense<0.000000e+00> : vector<32x32xf32>
    %274 = tpu.matmul %272, %273, %cst_112 {dimension_numbers = #tpu.dot_dimension_numbers<[1], [0], [0], [1], [0, 0, 1, 1], [], []>} : vector<32x8xbf16>, vector<8x32xbf16>, vector<32x32xf32> -> vector<32x32xf32>
    %275 = arith.addf %250, %274 : vector<32x32xf32>
    %276 = vector.extract_strided_slice %224 {offsets = [0, 16], sizes = [32, 8], strides = [1, 1]} : vector<32x96xf32> to vector<32x8xf32>
    %277 = vector.extract_strided_slice %224 {offsets = [0, 48], sizes = [32, 8], strides = [1, 1]} : vector<32x96xf32> to vector<32x8xf32>
    %278 = vector.extract_strided_slice %224 {offsets = [0, 80], sizes = [32, 8], strides = [1, 1]} : vector<32x96xf32> to vector<32x8xf32>
    %279 = arith.truncf %276 : vector<32x8xf32> to vector<32x8xbf16>
    %280 = arith.truncf %277 : vector<32x8xf32> to vector<32x8xbf16>
    %cst_113 = arith.constant dense<0.000000e+00> : vector<32x32xf32>
    %281 = tpu.matmul %279, %280, %cst_113 {dimension_numbers = #tpu.dot_dimension_numbers<[1], [1], [0], [0], [0, 0, 1, 0], [], []>} : vector<32x8xbf16>, vector<32x8xbf16>, vector<32x32xf32> -> vector<32x32xf32>
    %282 = arith.addf %281, %35 : vector<32x32xf32>
    %cst_114 = arith.constant dense<0xFF800000> : vector<32xf32>
    %283 = vector.multi_reduction <maximumf>, %282, %cst_114 [1] : vector<32x32xf32> to vector<32xf32>
    %284 = vector.shape_cast %283 : vector<32xf32> to vector<32x1xf32>
    %285 = vector.broadcast %284 : vector<32x1xf32> to vector<32x32xf32>
    %286 = arith.subf %282, %285 : vector<32x32xf32>
    %287 = math.exp %286 : vector<32x32xf32>
    %cst_115 = arith.constant dense<0.000000e+00> : vector<32xf32>
    %288 = vector.multi_reduction <add>, %287, %cst_115 [1] : vector<32x32xf32> to vector<32xf32>
    %289 = vector.shape_cast %288 : vector<32xf32> to vector<32x1xf32>
    %290 = tpu.reciprocal %289 {approx = true} : vector<32x1xf32> -> vector<32x1xf32>
    %291 = vector.broadcast %290 : vector<32x1xf32> to vector<32x32xf32>
    %292 = arith.mulf %287, %291 : vector<32x32xf32>
    %293 = arith.truncf %292 : vector<32x32xf32> to vector<32x32xbf16>
    %294 = arith.truncf %278 : vector<32x8xf32> to vector<32x8xbf16>
    %cst_116 = arith.constant dense<0.000000e+00> : vector<32x8xf32>
    %295 = tpu.matmul %293, %294, %cst_116 {dimension_numbers = #tpu.dot_dimension_numbers<[1], [0], [0], [1], [0, 0, 1, 1], [], []>} : vector<32x32xbf16>, vector<32x8xbf16>, vector<32x8xf32> -> vector<32x8xf32>
    %296 = vector.extract_strided_slice %226 {offsets = [16, 0], sizes = [8, 32], strides = [1, 1]} : vector<32x32xf32> to vector<8x32xf32>
    %297 = arith.truncf %295 : vector<32x8xf32> to vector<32x8xbf16>
    %298 = arith.truncf %296 : vector<8x32xf32> to vector<8x32xbf16>
    %cst_117 = arith.constant dense<0.000000e+00> : vector<32x32xf32>
    %299 = tpu.matmul %297, %298, %cst_117 {dimension_numbers = #tpu.dot_dimension_numbers<[1], [0], [0], [1], [0, 0, 1, 1], [], []>} : vector<32x8xbf16>, vector<8x32xbf16>, vector<32x32xf32> -> vector<32x32xf32>
    %300 = arith.addf %275, %299 : vector<32x32xf32>
    %301 = vector.extract_strided_slice %224 {offsets = [0, 24], sizes = [32, 8], strides = [1, 1]} : vector<32x96xf32> to vector<32x8xf32>
    %302 = vector.extract_strided_slice %224 {offsets = [0, 56], sizes = [32, 8], strides = [1, 1]} : vector<32x96xf32> to vector<32x8xf32>
    %303 = vector.extract_strided_slice %224 {offsets = [0, 88], sizes = [32, 8], strides = [1, 1]} : vector<32x96xf32> to vector<32x8xf32>
    %304 = arith.truncf %301 : vector<32x8xf32> to vector<32x8xbf16>
    %305 = arith.truncf %302 : vector<32x8xf32> to vector<32x8xbf16>
    %cst_118 = arith.constant dense<0.000000e+00> : vector<32x32xf32>
    %306 = tpu.matmul %304, %305, %cst_118 {dimension_numbers = #tpu.dot_dimension_numbers<[1], [1], [0], [0], [0, 0, 1, 0], [], []>} : vector<32x8xbf16>, vector<32x8xbf16>, vector<32x32xf32> -> vector<32x32xf32>
    %307 = arith.addf %306, %35 : vector<32x32xf32>
    %cst_119 = arith.constant dense<0xFF800000> : vector<32xf32>
    %308 = vector.multi_reduction <maximumf>, %307, %cst_119 [1] : vector<32x32xf32> to vector<32xf32>
    %309 = vector.shape_cast %308 : vector<32xf32> to vector<32x1xf32>
    %310 = vector.broadcast %309 : vector<32x1xf32> to vector<32x32xf32>
    %311 = arith.subf %307, %310 : vector<32x32xf32>
    %312 = math.exp %311 : vector<32x32xf32>
    %cst_120 = arith.constant dense<0.000000e+00> : vector<32xf32>
    %313 = vector.multi_reduction <add>, %312, %cst_120 [1] : vector<32x32xf32> to vector<32xf32>
    %314 = vector.shape_cast %313 : vector<32xf32> to vector<32x1xf32>
    %315 = tpu.reciprocal %314 {approx = true} : vector<32x1xf32> -> vector<32x1xf32>
    %316 = vector.broadcast %315 : vector<32x1xf32> to vector<32x32xf32>
    %317 = arith.mulf %312, %316 : vector<32x32xf32>
    %318 = arith.truncf %317 : vector<32x32xf32> to vector<32x32xbf16>
    %319 = arith.truncf %303 : vector<32x8xf32> to vector<32x8xbf16>
    %cst_121 = arith.constant dense<0.000000e+00> : vector<32x8xf32>
    %320 = tpu.matmul %318, %319, %cst_121 {dimension_numbers = #tpu.dot_dimension_numbers<[1], [0], [0], [1], [0, 0, 1, 1], [], []>} : vector<32x32xbf16>, vector<32x8xbf16>, vector<32x8xf32> -> vector<32x8xf32>
    %321 = vector.extract_strided_slice %226 {offsets = [24, 0], sizes = [8, 32], strides = [1, 1]} : vector<32x32xf32> to vector<8x32xf32>
    %322 = arith.truncf %320 : vector<32x8xf32> to vector<32x8xbf16>
    %323 = arith.truncf %321 : vector<8x32xf32> to vector<8x32xbf16>
    %cst_122 = arith.constant dense<0.000000e+00> : vector<32x32xf32>
    %324 = tpu.matmul %322, %323, %cst_122 {dimension_numbers = #tpu.dot_dimension_numbers<[1], [0], [0], [1], [0, 0, 1, 1], [], []>} : vector<32x8xbf16>, vector<8x32xbf16>, vector<32x32xf32> -> vector<32x32xf32>
    %325 = arith.addf %300, %324 : vector<32x32xf32>
    %c1_123 = arith.constant 1 : index
    %c0_124 = arith.constant 0 : index
    %c0_125 = arith.constant 0 : index
    %326 = vector.load %arg11[%c1_123, %c0_124, %c0_125] : memref<2x1x32xf32, #tpu.memory_space<vmem>>, vector<1x1x32xf32>
    %327 = vector.shape_cast %326 : vector<1x1x32xf32> to vector<1x32xf32>
    %328 = vector.broadcast %327 : vector<1x32xf32> to vector<32x32xf32>
    %329 = arith.addf %325, %328 : vector<32x32xf32>
    %330 = arith.addf %216, %329 : vector<32x32xf32>
    %c1_126 = arith.constant 1 : index
    %c0_127 = arith.constant 0 : index
    %c0_128 = arith.constant 0 : index
    %331 = vector.load %arg12[%c1_126, %c0_127, %c0_128] : memref<2x1x32xf32, #tpu.memory_space<vmem>>, vector<1x1x32xf32>
    %332 = vector.shape_cast %331 : vector<1x1x32xf32> to vector<1x32xf32>
    %c1_129 = arith.constant 1 : index
    %c0_130 = arith.constant 0 : index
    %c0_131 = arith.constant 0 : index
    %333 = vector.load %arg13[%c1_129, %c0_130, %c0_131] : memref<2x1x32xf32, #tpu.memory_space<vmem>>, vector<1x1x32xf32>
    %334 = vector.shape_cast %333 : vector<1x1x32xf32> to vector<1x32xf32>
    %cst_132 = arith.constant dense<0.000000e+00> : vector<32xf32>
    %335 = vector.multi_reduction <add>, %330, %cst_132 [1] : vector<32x32xf32> to vector<32xf32>
    %336 = vector.shape_cast %335 : vector<32xf32> to vector<32x1xf32>
    %cst_133 = arith.constant 3.200000e+01 : f32
    %337 = vector.broadcast %cst_133 : f32 to vector<32x1xf32>
    %338 = arith.divf %336, %337 : vector<32x1xf32>
    %339 = vector.broadcast %338 : vector<32x1xf32> to vector<32x32xf32>
    %340 = arith.subf %330, %339 : vector<32x32xf32>
    %341 = arith.mulf %340, %340 : vector<32x32xf32>
    %cst_134 = arith.constant dense<0.000000e+00> : vector<32xf32>
    %342 = vector.multi_reduction <add>, %341, %cst_134 [1] : vector<32x32xf32> to vector<32xf32>
    %343 = vector.shape_cast %342 : vector<32xf32> to vector<32x1xf32>
    %cst_135 = arith.constant 3.200000e+01 : f32
    %344 = vector.broadcast %cst_135 : f32 to vector<32x1xf32>
    %345 = arith.divf %343, %344 : vector<32x1xf32>
    %cst_136 = arith.constant 9.99999974E-6 : f32
    %346 = vector.broadcast %cst_136 : f32 to vector<32x1xf32>
    %347 = arith.addf %345, %346 : vector<32x1xf32>
    %348 = math.rsqrt %347 : vector<32x1xf32>
    %349 = vector.broadcast %348 : vector<32x1xf32> to vector<32x32xf32>
    %350 = arith.mulf %340, %349 : vector<32x32xf32>
    %351 = vector.broadcast %332 : vector<1x32xf32> to vector<32x32xf32>
    %352 = arith.mulf %350, %351 : vector<32x32xf32>
    %353 = vector.broadcast %334 : vector<1x32xf32> to vector<32x32xf32>
    %354 = arith.addf %352, %353 : vector<32x32xf32>
    %c1_137 = arith.constant 1 : index
    %c0_138 = arith.constant 0 : index
    %c0_139 = arith.constant 0 : index
    %355 = vector.load %arg14[%c1_137, %c0_138, %c0_139] : memref<2x32x64xbf16, #tpu.memory_space<vmem>>, vector<1x32x64xbf16>
    %356 = vector.shape_cast %355 : vector<1x32x64xbf16> to vector<32x64xbf16>
    %357 = arith.truncf %354 : vector<32x32xf32> to vector<32x32xbf16>
    %cst_140 = arith.constant dense<0.000000e+00> : vector<32x64xf32>
    %358 = tpu.matmul %357, %356, %cst_140 {dimension_numbers = #tpu.dot_dimension_numbers<[1], [0], [0], [1], [0, 0, 1, 1], [], []>} : vector<32x32xbf16>, vector<32x64xbf16>, vector<32x64xf32> -> vector<32x64xf32>
    %c1_141 = arith.constant 1 : index
    %c0_142 = arith.constant 0 : index
    %c0_143 = arith.constant 0 : index
    %359 = vector.load %arg15[%c1_141, %c0_142, %c0_143] : memref<2x1x64xf32, #tpu.memory_space<vmem>>, vector<1x1x64xf32>
    %360 = vector.shape_cast %359 : vector<1x1x64xf32> to vector<1x64xf32>
    %361 = vector.broadcast %360 : vector<1x64xf32> to vector<32x64xf32>
    %362 = arith.addf %358, %361 : vector<32x64xf32>
    %cst_144 = arith.constant 0.000000e+00 : f32
    %363 = vector.broadcast %cst_144 : f32 to vector<32x64xf32>
    %364 = arith.maximumf %362, %363 : vector<32x64xf32>
    %c1_145 = arith.constant 1 : index
    %c0_146 = arith.constant 0 : index
    %c0_147 = arith.constant 0 : index
    %365 = vector.load %arg16[%c1_145, %c0_146, %c0_147] : memref<2x64x32xbf16, #tpu.memory_space<vmem>>, vector<1x64x32xbf16>
    %366 = vector.shape_cast %365 : vector<1x64x32xbf16> to vector<64x32xbf16>
    %367 = arith.truncf %364 : vector<32x64xf32> to vector<32x64xbf16>
    %cst_148 = arith.constant dense<0.000000e+00> : vector<32x32xf32>
    %368 = tpu.matmul %367, %366, %cst_148 {dimension_numbers = #tpu.dot_dimension_numbers<[1], [0], [0], [1], [0, 0, 1, 1], [], []>} : vector<32x64xbf16>, vector<64x32xbf16>, vector<32x32xf32> -> vector<32x32xf32>
    %c1_149 = arith.constant 1 : index
    %c0_150 = arith.constant 0 : index
    %c0_151 = arith.constant 0 : index
    %369 = vector.load %arg17[%c1_149, %c0_150, %c0_151] : memref<2x1x32xf32, #tpu.memory_space<vmem>>, vector<1x1x32xf32>
    %370 = vector.shape_cast %369 : vector<1x1x32xf32> to vector<1x32xf32>
    %371 = vector.broadcast %370 : vector<1x32xf32> to vector<32x32xf32>
    %372 = arith.addf %368, %371 : vector<32x32xf32>
    %373 = arith.addf %354, %372 : vector<32x32xf32>
    %c1_152 = arith.constant 1 : index
    %c0_153 = arith.constant 0 : index
    %c0_154 = arith.constant 0 : index
    %374 = vector.load %arg18[%c1_152, %c0_153, %c0_154] : memref<2x1x32xf32, #tpu.memory_space<vmem>>, vector<1x1x32xf32>
    %375 = vector.shape_cast %374 : vector<1x1x32xf32> to vector<1x32xf32>
    %c1_155 = arith.constant 1 : index
    %c0_156 = arith.constant 0 : index
    %c0_157 = arith.constant 0 : index
    %376 = vector.load %arg19[%c1_155, %c0_156, %c0_157] : memref<2x1x32xf32, #tpu.memory_space<vmem>>, vector<1x1x32xf32>
    %377 = vector.shape_cast %376 : vector<1x1x32xf32> to vector<1x32xf32>
    %cst_158 = arith.constant dense<0.000000e+00> : vector<32xf32>
    %378 = vector.multi_reduction <add>, %373, %cst_158 [1] : vector<32x32xf32> to vector<32xf32>
    %379 = vector.shape_cast %378 : vector<32xf32> to vector<32x1xf32>
    %cst_159 = arith.constant 3.200000e+01 : f32
    %380 = vector.broadcast %cst_159 : f32 to vector<32x1xf32>
    %381 = arith.divf %379, %380 : vector<32x1xf32>
    %382 = vector.broadcast %381 : vector<32x1xf32> to vector<32x32xf32>
    %383 = arith.subf %373, %382 : vector<32x32xf32>
    %384 = arith.mulf %383, %383 : vector<32x32xf32>
    %cst_160 = arith.constant dense<0.000000e+00> : vector<32xf32>
    %385 = vector.multi_reduction <add>, %384, %cst_160 [1] : vector<32x32xf32> to vector<32xf32>
    %386 = vector.shape_cast %385 : vector<32xf32> to vector<32x1xf32>
    %cst_161 = arith.constant 3.200000e+01 : f32
    %387 = vector.broadcast %cst_161 : f32 to vector<32x1xf32>
    %388 = arith.divf %386, %387 : vector<32x1xf32>
    %cst_162 = arith.constant 9.99999974E-6 : f32
    %389 = vector.broadcast %cst_162 : f32 to vector<32x1xf32>
    %390 = arith.addf %388, %389 : vector<32x1xf32>
    %391 = math.rsqrt %390 : vector<32x1xf32>
    %392 = vector.broadcast %391 : vector<32x1xf32> to vector<32x32xf32>
    %393 = arith.mulf %383, %392 : vector<32x32xf32>
    %394 = vector.broadcast %375 : vector<1x32xf32> to vector<32x32xf32>
    %395 = arith.mulf %393, %394 : vector<32x32xf32>
    %396 = vector.broadcast %377 : vector<1x32xf32> to vector<32x32xf32>
    %397 = arith.addf %395, %396 : vector<32x32xf32>
    %c0_163 = arith.constant 0 : index
    %c0_164 = arith.constant 0 : index
    %398 = vector.load %arg20[%c0_163, %c0_164] : memref<1x32xf32, #tpu.memory_space<vmem>>, vector<1x32xf32>
    %c0_165 = arith.constant 0 : index
    %c0_166 = arith.constant 0 : index
    %399 = vector.load %arg21[%c0_165, %c0_166] : memref<1x32xf32, #tpu.memory_space<vmem>>, vector<1x32xf32>
    %cst_167 = arith.constant dense<0.000000e+00> : vector<32xf32>
    %400 = vector.multi_reduction <add>, %397, %cst_167 [1] : vector<32x32xf32> to vector<32xf32>
    %401 = vector.shape_cast %400 : vector<32xf32> to vector<32x1xf32>
    %cst_168 = arith.constant 3.200000e+01 : f32
    %402 = vector.broadcast %cst_168 : f32 to vector<32x1xf32>
    %403 = arith.divf %401, %402 : vector<32x1xf32>
    %404 = vector.broadcast %403 : vector<32x1xf32> to vector<32x32xf32>
    %405 = arith.subf %397, %404 : vector<32x32xf32>
    %406 = arith.mulf %405, %405 : vector<32x32xf32>
    %cst_169 = arith.constant dense<0.000000e+00> : vector<32xf32>
    %407 = vector.multi_reduction <add>, %406, %cst_169 [1] : vector<32x32xf32> to vector<32xf32>
    %408 = vector.shape_cast %407 : vector<32xf32> to vector<32x1xf32>
    %cst_170 = arith.constant 3.200000e+01 : f32
    %409 = vector.broadcast %cst_170 : f32 to vector<32x1xf32>
    %410 = arith.divf %408, %409 : vector<32x1xf32>
    %cst_171 = arith.constant 9.99999974E-6 : f32
    %411 = vector.broadcast %cst_171 : f32 to vector<32x1xf32>
    %412 = arith.addf %410, %411 : vector<32x1xf32>
    %413 = math.rsqrt %412 : vector<32x1xf32>
    %414 = vector.broadcast %413 : vector<32x1xf32> to vector<32x32xf32>
    %415 = arith.mulf %405, %414 : vector<32x32xf32>
    %416 = vector.broadcast %398 : vector<1x32xf32> to vector<32x32xf32>
    %417 = arith.mulf %415, %416 : vector<32x32xf32>
    %418 = vector.broadcast %399 : vector<1x32xf32> to vector<32x32xf32>
    %419 = arith.addf %417, %418 : vector<32x32xf32>
    %c0_172 = arith.constant 0 : index
    %c0_173 = arith.constant 0 : index
    %420 = vector.load %arg22[%c0_172, %c0_173] : memref<32x4xbf16, #tpu.memory_space<vmem>>, vector<32x4xbf16>
    %421 = arith.truncf %419 : vector<32x32xf32> to vector<32x32xbf16>
    %cst_174 = arith.constant dense<0.000000e+00> : vector<32x4xf32>
    %422 = tpu.matmul %421, %420, %cst_174 {dimension_numbers = #tpu.dot_dimension_numbers<[1], [0], [0], [1], [0, 0, 1, 1], [], []>} : vector<32x32xbf16>, vector<32x4xbf16>, vector<32x4xf32> -> vector<32x4xf32>
    %c0_175 = arith.constant 0 : index
    %c0_176 = arith.constant 0 : index
    %423 = vector.load %arg23[%c0_175, %c0_176] : memref<1x4xf32, #tpu.memory_space<vmem>>, vector<1x4xf32>
    %424 = vector.broadcast %423 : vector<1x4xf32> to vector<32x4xf32>
    %425 = arith.addf %422, %424 : vector<32x4xf32>
    %426 = arith.mulf %425, %11 : vector<32x4xf32>
    %427 = arith.addf %426, %2 : vector<32x4xf32>
    %c0_177 = arith.constant 0 : index
    %c0_178 = arith.constant 0 : index
    %428 = vector.load %arg24[%c0_177, %c0_178] : memref<32x4xf32, #tpu.memory_space<vmem>>, vector<32x4xf32>
    tpu.vector_store %arg24[%c0_177, %c0_178], %427 {strides = array<i32>} : memref<32x4xf32, #tpu.memory_space<vmem>>, vector<32x4xf32>,
    return
  }
}

</mosaic_0001>

<bundles_post_ra>
// kernel: _lambda_.1
= control target key start
LH: loop header
LB: loop body
LE: loop exit
PB: predicated region body
PF: predicated region fallthrough
CT: control target
= control target key end

     0   :  { %vm86_vm0 = vcmask 261120   ;;  %vm442_vm1 = vcmask 1043456   ;;  %vm429_vm2 = vcmask 31744   ;;  %vm948_vm3 = vcmask 64512   ;;  %s5749_s30 = smov 40   ;;  %s5714_s0 = inlined_call_operand.vmem [shape: f32[32,4], index: 0, kind: input, shape index: {}]   ;;  %s5715_s3 = inlined_call_operand.vmem [shape: f32[32,32], index: 3, kind: input, shape index: {}]   ;;  %s5716_s4 = inlined_call_operand.vmem [shape: f32[64,32], index: 4, kind: input, shape index: {}]   ;;  %s5717_s6 = inlined_call_operand.vmem [shape: f32[3,4,32], index: 6, kind: input, shape index: {}]   ;;  %s5718_s8 = inlined_call_operand.vmem [shape: bf16[2,32,96], index: 8, kind: input, shape index: {}]   ;;  %s5719_s7 = inlined_call_operand.vmem [shape: f32[4,32], index: 7, kind: input, shape index: {}]   ;;  %s5720_s1 = inlined_call_operand.vmem [shape: f32[32,4], index: 1, kind: input, shape index: {}]   ;;  %s5721_s2 = inlined_call_operand.vmem [shape: f32[32,32], index: 2, kind: input, shape index: {}]   ;;  %s5722_s9 = inlined_call_operand.vmem [shape: f32[2,1,96], index: 9, kind: input, shape index: {}]   ;;  %s5723_s5 = inlined_call_operand.vmem [shape: f32[32,32], index: 5, kind: input, shape index: {}]   ;;  %s5724_s10 = inlined_call_operand.vmem [shape: f32[2,32,32], index: 10, kind: input, shape index: {}]   ;;  %s5725_s11 = inlined_call_operand.vmem [shape: f32[2,1,32], index: 11, kind: input, shape index: {}]   ;;  %s5726_s14 = inlined_call_operand.vmem [shape: bf16[2,32,64], index: 14, kind: input, shape index: {}]   ;;  %s5727_s16 = inlined_call_operand.vmem [shape: bf16[2,64,32], index: 16, kind: input, shape index: {}]   ;;  %s5728_s12 = inlined_call_operand.vmem [shape: f32[2,1,32], index: 12, kind: input, shape index: {}]   ;;  %s5729_s13 = inlined_call_operand.vmem [shape: f32[2,1,32], index: 13, kind: input, shape index: {}]   ;;  %s5730_s15 = inlined_call_operand.vmem [shape: f32[2,1,64], index: 15, kind: input, shape index: {}]   ;;  %s5731_s17 = inlined_call_operand.vmem [shape: f32[2,1,32], index: 17, kind: input, shape index: {}]   ;;  %s5732_s18 = inlined_call_operand.vmem [shape: f32[2,1,32], index: 18, kind: input, shape index: {}]   ;;  %s5733_s19 = inlined_call_operand.vmem [shape: f32[2,1,32], index: 19, kind: input, shape index: {}]   ;;  %s5734_s22 = inlined_call_operand.vmem [shape: bf16[32,4], index: 22, kind: input, shape index: {}]   ;;  %s5735_s20 = inlined_call_operand.vmem [shape: f32[1,32], index: 20, kind: input, shape index: {}]   ;;  %s5736_s21 = inlined_call_operand.vmem [shape: f32[1,32], index: 21, kind: input, shape index: {}]   ;;  %s5737_s23 = inlined_call_operand.vmem [shape: f32[1,4], index: 23, kind: input, shape index: {}]   ;;  %s5738_s24 = inlined_call_operand.vmem [shape: f32[32,4], index: 24, kind: output, shape index: {}]  }
   0x1   :  { %5757 = sst [smem:[#allocation2_spill]] %s5714_s0  ;;  %s5747_s0 = smov 104   ;;  %vm2112_vm4 = vcmask 523264  }
   0x2   :  { %5758 = sst [smem:[#allocation3_spill]] %s5715_s3  ;;  %s5766_s27 = sld [smem:[#allocation2_spill]] }
   0x3   :  { %5759 = sst [smem:[#allocation4_spill]] %s5716_s4  ;;  %s5767_s25 = sld [smem:[#allocation3_spill]] }
   0x4   :  { %5760 = sst [smem:[#allocation5_spill]] %s5717_s6  ;;  %s5768_s4 = sld [smem:[#allocation4_spill]] }
   0x5   :  { %5761 = sst [smem:[#allocation6_spill]] %s5718_s8  ;;  %s5769_s6 = sld [smem:[#allocation5_spill]] }
   0x6   :  { %5762 = sst [smem:[#allocation7_spill]] %s5719_s7  ;;  %s5770_s26 = sld [smem:[#allocation6_spill]] }
   0x7   :  { %5763 = sst [smem:[#allocation8_spill]] %s5720_s1  ;;  %s5771_s28 = sld [smem:[#allocation7_spill]] }
   0x8   :  { %5764 = sst [smem:[#allocation9_spill]] %s5721_s2  ;;  %v78_v0 = vld [vmem:[%s5766_s27] sm:$0xff]  ;;  %v79_v1 = vld [vmem:[%s5766_s27 + $0x8] sm:$0xff]  ;;  %v80_v2 = vld [vmem:[%s5766_s27 + $0x10] sm:$0xff]  ;;  %s5772_s29 = sld [smem:[#allocation8_spill]] }
   0x9   :  { %5765 = sst [smem:[#allocation10_spill]] %s5722_s9  ;;  %v4466_v3 = vpack.c.bf16 %v79_v1, %v78_v0  ;;  %v81_v4 = vld [vmem:[%s5766_s27 + $0x18] sm:$0xff]  ;;  %v82_v5 = vld [vmem:[%s5767_s25] sm:$0xff]  ;;  %v83_v7 = vld [vmem:[%s5767_s25 + $0x8] sm:$0xff]  ;;  %s4763_s3 = smov 88  }
   0xa   :  { %v4470_v6 = vpack.c.bf16 %v81_v4, %v80_v2  ;;  %4154 = vmatprep.mubr.msk.f32.mxu0 %vm86_vm0, %v82_v5  ;;  %4168 = vmatprep.mubr.msk.f32.mxu1 %vm86_vm0, %v82_v5  ;;  %v84_v8 = vld [vmem:[%s5767_s25 + $0x10] sm:$0xff]  ;;  %v85_v9 = vld [vmem:[%s5767_s25 + $0x18] sm:$0xff]  ;;  %v289_v24 = vld [vmem:[%s5768_s4] sm:$0xff]  ;;  %s5774_s8 = sld [smem:[#allocation10_spill]]  ;;  %s4764_s7 = smov 96  }
   0xb   :  { %4467 = vmatprep.subr.bf16.mxu0 %v4466_v3  ;;  %v295_v25 = vld [vmem:[%s5768_s4 + $0x30] sm:$0xff]  ;;  %v427_v48 = vld [vmem:[%s5769_s6 + $0x4] sm:$0xf]  ;;  %v290_v49 = vld [vmem:[%s5768_s4 + $0x8] sm:$0xff]  ;;  %s4766_s27 = smov 80   ;;  %s5755_s1 = smov 56  }
   0xc   :  { %4469 = vmatpush3.bf16.msra.mxu0 %v4466_v3  ;;  %v296_v50 = vld [vmem:[%s5768_s4 + $0x38] sm:$0xff]  ;;  %v291_v51 = vld [vmem:[%s5768_s4 + $0x10] sm:$0xff]  ;;  %v426_v52 = vld [vmem:[%s5769_s6] sm:$0xf]  ;;  %s5751_s25 = smov 48  }
   0xd   :  { %4471 = vmatprep.subr.bf16.mxu0 %v4470_v6  ;;  %v292_v53 = vld [vmem:[%s5768_s4 + $0x18] sm:$0xff]  ;;  %v293_v54 = vld [vmem:[%s5768_s4 + $0x20] sm:$0xff]  ;;  %v294_v55 = vld [vmem:[%s5768_s4 + $0x28] sm:$0xff]  ;;  %s4765_s4 = smov 120  }
   0xe   :  { %v428_v56 = vld [vmem:[%s5769_s6 + $0x8] sm:$0xf]  ;;  %v4565_v57 = vld [vmem:[%s5770_s26] sm:$0xff]   ;;  %v737_v5 = vld [vmem:[%s5772_s29 + $0x10] sm:$0xff]  ;;  %s4768_s6 = smov 64  }
   0xf   :  { %v739_v62 = vld [vmem:[%s5771_s28] sm:$0xf]  ;;  %s5773_s28 = sld [smem:[#allocation9_spill]] }
  0x10   :  { %4473 = vmatpush3.bf16.msra.mxu0 %v4470_v6  ;;  %v735_v3 = vld [vmem:[%s5772_s29] sm:$0xff]  ;;  %v738_v6 = vld [vmem:[%s5772_s29 + $0x18] sm:$0xff] }
  0x13   :  { %4155 = vmatmul.mubr.msk.f32.vlgmr.msra.gmra.mrb[0].mxu0 %vm86_vm0, %v83_v7 }
  0x14   :  { %4157 = vmatprep.mubr.msk.f32.mxu0 %vm86_vm0, %v84_v8 }
  0x17   :  { %4158 = vmatmul.mubr.msk.f32.gmra.mrb[2].mxu0 %vm86_vm0, %v85_v9 }
  0x18   :  { %4182 = vmatprep.mubr.msk.f32.mxu0 %vm86_vm0, %v289_v24 }
  0xe6   :  { %v4928_v10 = vpop.f32.mrb[0].mxu0 }
  0xe7   :  { %v185_v11 = vsub.f32 %v79_v1, %v4928_v10  ;;  %v4931_v12 = vpop.f32.mrb[1].mxu0 }
  0xe8   :  { %v184_v13 = vsub.f32 %v78_v0, %v4931_v12 }
  0xe9   :  { %v189_v14 = vmul.f32 %v185_v11, %v185_v11 }
  0xea   :  { %v4934_v15 = vpop.f32.mrb[2].mxu0  ;;  %v188_v16 = vmul.f32 %v184_v13, %v184_v13 }
  0xeb   :  { %v187_v17 = vsub.f32 %v81_v4, %v4934_v15  ;;  %v4937_v18 = vpop.f32.mrb[3].mxu0  ;;  %v736_v4 = vld [vmem:[%s5772_s29 + $0x8] sm:$0xff]  ;;  %s5753_s29 = smov 72  }
  0xec   :  { %v186_v19 = vsub.f32 %v80_v2, %v4937_v18  ;;  %v4474_v20 = vpack.c.bf16 %v189_v14, %v188_v16 }
  0xed   :  { %v191_v21 = vmul.f32 %v187_v17, %v187_v17 }
  0xee   :  { %v190_v22 = vmul.f32 %v186_v19, %v186_v19  ;;  %4475 = vmatprep.subr.bf16.mxu1 %v4474_v20 }
  0xef   :  { %4477 = vmatpush3.bf16.msra.mxu1 %v4474_v20 }
  0xf0   :  { %v4478_v23 = vpack.c.bf16 %v191_v21, %v190_v22 }
  0xf2   :  { %4479 = vmatprep.subr.bf16.mxu1 %v4478_v23 }
  0xf3   :  { %4481 = vmatpush3.bf16.msra.mxu1 %v4478_v23 }
  0xf6   :  { %4169 = vmatmul.mubr.msk.f32.vlgmr.msra.gmra.mrb[0].mxu1 %vm86_vm0, %v83_v7  ;;  %v4566_v7 = vld [vmem:[%s5770_s26 + $0x8] sm:$0xff]  }
  0xf7   :  { %4171 = vmatprep.mubr.msk.f32.mxu1 %vm86_vm0, %v84_v8  ;;  %v845_v8 = vld [vmem:[%s5773_s28 + $0x8] sm:$0xff] }
  0xfa   :  { %4172 = vmatmul.mubr.msk.f32.gmra.mrb[2].mxu1 %vm86_vm0, %v85_v9  ;;  %v844_v9 = vld [vmem:[%s5773_s28] sm:$0xff] }
  0xfb   :  { %4191 = vmatprep.mubr.msk.f32.mxu1 %vm86_vm0, %v295_v25 }
 0x1c9   :  { %v4170_v26 = vpop.f32.mrb[0].mxu1 }
 0x1ca   :  { %v264_v27 = vadd.f32 1e-05, %v4170_v26  ;;  %v258_v28 = vpop.f32.mrb[1].mxu1 }
 0x1cb   :  { %v259_v29 = vadd.f32 1e-05, %v258_v28 }
 0x1cc   :  { %4583 = vrsqrt.f32 %v264_v27 }
 0x1cd   :  { %4585 = vrsqrt.f32 %v259_v29  ;;  %v4173_v30 = vpop.f32.mrb[2].mxu1 }
 0x1ce   :  { %v274_v31 = vadd.f32 1e-05, %v4173_v30  ;;  %v268_v32 = vpop.f32.mrb[3].mxu1 }
 0x1cf   :  { %v269_v33 = vadd.f32 1e-05, %v268_v32 }
 0x1d0   :  { %4587 = vrsqrt.f32 %v274_v31 }
 0x1d1   :  { %4589 = vrsqrt.f32 %v269_v33 }
 0x1d6   :  { %v4584_v34 = vpop.eup %4583 }
 0x1d7   :  { %v4586_v35 = vpop.eup %4585  ;;  %v4951_v36 = vmul.f32 %v4584_v34, %v264_v27  ;;  %v286_v37 = vmul.f32 %v4584_v34, %v185_v11  ;;  %v3851_v27 = vld [vmem:[%s5774_s8] ss:$0 sm:$0xff] }
 0x1d8   :  { %v4953_v38 = vmul.f32 %v4586_v35, %v259_v29  ;;  %v285_v39 = vmul.f32 %v4586_v35, %v184_v13 }
 0x1da   :  { %v4588_v40 = vpop.eup %4587  ;;  %v4482_v41 = vpack.c.bf16 %v286_v37, %v285_v39 }
 0x1db   :  { %v4590_v42 = vpop.eup %4589  ;;  %v4955_v43 = vmul.f32 %v4588_v40, %v274_v31  ;;  %v288_v44 = vmul.f32 %v4588_v40, %v187_v17  ;;  %v847_v17 = vld [vmem:[%s5773_s28 + $0x18] sm:$0xff] }
 0x1dc   :  { %v4957_v45 = vmul.f32 %v4590_v42, %v269_v33  ;;  %4483 = vmatprep.subr.bf16.mxu0 %v4482_v41  ;;  %4490 = vmatprep.subr.bf16.mxu1 %v4482_v41  ;;  %v287_v46 = vmul.f32 %v4590_v42, %v186_v19  ;;  %v846_v19 = vld [vmem:[%s5773_s28 + $0x10] sm:$0xff]  ;;  %s4767_s28 = smov 112  }
 0x1dd   :  { %4485 = vmatpush3.bf16.msra.mxu0 %v4482_v41  ;;  %4492 = vmatpush3.bf16.msra.mxu1 %v4482_v41 }
 0x1de   :  { %v4486_v47 = vpack.c.bf16 %v288_v44, %v287_v46 }
 0x1e0   :  { %4487 = vmatprep.subr.bf16.mxu0 %v4486_v47  ;;  %4491 = vmatprep.subr.bf16.mxu1 %v4486_v47 }
 0x1e1   :  { %4489 = vmatpush3.bf16.msra.mxu0 %v4486_v47  ;;  %4493 = vmatpush3.bf16.msra.mxu1 %v4486_v47 }
 0x1e2   :  { %4194 = vmatprep.subr.msk.mxu1 %vm442_vm1, %v427_v48  ;;  %4226 = vmatprep.subr.bf16.mxu0 %v4565_v57 }
 0x1e4   :  { %4183 = vmatmul.mubr.msk.f32.vlgmr.msra.gmra.mrb[4].mxu0 %vm86_vm0, %v290_v49  ;;  %4192 = vmatmul.mubr.msk.f32.vlgmr.msra.gmra.mrb[4].mxu1 %vm86_vm0, %v296_v50 }
 0x1e5   :  { %4196 = vmatprep.mubr.msk.f32.mxu1 %vm429_vm2, %v285_v39  ;;  %4185 = vmatprep.mubr.msk.f32.mxu0 %vm86_vm0, %v291_v51 }
 0x1e6   :  { %4195 = vmatpush3.msk.msra.mxu1 %vm442_vm1, %v427_v48  ;;  %4227 = vmatpush3.bf16.msra.mxu0 %v4565_v57  ;;  %v5113_v57 = vld [vmem:[%s5723_s5] sm:$0xff] }
 0x1e7   :  { %4202 = vmatprep.subr.msk.mxu1 %vm442_vm1, %v426_v52  ;;  %4228 = vmatprep.subr.bf16.mxu0 %v4566_v7 }
 0x1e8   :  { %4186 = vmatmul.mubr.msk.f32.gmra.mrb[6].mxu0 %vm86_vm0, %v292_v53  ;;  %4197 = vmatmul.mubr.msk.f32.vlgmr.msra.gmra.mrb[6].mxu1 %vm429_vm2, %v286_v37 }
 0x1e9   :  { %4199 = vmatprep.mubr.msk.f32.mxu1 %vm429_vm2, %v287_v46  ;;  %4188 = vmatprep.mubr.msk.f32.mxu0 %vm86_vm0, %v293_v54 }
 0x1ea   :  { %4203 = vmatpush3.msk.msra.mxu1 %vm442_vm1, %v426_v52  ;;  %4229 = vmatpush3.bf16.msra.mxu0 %v4566_v7 }
 0x1eb   :  { %4210 = vmatprep.subr.msk.mxu1 %vm442_vm1, %v428_v56 }
 0x1ec   :  { %4189 = vmatmul.mubr.msk.f32.gmra.mrb[8].mxu0 %vm86_vm0, %v294_v55  ;;  %4200 = vmatmul.mubr.msk.f32.gmra.mrb[8].mxu1 %vm429_vm2, %v288_v44 }
 0x2b7   :  { %v4184_v58 = vpop.f32.mrb[4].mxu0  ;;  %v4193_v59 = vpop.f32.mrb[4].mxu1 }
 0x2b8   :  { %v387_v60 = vpop.f32.mrb[5].mxu0  ;;  %v417_v61 = vpop.f32.mrb[5].mxu1 }
 0x2b9   :  { %4204 = vmatprep.mubr.msk.f32.mxu1 %vm429_vm2, %v387_v60 }
 0x2ba   :  { %4205 = vmatmul.mubr.msk.f32.vlgmr.msra.gmra.mrb[6].mxu1 %vm429_vm2, %v4184_v58 }
 0x2bb   :  { %v4187_v63 = vpop.f32.mrb[6].mxu0  ;;  %4211 = vmatpush3.msk.msra.mxu1 %vm442_vm1, %v428_v56 }
 0x2bc   :  { %v397_v0 = vpop.f32.mrb[7].mxu0  ;;  %4218 = vmatprep.subr.msk.mxu1 %vm442_vm1, %v739_v62 }
 0x2bd   :  { %4207 = vmatprep.mubr.msk.f32.mxu1 %vm429_vm2, %v397_v0 }
 0x2be   :  { %4208 = vmatmul.mubr.msk.f32.gmra.mrb[8].mxu1 %vm429_vm2, %v4187_v63 }
 0x2bf   :  { %v4190_v1 = vpop.f32.mrb[8].mxu0 }
 0x2c0   :  { %v407_v2 = vpop.f32.mrb[9].mxu0 }
 0x2c1   :  { %4212 = vmatprep.mubr.msk.f32.mxu1 %vm429_vm2, %v407_v2 }
 0x2c2   :  { %4213 = vmatmul.mubr.msk.f32.vlgmr.msra.gmra.mrb[6].mxu1 %vm429_vm2, %v4190_v1 }
 0x2c3   :  { %4219 = vmatpush3.msk.msra.mxu1 %vm442_vm1, %v739_v62  ;;  %4215 = vmatprep.mubr.msk.f32.mxu1 %vm429_vm2, %v417_v61  ;;  %v5123_v61 = vld [vmem:[%s5723_s5 + $0x8] sm:$0xff] }
 0x2c6   :  { %4216 = vmatmul.mubr.msk.f32.gmra.mrb[8].mxu1 %vm429_vm2, %v4193_v59  ;;  %v5118_v59 = vld [vmem:[%s5723_s5 + $0x10] sm:$0xff] }
 0x2c7   :  { %4220 = vmatprep.mubr.msk.f32.mxu1 %vm429_vm2, %v735_v3 }
 0x2ca   :  { %4221 = vmatmul.mubr.msk.f32.vlgmr.msra.gmra.mrb[6].mxu1 %vm429_vm2, %v736_v4  ;;  %v5132_v4 = vld [vmem:[%s5723_s5 + $0x18] sm:$0xff] }
 0x2cb   :  { %4223 = vmatprep.mubr.msk.f32.mxu1 %vm429_vm2, %v737_v5 }
 0x2ce   :  { %4224 = vmatmul.mubr.msk.f32.gmra.mrb[8].mxu1 %vm429_vm2, %v738_v6 }
 0x39d   :  { %v4222_v11 = vpop.f32.mrb[6].mxu1 }
 0x39e   :  { %v5043_v13 = vadd.f32 %v4222_v11, %v845_v8  ;;  %v821_v14 = vpop.f32.mrb[7].mxu1 }
 0x39f   :  { %v5045_v16 = vadd.f32 %v844_v9, %v821_v14 }
 0x3a1   :  { %v860_v20 = vpack.c.bf16 %v5043_v13, %v5045_v16  ;;  %v4225_v21 = vpop.f32.mrb[8].mxu1 }
 0x3a2   :  { %v5055_v22 = vadd.f32 %v4225_v21, %v847_v17  ;;  %v831_v23 = vpop.f32.mrb[9].mxu1 }
 0x3a3   :  { %v5057_v24 = vadd.f32 %v846_v19, %v831_v23  ;;  %4230 = vmatprep.mubr.msk.bf16.mxu0 %vm86_vm0, %v860_v20 }
 0x3a5   :  { %v861_v25 = vpack.c.bf16 %v5055_v22, %v5057_v24 }
 0x3a7   :  { %4231 = vmatmul.mubr.msk.bf16.vlgmr.msra.gmra.mrb[12].mxu0 %vm86_vm0, %v861_v25 }
 0x47a   :  { %v4232_v26 = vpop.f32.mrb[12].mxu0 }
 0x47b   :  { %v921_v28 = vpop.f32.mrb[13].mxu0  ;;  %v930_v30 = vadd.f32 %v4232_v26, %v3851_v27 }
 0x47c   :  { %v4233_v29 = vpop.f32.mrb[14].mxu0  ;;  %v922_v33 = vadd.f32 %v3851_v27, %v921_v28 }
 0x47d   :  { %v933_v31 = vadd.f32 %v4233_v29, %v3851_v27  ;;  %v924_v32 = vpop.f32.mrb[15].mxu0 }
 0x47e   :  { %v925_v34 = vadd.f32 %v3851_v27, %v924_v32 }
 0x47f   :  { %v5066_v35 = vpack.c.bf16 %v933_v31, %v930_v30 }
 0x480   :  { %v5068_v37 = vpack.c.bf16 %v925_v34, %v922_v33 }
 0x482   :  { %1124 = vrot.lane.b32.xlu1 %v5068_v37, %s4763_s3  ;;  %944 = vrot.lane.b32.xlu0 %v5068_v37, %s4764_s7 }
 0x483   :  { %4238 = vmatprep.mubr.msk.bf16.mxu0 %vm948_vm3, %v5068_v37 }
 0x486   :  { %1126 = vrot.lane.b32.xlu1 %v5066_v35, %s4763_s3  ;;  %946 = vrot.lane.b32.xlu0 %v5066_v35, %s4764_s7 }
 0x48a   :  { %1122 = vrot.lane.b32.xlu1 %v5066_v35, %s4765_s4  ;;  %1120 = vrot.lane.b32.xlu0 %v5068_v37, %s4765_s4 }
 0x48e   :  { %1421 = vrot.lane.b32.xlu1 %v5066_v35, %s4766_s27  ;;  %1419 = vrot.lane.b32.xlu0 %v5068_v37, %s4766_s27 }
 0x492   :  { %1417 = vrot.lane.b32.xlu1 %v5066_v35, %s4767_s28  ;;  %1415 = vrot.lane.b32.xlu0 %v5068_v37, %s4767_s28 }
 0x4f4   :  { %v945_v39 = vpop.permute.xlu0 %944  ;;  %v1125_v44 = vpop.permute.xlu1 %1124 }
 0x4f5   :  { %4530 = vmatprep.subr.msk.bf16.mxu0 %vm948_vm3, %v945_v39  ;;  %v956_v40 = vsel %vm948_vm3, %v945_v39, 0  ;;  %v1135_v47 = vsel %vm948_vm3, %v1125_v44, 0 }
 0x4f6   :  { %4235 = vmatpush3.bf16.xpose.msra.mxu0 %v956_v40 }
 0x4f8   :  { %v947_v41 = vpop.permute.xlu0 %946  ;;  %v1127_v48 = vpop.permute.xlu1 %1126 }
 0x4f9   :  { %4531 = vmatprep.subr.msk.bf16.mxu0 %vm948_vm3, %v947_v41  ;;  %v959_v42 = vsel %vm948_vm3, %v947_v41, 0  ;;  %v1138_v49 = vsel %vm948_vm3, %v1127_v48, 0 }
 0x4fc   :  { %v1121_v46 = vpop.permute.xlu0 %1120  ;;  %v1123_v51 = vpop.permute.xlu1 %1122 }
 0x4fe   :  { %4237 = vmatpush3.bf16.xpose.msra.mxu0 %v959_v42 }
 0x4ff   :  { %4532 = vmatprep.subr.msk.bf16.mxu0 %vm948_vm3, %v1125_v44 }
 0x500   :  { %v1420_v50 = vpop.permute.xlu0 %1419  ;;  %v1422_v54 = vpop.permute.xlu1 %1421 }
 0x501   :  { %v1430_v53 = vsel %vm948_vm3, %v1420_v50, 0  ;;  %v1433_v55 = vsel %vm948_vm3, %v1422_v54, 0 }
 0x504   :  { %v1416_v52 = vpop.permute.xlu0 %1415  ;;  %v1418_v56 = vpop.permute.xlu1 %1417 }
 0x505   :  { %4239 = vmatmul.mubr.msk.bf16.vlgmr.msra.gmra.mrb[16].mxu0 %vm948_vm3, %v5066_v35 }
 0x506   :  { %4251 = vmatpush3.bf16.xpose.msra.mxu0 %v1135_v47  ;;  %4254 = vmatprep.mubr.msk.bf16.mxu0 %vm948_vm3, %v1121_v46 }
 0x507   :  { %4533 = vmatprep.subr.msk.bf16.mxu0 %vm948_vm3, %v1127_v48 }
 0x50e   :  { %4253 = vmatpush3.bf16.xpose.msra.mxu0 %v1138_v49 }
 0x50f   :  { %4536 = vmatprep.subr.msk.bf16.mxu0 %vm948_vm3, %v1420_v50 }
 0x515   :  { %4255 = vmatmul.mubr.msk.bf16.vlgmr.msra.gmra.mrb[20].mxu0 %vm948_vm3, %v1123_v51 }
 0x516   :  { %4279 = vmatpush3.bf16.xpose.msra.mxu0 %v1430_v53  ;;  %4282 = vmatprep.mubr.msk.bf16.mxu0 %vm948_vm3, %v1416_v52 }
 0x517   :  { %4537 = vmatprep.subr.msk.bf16.mxu0 %vm948_vm3, %v1422_v54 }
 0x51e   :  { %4281 = vmatpush3.bf16.xpose.msra.mxu0 %v1433_v55 }
 0x525   :  { %4283 = vmatmul.mubr.msk.bf16.vlgmr.msra.gmra.mrb[24].mxu0 %vm948_vm3, %v1418_v56 }
 0x5d8   :  { %v4240_v58 = vpop.f32.mrb[16].mxu0 }
 0x5d9   :  { %v995_v60 = vpop.f32.mrb[17].mxu0  ;;  %v1004_v1 = vadd.f32 %v4240_v58, %v5118_v59 }
 0x5da   :  { %v996_v62 = vadd.f32 %v995_v60, %v5113_v57  ;;  %v4241_v63 = vpop.f32.mrb[18].mxu0 }
 0x5db   :  { %v998_v0 = vpop.f32.mrb[19].mxu0  ;;  %v1007_v6 = vadd.f32 %v4241_v63, %v5132_v4  ;;  %v1016_v7 = vsel %vm86_vm0, %v1004_v1, -inf }
 0x5dc   :  { %v999_v2 = vadd.f32 %v998_v0, %v5123_v61  ;;  %v1010_v3 = vsel %vm86_vm0, %v996_v62, -inf }
 0x5dd   :  { %1011 = vmax.xlane.f32.xlu0 %v1010_v3  ;;  %v1019_v8 = vsel %vm86_vm0, %v1007_v6, -inf }
 0x5de   :  { %v1013_v5 = vsel %vm86_vm0, %v999_v2, -inf }
 0x5df   :  { %1014 = vmax.xlane.f32.xlu1 %v1013_v5 }
 0x5e1   :  { %1017 = vmax.xlane.f32.xlu0 %v1016_v7 }
 0x5e5   :  { %1020 = vmax.xlane.f32.xlu0 %v1019_v8 }
 0x5e8   :  { %v4256_v9 = vpop.f32.mrb[20].mxu0 }
 0x5e9   :  { %v1174_v11 = vpop.f32.mrb[21].mxu0  ;;  %v1183_v20 = vadd.f32 %v4256_v9, %v5118_v59 }
 0x5ea   :  { %v1175_v14 = vadd.f32 %v1174_v11, %v5113_v57  ;;  %v4257_v17 = vpop.f32.mrb[22].mxu0 }
 0x5eb   :  { %v1177_v19 = vpop.f32.mrb[23].mxu0  ;;  %v1186_v25 = vadd.f32 %v4257_v17, %v5132_v4  ;;  %v1195_v27 = vsel %vm86_vm0, %v1183_v20, -inf }
 0x5ec   :  { %v1178_v21 = vadd.f32 %v1177_v19, %v5123_v61  ;;  %v1189_v23 = vsel %vm86_vm0, %v1175_v14, -inf }
 0x5ed   :  { %1190 = vmax.xlane.f32.xlu1 %v1189_v23  ;;  %v1198_v28 = vsel %vm86_vm0, %v1186_v25, -inf }
 0x5ee   :  { %v1192_v26 = vsel %vm86_vm0, %v1178_v21, -inf }
 0x5ef   :  { %1193 = vmax.xlane.f32.xlu0 %v1192_v26 }
 0x5f1   :  { %1196 = vmax.xlane.f32.xlu1 %v1195_v27 }
 0x5f3   :  { %1199 = vmax.xlane.f32.xlu0 %v1198_v28 }
 0x5f8   :  { %v5146_v29 = vpop.f32.mrb[24].mxu0 }
 0x5f9   :  { %v5148_v30 = vpop.f32.mrb[25].mxu0 }
 0x5fa   :  { %v5150_v31 = vpop.f32.mrb[26].mxu0  ;;  %v5201_v28 = vadd.f32 %v5148_v30, %v5113_v57 }
 0x5fb   :  { %v5152_v32 = vpop.f32.mrb[27].mxu0  ;;  %v5217_v30 = vadd.f32 %v5150_v31, %v5132_v4 }
 0x602   :  { %1056 = vrot.lane.b32.xlu1 %v5068_v37, %s4768_s6 }
 0x66a   :  { %v1012_v33 = vpop.xlane.xlu0 %1011 }
 0x66b   :  { %v1022_v34 = vsub.f32 %v996_v62, %v1012_v33  ;;  %v5205_v33 = vadd.f32 %v5152_v32, %v5123_v61 }
 0x66c   :  { %v1015_v40 = vpop.xlane.xlu1 %1014 }
 0x66d   :  { %v1026_v42 = vmul.f32 1.442695, %v1022_v34  ;;  %v1023_v46 = vsub.f32 %v999_v2, %v1015_v40  ;;  %v5209_v34 = vadd.f32 %v5146_v29, %v5118_v59  ;;  %v1487_v40 = vsel %vm86_vm0, %v5205_v33, -inf }
 0x66e   :  { %v1018_v39 = vpop.xlane.xlu0 %1017  ;;  %v1493_v29 = vsel %vm86_vm0, %v5217_v30, -inf }
 0x66f   :  { %v1024_v41 = vsub.f32 %v1004_v1, %v1018_v39  ;;  %v1028_v50 = vmul.f32 1.442695, %v1023_v46  ;;  %v1484_v39 = vsel %vm86_vm0, %v5201_v28, -inf  ;;  %v1490_v32 = vsel %vm86_vm0, %v5209_v34, -inf }
 0x671   :  { %v1030_v44 = vmul.f32 1.442695, %v1024_v41 }
 0x672   :  { %v1021_v47 = vpop.xlane.xlu0 %1020 }
 0x673   :  { %4591 = vpow2.f32 %v1030_v44  ;;  %v1025_v48 = vsub.f32 %v1007_v6, %v1021_v47 }
 0x674   :  { %4593 = vpow2.f32 %v1026_v42 }
 0x675   :  { %v1032_v49 = vmul.f32 1.442695, %v1025_v48 }
 0x677   :  { %4595 = vpow2.f32 %v1032_v49 }
 0x678   :  { %4597 = vpow2.f32 %v1028_v50 }
 0x67a   :  { %v1191_v51 = vpop.xlane.xlu1 %1190 }
 0x67b   :  { %v1201_v52 = vsub.f32 %v1175_v14, %v1191_v51 }
 0x67c   :  { %v1194_v53 = vpop.xlane.xlu0 %1193 }
 0x67d   :  { %v5156_v54 = vpop.eup %4591  ;;  %v1202_v60 = vsub.f32 %v1178_v21, %v1194_v53  ;;  %v1205_v63 = vmul.f32 1.442695, %v1201_v52 }
 0x67e   :  { %v1197_v55 = vpop.xlane.xlu1 %1196  ;;  %v1040_v56 = vsel %vm86_vm0, %v5156_v54, 0.0  ;;  %v5160_v58 = vpop.eup %4593 }
 0x67f   :  { %v1203_v62 = vsub.f32 %v1183_v20, %v1197_v55  ;;  %1041 = vadd.xlane.f32.xlu1 %v1040_v56  ;;  %v1034_v6 = vsel %vm86_vm0, %v5160_v58, 0.0  ;;  %v1207_v8 = vmul.f32 1.442695, %v1202_v60 }
 0x680   :  { %v1200_v0 = vpop.xlane.xlu0 %1199 }
 0x681   :  { %v5162_v1 = vpop.eup %4595  ;;  %v1209_v2 = vmul.f32 1.442695, %v1203_v62  ;;  %v1204_v3 = vsub.f32 %v1186_v25, %v1200_v0 }
 0x682   :  { %v1057_v5 = vpop.permute.xlu1 %1056  ;;  %v1043_v7 = vsel %vm86_vm0, %v5162_v1, 0.0  ;;  %v4598_v11 = vpop.eup %4597 }
 0x683   :  { %4599 = vpow2.f32 %v1209_v2  ;;  %v1211_v9 = vmul.f32 1.442695, %v1204_v3  ;;  %4242 = vmatprep.subr.bf16.mxu1 %v1057_v5  ;;  %1035 = vadd.xlane.f32.xlu1 %v1034_v6  ;;  %v1037_v14 = vsel %vm86_vm0, %v4598_v11, 0.0 }
 0x684   :  { %4601 = vpow2.f32 %v1205_v63  ;;  %1044 = vadd.xlane.f32.xlu0 %v1043_v7  ;;  %4243 = vmatpush3.bf16.msra.mxu1 %v1057_v5 }
 0x685   :  { %4603 = vpow2.f32 %v1211_v9 }
 0x686   :  { %4605 = vpow2.f32 %v1207_v8 }
 0x688   :  { %1038 = vadd.xlane.f32.xlu0 %v1037_v14 }
 0x68d   :  { %v5169_v17 = vpop.eup %4599 }
 0x68e   :  { %v5171_v19 = vpop.eup %4601  ;;  %v1219_v20 = vsel %vm86_vm0, %v5169_v17, 0.0 }
 0x68f   :  { %v5175_v21 = vpop.eup %4603  ;;  %1220 = vadd.xlane.f32.xlu1 %v1219_v20  ;;  %v1213_v26 = vsel %vm86_vm0, %v5171_v19, 0.0 }
 0x690   :  { %v1222_v23 = vsel %vm86_vm0, %v5175_v21, 0.0  ;;  %v5179_v25 = vpop.eup %4605 }
 0x691   :  { %1223 = vadd.xlane.f32.xlu0 %v1222_v23  ;;  %v1216_v27 = vsel %vm86_vm0, %v5179_v25, 0.0 }
 0x693   :  { %1214 = vadd.xlane.f32.xlu1 %v1213_v26 }
 0x695   :  { %1217 = vadd.xlane.f32.xlu0 %v1216_v27 }
 0x6a4   :  { %1235 = vrot.lane.b32.xlu1 %v5068_v37, %s5755_s1 }
 0x6a8   :  { %1237 = vrot.lane.b32.xlu1 %v5066_v35, %s5755_s1 }
 0x6ab   :  { %1058 = vrot.lane.b32.xlu0 %v5066_v35, %s4768_s6 }
 0x6ac   :  { %1662 = vrot.lane.b32.xlu1 %v5066_v35, %s5753_s29 }
 0x6af   :  { %1660 = vrot.lane.b32.xlu0 %v5068_v37, %s5753_s29 }
 0x6b0   :  { %1658 = vrot.lane.b32.xlu1 %v5066_v35, %s5747_s0 }
 0x6b3   :  { %1656 = vrot.lane.b32.xlu0 %v5068_v37, %s5747_s0 }
 0x6d2   :  { %1485 = vmax.xlane.f32.xlu0 %v1484_v39 }
 0x6d4   :  { %1488 = vmax.xlane.f32.xlu1 %v1487_v40 }
 0x6d6   :  { %1491 = vmax.xlane.f32.xlu0 %v1490_v32 }
 0x6da   :  { %1494 = vmax.xlane.f32.xlu0 %v1493_v29 }
 0x70c   :  { %v1042_v41 = vpop.xlane.xlu1 %1041 }
 0x710   :  { %v1036_v42 = vpop.xlane.xlu1 %1035 }
 0x711   :  { %v1045_v44 = vpop.xlane.xlu0 %1044  ;;  %4607 = vrcp.f32 %v1036_v42 }
 0x715   :  { %v1039_v46 = vpop.xlane.xlu0 %1038 }
 0x716   :  { %4609 = vrcp.f32 %v1039_v46 }
 0x717   :  { %4611 = vrcp.f32 %v1045_v44 }
 0x718   :  { %4613 = vrcp.f32 %v1042_v41 }
 0x71b   :  { %v4608_v48 = vpop.eup %4607 }
 0x71c   :  { %v1221_v47 = vpop.xlane.xlu1 %1220  ;;  %v1050_v51 = vmul.f32 %v4608_v48, %v5160_v58 }
 0x71e   :  { %v1224_v31 = vpop.xlane.xlu0 %1223 }
 0x71f   :  { %4615 = vrcp.f32 %v1224_v31 }
 0x720   :  { %v4610_v49 = vpop.eup %4609  ;;  %v1215_v50 = vpop.xlane.xlu1 %1214 }
 0x721   :  { %4617 = vrcp.f32 %v1215_v50  ;;  %v1051_v52 = vmul.f32 %v4610_v49, %v4598_v11  ;;  %v4612_v53 = vpop.eup %4611 }
 0x722   :  { %4619 = vrcp.f32 %v1221_v47  ;;  %v1218_v55 = vpop.xlane.xlu0 %1217  ;;  %v4614_v60 = vpop.eup %4613  ;;  %v1053_v63 = vmul.f32 %v4612_v53, %v5162_v1  ;;  %v937_v53 = vld [vmem:[%s5724_s10 + $0x8] sm:$0xff] }
 0x723   :  { %4621 = vrcp.f32 %v1218_v55  ;;  %v1054_v56 = vpack.c.bf16 %v1051_v52, %v1050_v51  ;;  %v1052_v2 = vmul.f32 %v4614_v60, %v5156_v54  ;;  %v1298_v55 = vpack.c.bf16 %v937_v53, %v937_v53  ;;  %v936_v60 = vld [vmem:[%s5724_s10] sm:$0xff] }
 0x724   :  { %v1236_v62 = vpop.permute.xlu1 %1235 }
 0x725   :  { %4246 = vmatprep.mubr.msk.bf16.mxu1 %vm86_vm0, %v1054_v56  ;;  %v1055_v5 = vpack.c.bf16 %v1053_v63, %v1052_v2  ;;  %v1306_v56 = vsel %vm442_vm1, %v1298_v55, 0 }
 0x726   :  { %v1059_v0 = vpop.permute.xlu0 %1058 }
 0x727   :  { %4244 = vmatprep.subr.bf16.mxu1 %v1059_v0 }
 0x728   :  { %v1238_v3 = vpop.permute.xlu1 %1237  ;;  %4245 = vmatpush3.bf16.msra.mxu1 %v1059_v0 }
 0x729   :  { %4258 = vmatprep.subr.bf16.mxu1 %v1236_v62  ;;  %v4616_v58 = vpop.eup %4615 }
 0x72a   :  { %v1661_v6 = vpop.permute.xlu0 %1660  ;;  %v1232_v54 = vmul.f32 %v4616_v58, %v5175_v21 }
 0x72b   :  { %v4618_v7 = vpop.eup %4617  ;;  %4247 = vmatmul.mubr.msk.bf16.vlgmr.msra.gmra.mrb[12].mxu1 %vm86_vm0, %v1055_v5  ;;  %4539 = vmatprep.subr.msk.bf16.mxu0 %vm948_vm3, %v1661_v6  ;;  %v1671_v8 = vsel %vm948_vm3, %v1661_v6, 0 }
 0x72c   :  { %v4620_v1 = vpop.eup %4619  ;;  %v1663_v9 = vpop.permute.xlu1 %1662  ;;  %4259 = vmatpush3.bf16.msra.mxu1 %v1236_v62  ;;  %4301 = vmatpush3.bf16.xpose.msra.mxu0 %v1671_v8  ;;  %v1229_v20 = vmul.f32 %v4618_v7, %v5171_v19  ;;  %v1119_v62 = vpack.c.bf16 %v936_v60, %v936_v60 }
 0x72d   :  { %v4622_v11 = vpop.eup %4621  ;;  %4260 = vmatprep.subr.bf16.mxu1 %v1238_v3  ;;  %4540 = vmatprep.subr.msk.bf16.mxu0 %vm948_vm3, %v1663_v9  ;;  %v1231_v26 = vmul.f32 %v4620_v1, %v5169_v17  ;;  %v1674_v21 = vsel %vm948_vm3, %v1663_v9, 0 }
 0x72e   :  { %v1657_v14 = vpop.permute.xlu0 %1656  ;;  %v1230_v23 = vmul.f32 %v4622_v11, %v5179_v25 }
 0x72f   :  { %4304 = vmatprep.mubr.msk.bf16.mxu0 %vm948_vm3, %v1657_v14  ;;  %v1234_v39 = vpack.c.bf16 %v1232_v54, %v1231_v26  ;;  %v1364_v26 = vsel %vm442_vm1, %v1119_v62, 0 }
 0x730   :  { %4261 = vmatpush3.bf16.msra.mxu1 %v1238_v3  ;;  %v1233_v27 = vpack.c.bf16 %v1230_v23, %v1229_v20  ;;  %v1659_v40 = vpop.permute.xlu1 %1658 }
 0x731   :  { %4534 = vmatprep.subr.msk.bf16.mxu1 %vm442_vm1, %v1298_v55 }
 0x732   :  { %4262 = vmatprep.mubr.msk.bf16.mxu1 %vm86_vm0, %v1233_v27 }
 0x733   :  { %4263 = vmatmul.mubr.msk.bf16.vlgmr.msra.gmra.mrb[16].mxu1 %vm86_vm0, %v1234_v39 }
 0x734   :  { %4303 = vmatpush3.bf16.xpose.msra.mxu0 %v1674_v21  ;;  %4267 = vmatpush3.bf16.msra.mxu1 %v1306_v56 }
 0x735   :  { %4535 = vmatprep.subr.msk.bf16.mxu1 %vm442_vm1, %v1119_v62 }
 0x73b   :  { %4305 = vmatmul.mubr.msk.bf16.vlgmr.msra.gmra.mrb[28].mxu0 %vm948_vm3, %v1659_v40 }
 0x75f   :  { %v1486_v19 = vpop.xlane.xlu0 %1485 }
 0x760   :  { %v1496_v25 = vsub.f32 %v5201_v28, %v1486_v19 }
 0x761   :  { %v1489_v32 = vpop.xlane.xlu1 %1488 }
 0x762   :  { %v1500_v41 = vmul.f32 1.442695, %v1496_v25  ;;  %v1497_v42 = vsub.f32 %v5205_v33, %v1489_v32 }
 0x763   :  { %v1492_v17 = vpop.xlane.xlu0 %1491 }
 0x764   :  { %v1498_v29 = vsub.f32 %v5209_v34, %v1492_v17  ;;  %v1502_v48 = vmul.f32 1.442695, %v1497_v42 }
 0x766   :  { %v1504_v44 = vmul.f32 1.442695, %v1498_v29 }
 0x767   :  { %v1495_v46 = vpop.xlane.xlu0 %1494 }
 0x768   :  { %4623 = vpow2.f32 %v1504_v44  ;;  %v1499_v47 = vsub.f32 %v5217_v30, %v1495_v46 }
 0x769   :  { %4625 = vpow2.f32 %v1500_v41 }
 0x76a   :  { %v1506_v31 = vmul.f32 1.442695, %v1499_v47 }
 0x76c   :  { %4627 = vpow2.f32 %v1506_v31 }
 0x76d   :  { %4629 = vpow2.f32 %v1502_v48 }
 0x772   :  { %v5244_v49 = vpop.eup %4623 }
 0x773   :  { %v1514_v28 = vsel %vm86_vm0, %v5244_v49, 0.0  ;;  %v5248_v50 = vpop.eup %4625 }
 0x774   :  { %1515 = vadd.xlane.f32.xlu1 %v1514_v28  ;;  %v1508_v33 = vsel %vm86_vm0, %v5248_v50, 0.0 }
 0x776   :  { %v5250_v34 = vpop.eup %4627 }
 0x777   :  { %v1517_v30 = vsel %vm86_vm0, %v5250_v34, 0.0  ;;  %v4630_v51 = vpop.eup %4629 }
 0x778   :  { %1509 = vadd.xlane.f32.xlu1 %v1508_v33  ;;  %1518 = vadd.xlane.f32.xlu0 %v1517_v30  ;;  %v1511_v52 = vsel %vm86_vm0, %v4630_v51, 0.0 }
 0x77c   :  { %1512 = vadd.xlane.f32.xlu0 %v1511_v52 }
 0x789   :  { %1530 = vrot.lane.b32.xlu1 %v5068_v37, %s5751_s25 }
 0x792   :  { %1532 = vrot.lane.b32.xlu0 %v5066_v35, %s5751_s25 }
 0x7fe   :  { %v4248_v63 = vpop.f32.mrb[12].mxu1 }
 0x7ff   :  { %v1102_v0 = vpop.f32.mrb[13].mxu1 }
 0x800   :  { %v4249_v2 = vpop.f32.mrb[14].mxu1 }
 0x801   :  { %v1118_v3 = vpack.c.bf16 %v4249_v2, %v4248_v63  ;;  %v1105_v5 = vpop.f32.mrb[15].mxu1  ;;  %v1516_v58 = vpop.xlane.xlu1 %1515 }
 0x802   :  { %v1117_v6 = vpack.c.bf16 %v1105_v5, %v1102_v0 }
 0x805   :  { %v1519_v7 = vpop.xlane.xlu0 %1518  ;;  %v1510_v8 = vpop.xlane.xlu1 %1509 }
 0x806   :  { %v4264_v1 = vpop.f32.mrb[16].mxu1  ;;  %4631 = vrcp.f32 %v1510_v8 }
 0x807   :  { %v1281_v9 = vpop.f32.mrb[17].mxu1 }
 0x808   :  { %v4265_v11 = vpop.f32.mrb[18].mxu1 }
 0x809   :  { %v1297_v54 = vpack.c.bf16 %v4265_v11, %v4264_v1  ;;  %v1284_v14 = vpop.f32.mrb[19].mxu1  ;;  %v1513_v23 = vpop.xlane.xlu0 %1512 }
 0x80a   :  { %v1296_v20 = vpack.c.bf16 %v1284_v14, %v1281_v9  ;;  %4633 = vrcp.f32 %v1513_v23  ;;  %v1531_v27 = vpop.permute.xlu1 %1530 }
 0x80b   :  { %4635 = vrcp.f32 %v1519_v7 }
 0x80c   :  { %4268 = vmatprep.mubr.msk.bf16.mxu1 %vm948_vm3, %v1296_v20  ;;  %4637 = vrcp.f32 %v1516_v58 }
 0x80d   :  { %4269 = vmatmul.mubr.msk.bf16.vlgmr.msra.gmra.mrb[20].mxu1 %vm948_vm3, %v1297_v54  ;;  %v1533_v33 = vpop.permute.xlu0 %1532 }
 0x80e   :  { %4273 = vmatpush3.bf16.msra.mxu1 %v1364_v26  ;;  %4274 = vmatprep.mubr.msk.bf16.mxu1 %vm948_vm3, %v1117_v6  ;;  %v4306_v39 = vpop.f32.mrb[28].mxu0 }
 0x80f   :  { %4286 = vmatprep.subr.bf16.mxu1 %v1531_v27  ;;  %v1710_v21 = vpop.f32.mrb[29].mxu0  ;;  %v1719_v32 = vadd.f32 %v4306_v39, %v5118_v59 }
 0x810   :  { %v1711_v40 = vadd.f32 %v1710_v21, %v5113_v57  ;;  %v4307_v19 = vpop.f32.mrb[30].mxu0  ;;  %v4632_v41 = vpop.eup %4631 }
 0x811   :  { %v1713_v25 = vpop.f32.mrb[31].mxu0  ;;  %v1722_v42 = vadd.f32 %v4307_v19, %v5132_v4  ;;  %v1731_v47 = vsel %vm86_vm0, %v1719_v32, -inf  ;;  %v1524_v57 = vmul.f32 %v4632_v41, %v5248_v50 }
 0x812   :  { %v1714_v17 = vadd.f32 %v1713_v25, %v5123_v61  ;;  %v1725_v29 = vsel %vm86_vm0, %v1711_v40, -inf }
 0x813   :  { %1726 = vmax.xlane.f32.xlu1 %v1725_v29  ;;  %v1734_v59 = vsel %vm86_vm0, %v1722_v42, -inf }
 0x814   :  { %v1728_v44 = vsel %vm86_vm0, %v1714_v17, -inf  ;;  %v4634_v46 = vpop.eup %4633 }
 0x815   :  { %1729 = vmax.xlane.f32.xlu0 %v1728_v44  ;;  %v1525_v48 = vmul.f32 %v4634_v46, %v4630_v51  ;;  %v4636_v31 = vpop.eup %4635  ;;  %v938_v51 = vld [vmem:[%s5724_s10 + $0x10] sm:$0xff] }
 0x816   :  { %v4638_v28 = vpop.eup %4637  ;;  %v1527_v4 = vmul.f32 %v4636_v31, %v5250_v34  ;;  %v1593_v52 = vpack.c.bf16 %v938_v51, %v938_v51 }
 0x817   :  { %1732 = vmax.xlane.f32.xlu1 %v1731_v47  ;;  %v1528_v61 = vpack.c.bf16 %v1525_v48, %v1524_v57  ;;  %v1526_v30 = vmul.f32 %v4638_v28, %v5244_v49 }
 0x818   :  { %v1601_v53 = vsel %vm442_vm1, %v1593_v52, 0 }
 0x819   :  { %4275 = vmatmul.mubr.msk.bf16.vlgmr.msra.gmra.mrb[20].mxu1 %vm948_vm3, %v1118_v3  ;;  %1735 = vmax.xlane.f32.xlu0 %v1734_v59  ;;  %v1529_v50 = vpack.c.bf16 %v1527_v4, %v1526_v30 }
 0x81a   :  { %4287 = vmatpush3.bf16.msra.mxu1 %v1531_v27  ;;  %4290 = vmatprep.mubr.msk.bf16.mxu1 %vm86_vm0, %v1528_v61 }
 0x81b   :  { %4288 = vmatprep.subr.bf16.mxu1 %v1533_v33 }
 0x81e   :  { %4289 = vmatpush3.bf16.msra.mxu1 %v1533_v33 }
 0x81f   :  { %4538 = vmatprep.subr.msk.bf16.mxu1 %vm442_vm1, %v1593_v52 }
 0x821   :  { %4291 = vmatmul.mubr.msk.bf16.vlgmr.msra.gmra.mrb[24].mxu1 %vm86_vm0, %v1529_v50 }
 0x822   :  { %4295 = vmatpush3.bf16.msra.mxu1 %v1601_v53  ;;  %v3880_v53 = vld [vmem:[%s5725_s11] ss:$0 sm:$0xff] }
 0x8a0   :  { %v1727_v55 = vpop.xlane.xlu1 %1726 }
 0x8a1   :  { %v1737_v56 = vsub.f32 %v1711_v40, %v1727_v55 }
 0x8a2   :  { %v1730_v34 = vpop.xlane.xlu0 %1729 }
 0x8a3   :  { %v1738_v62 = vsub.f32 %v1714_v17, %v1730_v34  ;;  %v1741_v63 = vmul.f32 1.442695, %v1737_v56 }
 0x8a4   :  { %v1733_v60 = vpop.xlane.xlu1 %1732 }
 0x8a5   :  { %v1739_v49 = vsub.f32 %v1719_v32, %v1733_v60  ;;  %v1743_v5 = vmul.f32 1.442695, %v1738_v62 }
 0x8a6   :  { %v1736_v0 = vpop.xlane.xlu0 %1735 }
 0x8a7   :  { %v1745_v2 = vmul.f32 1.442695, %v1739_v49  ;;  %v1740_v3 = vsub.f32 %v1722_v42, %v1736_v0 }
 0x8a9   :  { %4639 = vpow2.f32 %v1745_v2  ;;  %v1747_v58 = vmul.f32 1.442695, %v1740_v3 }
 0x8aa   :  { %4641 = vpow2.f32 %v1741_v63 }
 0x8ab   :  { %4643 = vpow2.f32 %v1747_v58 }
 0x8ac   :  { %4645 = vpow2.f32 %v1743_v5 }
 0x8b3   :  { %v4640_v6 = vpop.eup %4639 }
 0x8b4   :  { %v4642_v7 = vpop.eup %4641  ;;  %v1755_v8 = vsel %vm86_vm0, %v4640_v6, 0.0 }
 0x8b5   :  { %v4644_v1 = vpop.eup %4643  ;;  %1756 = vadd.xlane.f32.xlu1 %v1755_v8  ;;  %v1749_v54 = vsel %vm86_vm0, %v4642_v7, 0.0 }
 0x8b6   :  { %v1758_v9 = vsel %vm86_vm0, %v4644_v1, 0.0  ;;  %v4646_v11 = vpop.eup %4645 }
 0x8b7   :  { %1759 = vadd.xlane.f32.xlu0 %v1758_v9  ;;  %v1752_v14 = vsel %vm86_vm0, %v4646_v11, 0.0 }
 0x8b9   :  { %1750 = vadd.xlane.f32.xlu1 %v1749_v54 }
 0x8bb   :  { %1753 = vadd.xlane.f32.xlu0 %v1752_v14 }
 0x8ca   :  { %1771 = vrot.lane.b32.xlu1 %v5068_v37, %s5749_s30 }
 0x8d1   :  { %1773 = vrot.lane.b32.xlu0 %v5066_v35, %s5749_s30  ;;  %v939_v35 = vld [vmem:[%s5724_s10 + $0x18] sm:$0xff]  ;;  %s5779_s30 = smov 40  }
 0x8d2   :  { %v1834_v29 = vpack.c.bf16 %v939_v35, %v939_v35 }
 0x8d4   :  { %v1842_v28 = vsel %vm442_vm1, %v1834_v29, 0 }
 0x8f4   :  { %v4292_v20 = vpop.f32.mrb[24].mxu1 }
 0x8f5   :  { %v1576_v23 = vpop.f32.mrb[25].mxu1 }
 0x8f6   :  { %v4293_v26 = vpop.f32.mrb[26].mxu1 }
 0x8f7   :  { %v1592_v27 = vpack.c.bf16 %v4293_v26, %v4292_v20  ;;  %v1579_v39 = vpop.f32.mrb[27].mxu1 }
 0x8f8   :  { %v1591_v21 = vpack.c.bf16 %v1579_v39, %v1576_v23 }
 0x8fa   :  { %4296 = vmatprep.mubr.msk.bf16.mxu1 %vm948_vm3, %v1591_v21 }
 0x8fb   :  { %4297 = vmatmul.mubr.msk.bf16.vlgmr.msra.gmra.mrb[20].mxu1 %vm948_vm3, %v1592_v27 }
 0x942   :  { %v1757_v40 = vpop.xlane.xlu1 %1756 }
 0x944   :  { %v1760_v19 = vpop.xlane.xlu0 %1759 }
 0x945   :  { %4647 = vrcp.f32 %v1760_v19 }
 0x946   :  { %v1751_v25 = vpop.xlane.xlu1 %1750 }
 0x947   :  { %4649 = vrcp.f32 %v1751_v25 }
 0x948   :  { %4651 = vrcp.f32 %v1757_v40  ;;  %v1754_v37 = vpop.xlane.xlu0 %1753 }
 0x949   :  { %4653 = vrcp.f32 %v1754_v37 }
 0x94a   :  { %v1772_v32 = vpop.permute.xlu1 %1771 }
 0x94b   :  { %4308 = vmatprep.subr.bf16.mxu1 %v1772_v32 }
 0x94c   :  { %4309 = vmatpush3.bf16.msra.mxu1 %v1772_v32  ;;  %v1774_v17 = vpop.permute.xlu0 %1773 }
 0x94d   :  { %4310 = vmatprep.subr.bf16.mxu1 %v1774_v17 }
 0x94f   :  { %v4648_v41 = vpop.eup %4647 }
 0x950   :  { %4311 = vmatpush3.bf16.msra.mxu1 %v1774_v17  ;;  %v1768_v47 = vmul.f32 %v4648_v41, %v4644_v1  ;;  %v4567_v17 = vld [vmem:[%s5726_s14] sm:$0xff]  }
 0x951   :  { %v4650_v42 = vpop.eup %4649  ;;  %4541 = vmatprep.subr.msk.bf16.mxu1 %vm442_vm1, %v1834_v29  ;;  %4322 = vmatprep.subr.bf16.mxu0 %v4567_v17  ;;  %v4568_v29 = vld [vmem:[%s5726_s14 + $0x8] sm:$0xff]   ;;  %v4569_v41 = vld [vmem:[%s5727_s16] sm:$0xff]  }
 0x952   :  { %v4652_v44 = vpop.eup %4651  ;;  %v1765_v57 = vmul.f32 %v4650_v42, %v4642_v7  ;;  %4323 = vmatpush3.bf16.msra.mxu0 %v4567_v17 }
 0x953   :  { %v4654_v46 = vpop.eup %4653  ;;  %v1767_v31 = vmul.f32 %v4652_v44, %v4640_v6  ;;  %4324 = vmatprep.subr.bf16.mxu0 %v4568_v29 }
 0x954   :  { %v1766_v48 = vmul.f32 %v4654_v46, %v4646_v11 }
 0x955   :  { %v1770_v61 = vpack.c.bf16 %v1768_v47, %v1767_v31 }
 0x956   :  { %v1769_v59 = vpack.c.bf16 %v1766_v48, %v1765_v57  ;;  %4325 = vmatpush3.bf16.msra.mxu0 %v4568_v29 }
 0x957   :  { %4330 = vmatprep.subr.bf16.mxu0 %v4569_v41 }
 0x958   :  { %4312 = vmatprep.mubr.msk.bf16.mxu1 %vm86_vm0, %v1769_v59 }
 0x959   :  { %4313 = vmatmul.mubr.msk.bf16.vlgmr.msra.gmra.mrb[28].mxu1 %vm86_vm0, %v1770_v61 }
 0x95a   :  { %4317 = vmatpush3.bf16.msra.mxu1 %v1842_v28 }
 0xa2c   :  { %v4314_v33 = vpop.f32.mrb[28].mxu1 }
 0xa2d   :  { %v1817_v4 = vpop.f32.mrb[29].mxu1 }
 0xa2e   :  { %v4315_v30 = vpop.f32.mrb[30].mxu1 }
 0xa2f   :  { %v1833_v50 = vpack.c.bf16 %v4315_v30, %v4314_v33  ;;  %v1820_v51 = vpop.f32.mrb[31].mxu1 }
 0xa30   :  { %v1832_v52 = vpack.c.bf16 %v1820_v51, %v1817_v4 }
 0xa32   :  { %4318 = vmatprep.mubr.msk.bf16.mxu1 %vm948_vm3, %v1832_v52 }
 0xa33   :  { %4319 = vmatmul.mubr.msk.bf16.vlgmr.msra.gmra.mrb[20].mxu1 %vm948_vm3, %v1833_v50  ;;  %v3881_v50 = vld [vmem:[%s5728_s12] ss:$0 sm:$0xff] }
 0xb06   :  { %v4320_v55 = vpop.f32.mrb[20].mxu1 }
 0xb07   :  { %v1878_v56 = vpop.f32.mrb[21].mxu1  ;;  %v1906_v34 = vadd.f32 %v4320_v55, %v3880_v53 }
 0xb08   :  { %v1904_v60 = vadd.f32 %v3880_v53, %v1878_v56  ;;  %v4321_v62 = vpop.f32.mrb[22].mxu1 }
 0xb09   :  { %v1881_v49 = vpop.f32.mrb[23].mxu1  ;;  %v1907_v63 = vadd.f32 %v4321_v62, %v3880_v53  ;;  %v1910_v58 = vadd.f32 %v1906_v34, %v5057_v24  ;;  %v3882_v34 = vld [vmem:[%s5729_s13] ss:$0 sm:$0xff] }
 0xb0a   :  { %v1905_v0 = vadd.f32 %v3880_v53, %v1881_v49  ;;  %v1908_v2 = vadd.f32 %v1904_v60, %v5045_v16 }
 0xb0b   :  { %v1911_v7 = vadd.f32 %v1907_v63, %v5055_v22  ;;  %v1920_v8 = vsel %vm86_vm0, %v1910_v58, 0.0 }
 0xb0c   :  { %v1914_v3 = vsel %vm86_vm0, %v1908_v2, 0.0  ;;  %v1909_v5 = vadd.f32 %v1905_v0, %v5043_v13 }
 0xb0d   :  { %1915 = vadd.xlane.f32.xlu1 %v1914_v3  ;;  %v1923_v1 = vsel %vm86_vm0, %v1911_v7, 0.0 }
 0xb0e   :  { %v1917_v6 = vsel %vm86_vm0, %v1909_v5, 0.0 }
 0xb0f   :  { %1918 = vadd.xlane.f32.xlu0 %v1917_v6 }
 0xb11   :  { %1921 = vadd.xlane.f32.xlu1 %v1920_v8 }
 0xb13   :  { %1924 = vadd.xlane.f32.xlu0 %v1923_v1  ;;  %v4570_v1 = vld [vmem:[%s5727_s16 + $0x8] sm:$0xff]  }
 0xb9a   :  { %v1916_v9 = vpop.xlane.xlu1 %1915 }
 0xb9b   :  { %v1927_v16 = vmul.f32 0.03125, %v1916_v9  ;;  %v4571_v9 = vld [vmem:[%s5727_s16 + $0x10] sm:$0xff]  }
 0xb9c   :  { %v1919_v11 = vpop.xlane.xlu0 %1918 }
 0xb9d   :  { %v1931_v54 = vsub.f32 %v1908_v2, %v1927_v16  ;;  %v1928_v14 = vmul.f32 0.03125, %v1919_v11  ;;  %v4572_v16 = vld [vmem:[%s5727_s16 + $0x18] sm:$0xff]   ;;  %v3883_v11 = vld [vmem:[%s5730_s15] ss:$0 sm:$0xff] }
 0xb9e   :  { %v1922_v13 = vpop.xlane.xlu1 %1921 }
 0xb9f   :  { %v1932_v20 = vsub.f32 %v1909_v5, %v1928_v14  ;;  %v1929_v24 = vmul.f32 0.03125, %v1922_v13  ;;  %v1935_v23 = vmul.f32 %v1931_v54, %v1931_v54 }
 0xba0   :  { %v1925_v26 = vpop.xlane.xlu0 %1924 }
 0xba1   :  { %v1933_v27 = vsub.f32 %v1910_v58, %v1929_v24  ;;  %v1930_v39 = vmul.f32 0.03125, %v1925_v26  ;;  %v1939_v22 = vsel %vm86_vm0, %v1935_v23, 0.0  ;;  %v1936_v21 = vmul.f32 %v1932_v20, %v1932_v20 }
 0xba2   :  { %1940 = vadd.xlane.f32.xlu1 %v1939_v22 }
 0xba3   :  { %v1934_v40 = vsub.f32 %v1911_v7, %v1930_v39  ;;  %v1942_v19 = vsel %vm86_vm0, %v1936_v21, 0.0  ;;  %v1937_v25 = vmul.f32 %v1933_v27, %v1933_v27 }
 0xba4   :  { %1943 = vadd.xlane.f32.xlu0 %v1942_v19 }
 0xba5   :  { %v1945_v37 = vsel %vm86_vm0, %v1937_v25, 0.0  ;;  %v1938_v32 = vmul.f32 %v1934_v40, %v1934_v40 }
 0xba6   :  { %1946 = vadd.xlane.f32.xlu1 %v1945_v37  ;;  %v3888_v37 = vld [vmem:[%s5731_s17] ss:$0 sm:$0xff] }
 0xba7   :  { %v1948_v35 = vsel %vm86_vm0, %v1938_v32, 0.0 }
 0xba8   :  { %1949 = vadd.xlane.f32.xlu0 %v1948_v35 }
 0xc2f   :  { %v1941_v42 = vpop.xlane.xlu1 %1940 }
 0xc30   :  { %v1951_v44 = vmul.f32 0.03125, %v1941_v42 }
 0xc31   :  { %v1944_v46 = vpop.xlane.xlu0 %1943 }
 0xc32   :  { %v1955_v47 = vadd.f32 1e-05, %v1951_v44  ;;  %v1952_v57 = vmul.f32 0.03125, %v1944_v46 }
 0xc33   :  { %v1947_v48 = vpop.xlane.xlu1 %1946 }
 0xc34   :  { %4655 = vrsqrt.f32 %v1955_v47  ;;  %v1956_v31 = vadd.f32 1e-05, %v1952_v57  ;;  %v1953_v59 = vmul.f32 0.03125, %v1947_v48 }
 0xc35   :  { %v1950_v61 = vpop.xlane.xlu0 %1949 }
 0xc36   :  { %4657 = vrsqrt.f32 %v1956_v31  ;;  %v1957_v28 = vadd.f32 1e-05, %v1953_v59  ;;  %v1954_v33 = vmul.f32 0.03125, %v1950_v61 }
 0xc38   :  { %4659 = vrsqrt.f32 %v1957_v28  ;;  %v1958_v4 = vadd.f32 1e-05, %v1954_v33 }
 0xc3a   :  { %4661 = vrsqrt.f32 %v1958_v4 }
 0xc3e   :  { %v4656_v30 = vpop.eup %4655 }
 0xc3f   :  { %v1963_v51 = vmul.f32 %v4656_v30, %v1931_v54 }
 0xc40   :  { %v4658_v52 = vpop.eup %4657 }
 0xc41   :  { %v1964_v53 = vmul.f32 %v4658_v52, %v1932_v20  ;;  %v1973_v55 = vmul.f32 %v3881_v50, %v1963_v51 }
 0xc42   :  { %v4660_v56 = vpop.eup %4659 }
 0xc43   :  { %v1965_v60 = vmul.f32 %v4660_v56, %v1933_v27  ;;  %v1974_v62 = vmul.f32 %v3881_v50, %v1964_v53  ;;  %v1983_v2 = vadd.f32 %v3882_v34, %v1973_v55 }
 0xc44   :  { %v4662_v49 = vpop.eup %4661 }
 0xc45   :  { %v1975_v63 = vmul.f32 %v3881_v50, %v1965_v60  ;;  %v1966_v0 = vmul.f32 %v4662_v49, %v1934_v40  ;;  %v1984_v3 = vadd.f32 %v3882_v34, %v1974_v62 }
 0xc47   :  { %v1976_v5 = vmul.f32 %v3881_v50, %v1966_v0  ;;  %v1991_v58 = vpack.c.bf16 %v1984_v3, %v1983_v2  ;;  %v1985_v6 = vadd.f32 %v3882_v34, %v1975_v63 }
 0xc49   :  { %4326 = vmatprep.mubr.msk.bf16.mxu0 %vm86_vm0, %v1991_v58  ;;  %v1986_v7 = vadd.f32 %v3882_v34, %v1976_v5 }
 0xc4b   :  { %v1992_v8 = vpack.c.bf16 %v1986_v7, %v1985_v6 }
 0xc4d   :  { %4327 = vmatmul.mubr.msk.bf16.vlgmr.msra.gmra.mrb[32].mxu0 %vm86_vm0, %v1992_v8  ;;  %v4573_v8 = vld [vmem:[%s5770_s26 + $0x10] sm:$0xff]  }
 0xc4e   :  { %4331 = vmatpush3.bf16.msra.mxu0 %v4569_v41  ;;  %4342 = vmatprep.subr.bf16.mxu1 %v4573_v8 }
 0xc4f   :  { %4332 = vmatprep.subr.bf16.mxu0 %v4570_v1  ;;  %4343 = vmatpush3.bf16.msra.mxu1 %v4573_v8 }
 0xc52   :  { %4333 = vmatpush3.bf16.msra.mxu0 %v4570_v1  ;;  %v4574_v1 = vld [vmem:[%s5770_s26 + $0x18] sm:$0xff]  }
 0xc53   :  { %4334 = vmatprep.subr.bf16.mxu0 %v4571_v9  ;;  %4344 = vmatprep.subr.bf16.mxu1 %v4574_v1 }
 0xc54   :  { %4345 = vmatpush3.bf16.msra.mxu1 %v4574_v1  ;;  %v5429_v1 = vld [vmem:[%s5723_s5 + $0x8] sm:$0xff] }
 0xc56   :  { %4335 = vmatpush3.bf16.msra.mxu0 %v4571_v9 }
 0xc57   :  { %4336 = vmatprep.subr.bf16.mxu0 %v4572_v16 }
 0xc5a   :  { %4337 = vmatpush3.bf16.msra.mxu0 %v4572_v16 }
 0xd20   :  { %v4328_v54 = vpop.f32.mrb[32].mxu0 }
 0xd21   :  { %v2061_v14 = vadd.f32 %v4328_v54, %v3883_v11  ;;  %v2052_v13 = vpop.f32.mrb[33].mxu0 }
 0xd22   :  { %v2053_v20 = vadd.f32 %v3883_v11, %v2052_v13  ;;  %v4329_v24 = vpop.f32.mrb[34].mxu0 }
 0xd23   :  { %v2064_v23 = vadd.f32 %v4329_v24, %v3883_v11  ;;  %v2055_v26 = vpop.f32.mrb[35].mxu0  ;;  %v2069_v39 = vmax.f32 %v2061_v14, 0.0 }
 0xd24   :  { %v2056_v27 = vadd.f32 %v3883_v11, %v2055_v26  ;;  %v2067_v21 = vmax.f32 %v2053_v20, 0.0 }
 0xd25   :  { %v2070_v22 = vmax.f32 %v2064_v23, 0.0 }
 0xd26   :  { %v2068_v40 = vmax.f32 %v2056_v27, 0.0 }
 0xd27   :  { %v2080_v19 = vpack.c.bf16 %v2070_v22, %v2069_v39 }
 0xd28   :  { %v2079_v25 = vpack.c.bf16 %v2068_v40, %v2067_v21  ;;  %v3895_v21 = vld [vmem:[%s5732_s18] ss:$0 sm:$0xff] }
 0xd2a   :  { %4338 = vmatprep.mubr.msk.bf16.mxu0 %vm2112_vm4, %v2079_v25 }
 0xd2b   :  { %4339 = vmatmul.mubr.msk.bf16.vlgmr.msra.gmra.mrb[36].mxu0 %vm2112_vm4, %v2080_v19 }
 0xdfe   :  { %v4340_v32 = vpop.f32.mrb[36].mxu0 }
 0xdff   :  { %v2153_v35 = vpop.f32.mrb[37].mxu0  ;;  %v2162_v17 = vadd.f32 %v4340_v32, %v3888_v37 }
 0xe00   :  { %v2154_v29 = vadd.f32 %v3888_v37, %v2153_v35  ;;  %v4341_v41 = vpop.f32.mrb[38].mxu0  ;;  %v3896_v35 = vld [vmem:[%s5733_s19] ss:$0 sm:$0xff] }
 0xe01   :  { %v2156_v42 = vpop.f32.mrb[39].mxu0  ;;  %v2165_v44 = vadd.f32 %v4341_v41, %v3888_v37  ;;  %v2170_v31 = vadd.f32 %v2162_v17, %v1985_v6 }
 0xe02   :  { %v2157_v46 = vadd.f32 %v3888_v37, %v2156_v42  ;;  %v2168_v47 = vadd.f32 %v2154_v29, %v1983_v2 }
 0xe03   :  { %v2171_v61 = vadd.f32 %v2165_v44, %v1986_v7  ;;  %v2180_v28 = vsel %vm86_vm0, %v2170_v31, 0.0 }
 0xe04   :  { %v2174_v57 = vsel %vm86_vm0, %v2168_v47, 0.0  ;;  %v2169_v48 = vadd.f32 %v2157_v46, %v1984_v3 }
 0xe05   :  { %2175 = vadd.xlane.f32.xlu1 %v2174_v57  ;;  %v2183_v33 = vsel %vm86_vm0, %v2171_v61, 0.0 }
 0xe06   :  { %v2177_v59 = vsel %vm86_vm0, %v2169_v48, 0.0 }
 0xe07   :  { %2178 = vadd.xlane.f32.xlu0 %v2177_v59 }
 0xe09   :  { %2181 = vadd.xlane.f32.xlu1 %v2180_v28 }
 0xe0b   :  { %2184 = vadd.xlane.f32.xlu0 %v2183_v33  ;;  %v3902_v33 = vld [vmem:[%s5774_s8 + $0x1] ss:$0 sm:$0xff] }
 0xe92   :  { %v2176_v4 = vpop.xlane.xlu1 %2175 }
 0xe93   :  { %v2186_v30 = vmul.f32 0.03125, %v2176_v4 }
 0xe94   :  { %v2179_v50 = vpop.xlane.xlu0 %2178 }
 0xe95   :  { %v2190_v51 = vsub.f32 %v2168_v47, %v2186_v30  ;;  %v2187_v52 = vmul.f32 0.03125, %v2179_v50 }
 0xe96   :  { %v2182_v53 = vpop.xlane.xlu1 %2181 }
 0xe97   :  { %v2191_v55 = vsub.f32 %v2169_v48, %v2187_v52  ;;  %v2188_v56 = vmul.f32 0.03125, %v2182_v53  ;;  %v2194_v34 = vmul.f32 %v2190_v51, %v2190_v51 }
 0xe98   :  { %v2185_v60 = vpop.xlane.xlu0 %2184 }
 0xe99   :  { %v2192_v62 = vsub.f32 %v2170_v31, %v2188_v56  ;;  %v2189_v49 = vmul.f32 0.03125, %v2185_v60  ;;  %v2198_v63 = vsel %vm86_vm0, %v2194_v34, 0.0  ;;  %v2195_v0 = vmul.f32 %v2191_v55, %v2191_v55 }
 0xe9a   :  { %2199 = vadd.xlane.f32.xlu1 %v2198_v63 }
 0xe9b   :  { %v2193_v2 = vsub.f32 %v2171_v61, %v2189_v49  ;;  %v2201_v3 = vsel %vm86_vm0, %v2195_v0, 0.0  ;;  %v2196_v5 = vmul.f32 %v2192_v62, %v2192_v62 }
 0xe9c   :  { %2202 = vadd.xlane.f32.xlu0 %v2201_v3  ;;  %v5417_v3 = vld [vmem:[%s5723_s5] sm:$0xff] }
 0xe9d   :  { %v2204_v58 = vsel %vm86_vm0, %v2196_v5, 0.0  ;;  %v2197_v6 = vmul.f32 %v2193_v2, %v2193_v2 }
 0xe9e   :  { %2205 = vadd.xlane.f32.xlu1 %v2204_v58 }
 0xe9f   :  { %v2207_v7 = vsel %vm86_vm0, %v2197_v6, 0.0 }
 0xea0   :  { %2208 = vadd.xlane.f32.xlu0 %v2207_v7  ;;  %v5423_v7 = vld [vmem:[%s5723_s5 + $0x10] sm:$0xff] }
 0xf27   :  { %v2200_v9 = vpop.xlane.xlu1 %2199 }
 0xf28   :  { %v2210_v16 = vmul.f32 0.03125, %v2200_v9 }
 0xf29   :  { %v2203_v11 = vpop.xlane.xlu0 %2202 }
 0xf2a   :  { %v2214_v54 = vadd.f32 1e-05, %v2210_v16  ;;  %v2211_v14 = vmul.f32 0.03125, %v2203_v11  ;;  %v5436_v11 = vld [vmem:[%s5723_s5 + $0x18] sm:$0xff]  ;;  %s5775_s5 = smov 56  }
 0xf2b   :  { %v2206_v13 = vpop.xlane.xlu1 %2205 }
 0xf2c   :  { %4663 = vrsqrt.f32 %v2214_v54  ;;  %v2215_v20 = vadd.f32 1e-05, %v2211_v14  ;;  %v2212_v24 = vmul.f32 0.03125, %v2206_v13 }
 0xf2d   :  { %v2209_v23 = vpop.xlane.xlu0 %2208 }
 0xf2e   :  { %4665 = vrsqrt.f32 %v2215_v20  ;;  %v2216_v26 = vadd.f32 1e-05, %v2212_v24  ;;  %v2213_v27 = vmul.f32 0.03125, %v2209_v23 }
 0xf30   :  { %4667 = vrsqrt.f32 %v2216_v26  ;;  %v2217_v39 = vadd.f32 1e-05, %v2213_v27 }
 0xf32   :  { %4669 = vrsqrt.f32 %v2217_v39 }
 0xf36   :  { %v4664_v22 = vpop.eup %4663 }
 0xf37   :  { %v2222_v40 = vmul.f32 %v4664_v22, %v2190_v51 }
 0xf38   :  { %v4666_v19 = vpop.eup %4665 }
 0xf39   :  { %v2223_v25 = vmul.f32 %v4666_v19, %v2191_v55  ;;  %v2232_v37 = vmul.f32 %v3895_v21, %v2222_v40 }
 0xf3a   :  { %v4668_v32 = vpop.eup %4667 }
 0xf3b   :  { %v2224_v17 = vmul.f32 %v4668_v32, %v2192_v62  ;;  %v2233_v29 = vmul.f32 %v3895_v21, %v2223_v25  ;;  %v5381_v46 = vadd.f32 %v3896_v35, %v2232_v37 }
 0xf3c   :  { %v4670_v41 = vpop.eup %4669 }
 0xf3d   :  { %v2234_v42 = vmul.f32 %v3895_v21, %v2224_v17  ;;  %v2225_v44 = vmul.f32 %v4670_v41, %v2193_v2  ;;  %v5383_v47 = vadd.f32 %v3896_v35, %v2233_v29 }
 0xf3f   :  { %v2235_v57 = vmul.f32 %v3895_v21, %v2225_v44  ;;  %v2251_v48 = vpack.c.bf16 %v5383_v47, %v5381_v46  ;;  %v5388_v31 = vadd.f32 %v3896_v35, %v2234_v42 }
 0xf41   :  { %4346 = vmatprep.mubr.msk.bf16.mxu1 %vm86_vm0, %v2251_v48  ;;  %v5390_v59 = vadd.f32 %v3896_v35, %v2235_v57 }
 0xf43   :  { %v2252_v61 = vpack.c.bf16 %v5390_v59, %v5388_v31 }
 0xf45   :  { %4347 = vmatmul.mubr.msk.bf16.vlgmr.msra.gmra.mrb[32].mxu1 %vm86_vm0, %v2252_v61 }
0x1018   :  { %v4348_v28 = vpop.f32.mrb[32].mxu1 }
0x1019   :  { %v2313_v4 = vpop.f32.mrb[33].mxu1  ;;  %v2322_v50 = vadd.f32 %v4348_v28, %v3902_v33 }
0x101a   :  { %v4349_v30 = vpop.f32.mrb[34].mxu1  ;;  %v2314_v53 = vadd.f32 %v3902_v33, %v2313_v4 }
0x101b   :  { %v2325_v51 = vadd.f32 %v4349_v30, %v3902_v33  ;;  %v2316_v52 = vpop.f32.mrb[35].mxu1 }
0x101c   :  { %v2317_v55 = vadd.f32 %v3902_v33, %v2316_v52 }
0x101d   :  { %v5398_v56 = vpack.c.bf16 %v2325_v51, %v2322_v50 }
0x101e   :  { %v5400_v34 = vpack.c.bf16 %v2317_v55, %v2314_v53 }
0x101f   :  { %2339 = vrot.lane.b32.xlu0 %v5398_v56, %s4764_s7 }
0x1020   :  { %2337 = vrot.lane.b32.xlu1 %v5400_v34, %s4764_s7  ;;  %4354 = vmatprep.mubr.msk.bf16.mxu1 %vm948_vm3, %v5400_v34 }
0x1091   :  { %v2340_v49 = vpop.permute.xlu0 %2339 }
0x1092   :  { %v2338_v60 = vpop.permute.xlu1 %2337  ;;  %v2351_v63 = vsel %vm948_vm3, %v2340_v49, 0 }
0x1093   :  { %v2348_v62 = vsel %vm948_vm3, %v2338_v60, 0  ;;  %4542 = vmatprep.subr.msk.bf16.mxu1 %vm948_vm3, %v2338_v60 }
0x1094   :  { %4351 = vmatpush3.bf16.xpose.msra.mxu1 %v2348_v62 }
0x1095   :  { %4543 = vmatprep.subr.msk.bf16.mxu1 %vm948_vm3, %v2340_v49 }
0x109c   :  { %4353 = vmatpush3.bf16.xpose.msra.mxu1 %v2351_v63 }
0x10a3   :  { %4355 = vmatmul.mubr.msk.bf16.vlgmr.msra.gmra.mrb[36].mxu1 %vm948_vm3, %v5398_v56 }
0x1176   :  { %v4356_v0 = vpop.f32.mrb[36].mxu1 }
0x1177   :  { %v2387_v2 = vpop.f32.mrb[37].mxu1  ;;  %v2396_v8 = vadd.f32 %v5423_v7, %v4356_v0 }
0x1178   :  { %v2388_v5 = vadd.f32 %v5417_v3, %v2387_v2  ;;  %v4357_v58 = vpop.f32.mrb[38].mxu1 }
0x1179   :  { %v2390_v6 = vpop.f32.mrb[39].mxu1  ;;  %v2399_v54 = vadd.f32 %v5436_v11, %v4357_v58  ;;  %v2408_v13 = vsel %vm86_vm0, %v2396_v8, -inf }
0x117a   :  { %v2391_v9 = vadd.f32 %v5429_v1, %v2390_v6  ;;  %v2402_v16 = vsel %vm86_vm0, %v2388_v5, -inf }
0x117b   :  { %2403 = vmax.xlane.f32.xlu1 %v2402_v16  ;;  %v2411_v20 = vsel %vm86_vm0, %v2399_v54, -inf }
0x117c   :  { %v2405_v14 = vsel %vm86_vm0, %v2391_v9, -inf }
0x117d   :  { %2406 = vmax.xlane.f32.xlu0 %v2405_v14 }
0x117f   :  { %2409 = vmax.xlane.f32.xlu1 %v2408_v13 }
0x1181   :  { %2412 = vmax.xlane.f32.xlu0 %v2411_v20 }
0x1190   :  { %2448 = vrot.lane.b32.xlu1 %v5400_v34, %s4768_s6 }
0x1208   :  { %v2404_v24 = vpop.xlane.xlu1 %2403 }
0x1209   :  { %v2414_v23 = vsub.f32 %v2388_v5, %v2404_v24 }
0x120a   :  { %v2407_v26 = vpop.xlane.xlu0 %2406 }
0x120b   :  { %v2415_v39 = vsub.f32 %v2391_v9, %v2407_v26  ;;  %v2418_v21 = vmul.f32 1.442695, %v2414_v23 }
0x120c   :  { %v2410_v27 = vpop.xlane.xlu1 %2409 }
0x120d   :  { %v2416_v22 = vsub.f32 %v2396_v8, %v2410_v27  ;;  %v2420_v32 = vmul.f32 1.442695, %v2415_v39 }
0x120e   :  { %v2413_v40 = vpop.xlane.xlu0 %2412 }
0x120f   :  { %v2422_v19 = vmul.f32 1.442695, %v2416_v22  ;;  %v2417_v25 = vsub.f32 %v2399_v54, %v2413_v40 }
0x1210   :  { %v2449_v37 = vpop.permute.xlu1 %2448 }
0x1211   :  { %4671 = vpow2.f32 %v2422_v19  ;;  %v2424_v35 = vmul.f32 1.442695, %v2417_v25  ;;  %4358 = vmatprep.subr.bf16.mxu0 %v2449_v37 }
0x1212   :  { %4673 = vpow2.f32 %v2418_v21  ;;  %4359 = vmatpush3.bf16.msra.mxu0 %v2449_v37 }
0x1213   :  { %4675 = vpow2.f32 %v2424_v35 }
0x1214   :  { %4677 = vpow2.f32 %v2420_v32 }
0x121b   :  { %v4672_v17 = vpop.eup %4671 }
0x121c   :  { %v4674_v29 = vpop.eup %4673  ;;  %v2432_v41 = vsel %vm86_vm0, %v4672_v17, 0.0 }
0x121d   :  { %v4676_v42 = vpop.eup %4675  ;;  %2433 = vadd.xlane.f32.xlu1 %v2432_v41  ;;  %v2426_v48 = vsel %vm86_vm0, %v4674_v29, 0.0 }
0x121e   :  { %v2435_v44 = vsel %vm86_vm0, %v4676_v42, 0.0  ;;  %v4678_v57 = vpop.eup %4677 }
0x121f   :  { %2436 = vadd.xlane.f32.xlu0 %v2435_v44  ;;  %v2429_v61 = vsel %vm86_vm0, %v4678_v57, 0.0 }
0x1221   :  { %2427 = vadd.xlane.f32.xlu1 %v2426_v48 }
0x1223   :  { %2430 = vadd.xlane.f32.xlu0 %v2429_v61 }
0x1232   :  { %2516 = vrot.lane.b32.xlu1 %v5400_v34, %s4763_s3 }
0x1236   :  { %2518 = vrot.lane.b32.xlu1 %v5398_v56, %s4763_s3  ;;  %s5776_s3 = smov 72  }
0x1239   :  { %2450 = vrot.lane.b32.xlu0 %v5398_v56, %s4768_s6 }
0x123a   :  { %2514 = vrot.lane.b32.xlu1 %v5398_v56, %s4765_s4 }
0x123d   :  { %2512 = vrot.lane.b32.xlu0 %v5400_v34, %s4765_s4  ;;  %s5777_s4 = smov 104  }
0x123e   :  { %2813 = vrot.lane.b32.xlu1 %v5398_v56, %s4766_s27 }
0x1241   :  { %2811 = vrot.lane.b32.xlu0 %v5400_v34, %s4766_s27  ;;  %s5778_s27 = smov 48  }
0x1242   :  { %2809 = vrot.lane.b32.xlu1 %v5398_v56, %s4767_s28 }
0x1245   :  { %2807 = vrot.lane.b32.xlu0 %v5400_v34, %s4767_s28 }
0x12aa   :  { %v2434_v28 = vpop.xlane.xlu1 %2433 }
0x12ac   :  { %v2437_v33 = vpop.xlane.xlu0 %2436 }
0x12ad   :  { %4679 = vrcp.f32 %v2437_v33 }
0x12ae   :  { %v2428_v4 = vpop.xlane.xlu1 %2427 }
0x12af   :  { %4681 = vrcp.f32 %v2428_v4 }
0x12b0   :  { %4683 = vrcp.f32 %v2434_v28  ;;  %v2431_v30 = vpop.xlane.xlu0 %2430 }
0x12b1   :  { %4685 = vrcp.f32 %v2431_v30 }
0x12b2   :  { %v2517_v51 = vpop.permute.xlu1 %2516 }
0x12b3   :  { %v2527_v58 = vsel %vm948_vm3, %v2517_v51, 0 }
0x12b4   :  { %v2451_v50 = vpop.permute.xlu0 %2450 }
0x12b5   :  { %4360 = vmatprep.subr.bf16.mxu0 %v2451_v50 }
0x12b6   :  { %4361 = vmatpush3.bf16.msra.mxu0 %v2451_v50  ;;  %v2519_v8 = vpop.permute.xlu1 %2518 }
0x12b7   :  { %4544 = vmatprep.subr.msk.bf16.mxu0 %vm948_vm3, %v2517_v51  ;;  %v4680_v52 = vpop.eup %4679  ;;  %v2530_v9 = vsel %vm948_vm3, %v2519_v8, 0 }
0x12b8   :  { %v2445_v62 = vmul.f32 %v4680_v52, %v4676_v42  ;;  %v2513_v6 = vpop.permute.xlu0 %2512 }
0x12b9   :  { %v4682_v53 = vpop.eup %4681 }
0x12ba   :  { %v4684_v55 = vpop.eup %4683  ;;  %v2442_v49 = vmul.f32 %v4682_v53, %v4674_v29  ;;  %v2515_v54 = vpop.permute.xlu1 %2514 }
0x12bb   :  { %v4686_v60 = vpop.eup %4685  ;;  %v2444_v0 = vmul.f32 %v4684_v55, %v4672_v17 }
0x12bc   :  { %v2443_v63 = vmul.f32 %v4686_v60, %v4678_v57  ;;  %v2812_v16 = vpop.permute.xlu0 %2811 }
0x12bd   :  { %v2447_v5 = vpack.c.bf16 %v2445_v62, %v2444_v0  ;;  %v2822_v14 = vsel %vm948_vm3, %v2812_v16, 0 }
0x12be   :  { %v2446_v2 = vpack.c.bf16 %v2443_v63, %v2442_v49  ;;  %v2814_v20 = vpop.permute.xlu1 %2813 }
0x12bf   :  { %v2825_v24 = vsel %vm948_vm3, %v2814_v20, 0 }
0x12c0   :  { %4362 = vmatprep.mubr.msk.bf16.mxu0 %vm86_vm0, %v2446_v2  ;;  %v2808_v13 = vpop.permute.xlu0 %2807 }
0x12c1   :  { %4363 = vmatmul.mubr.msk.bf16.vlgmr.msra.gmra.mrb[40].mxu0 %vm86_vm0, %v2447_v5 }
0x12c2   :  { %4367 = vmatpush3.bf16.xpose.msra.mxu0 %v2527_v58  ;;  %4370 = vmatprep.mubr.msk.bf16.mxu0 %vm948_vm3, %v2513_v6  ;;  %v2810_v23 = vpop.permute.xlu1 %2809 }
0x12c3   :  { %4545 = vmatprep.subr.msk.bf16.mxu0 %vm948_vm3, %v2519_v8 }
0x12ca   :  { %4369 = vmatpush3.bf16.xpose.msra.mxu0 %v2530_v9 }
0x12cb   :  { %4548 = vmatprep.subr.msk.bf16.mxu0 %vm948_vm3, %v2812_v16 }
0x12d1   :  { %4371 = vmatmul.mubr.msk.bf16.vlgmr.msra.gmra.mrb[44].mxu0 %vm948_vm3, %v2515_v54 }
0x12d2   :  { %4395 = vmatpush3.bf16.xpose.msra.mxu0 %v2822_v14  ;;  %4398 = vmatprep.mubr.msk.bf16.mxu0 %vm948_vm3, %v2808_v13 }
0x12d3   :  { %4549 = vmatprep.subr.msk.bf16.mxu0 %vm948_vm3, %v2814_v20 }
0x12da   :  { %4397 = vmatpush3.bf16.xpose.msra.mxu0 %v2825_v24 }
0x12e1   :  { %4399 = vmatmul.mubr.msk.bf16.vlgmr.msra.gmra.mrb[48].mxu0 %vm948_vm3, %v2810_v23 }
0x1394   :  { %v5480_v26 = vpop.f32.mrb[40].mxu0 }
0x1395   :  { %v5482_v27 = vpop.f32.mrb[41].mxu0 }
0x1396   :  { %v5484_v39 = vpop.f32.mrb[42].mxu0 }
0x1397   :  { %v2510_v22 = vpack.c.bf16 %v5484_v39, %v5480_v26  ;;  %v5488_v21 = vpop.f32.mrb[43].mxu0  ;;  %v3909_v26 = vld [vmem:[%s5724_s10 + $0x30] sm:$0xff] }
0x1398   :  { %v2509_v40 = vpack.c.bf16 %v5488_v21, %v5482_v27  ;;  %v2985_v39 = vpack.c.bf16 %v3909_v26, %v3909_v26 }
0x13a4   :  { %v4372_v19 = vpop.f32.mrb[44].mxu0 }
0x13a5   :  { %v2566_v25 = vpop.f32.mrb[45].mxu0  ;;  %v2575_v17 = vadd.f32 %v5423_v7, %v4372_v19 }
0x13a6   :  { %v2567_v37 = vadd.f32 %v5417_v3, %v2566_v25  ;;  %v4373_v32 = vpop.f32.mrb[46].mxu0 }
0x13a7   :  { %v2569_v35 = vpop.f32.mrb[47].mxu0  ;;  %v2578_v44 = vadd.f32 %v5436_v11, %v4373_v32  ;;  %v2587_v57 = vsel %vm86_vm0, %v2575_v17, -inf }
0x13a8   :  { %v2570_v29 = vadd.f32 %v5429_v1, %v2569_v35  ;;  %v2581_v41 = vsel %vm86_vm0, %v2567_v37, -inf }
0x13a9   :  { %2582 = vmax.xlane.f32.xlu0 %v2581_v41  ;;  %v2590_v48 = vsel %vm86_vm0, %v2578_v44, -inf }
0x13aa   :  { %v2584_v42 = vsel %vm86_vm0, %v2570_v29, -inf }
0x13ab   :  { %2585 = vmax.xlane.f32.xlu1 %v2584_v42 }
0x13ad   :  { %2588 = vmax.xlane.f32.xlu0 %v2587_v57 }
0x13b1   :  { %2591 = vmax.xlane.f32.xlu0 %v2590_v48 }
0x13b4   :  { %v4400_v61 = vpop.f32.mrb[48].mxu0 }
0x13b5   :  { %v2861_v28 = vpop.f32.mrb[49].mxu0  ;;  %v2870_v20 = vadd.f32 %v5423_v7, %v4400_v61 }
0x13b6   :  { %v4401_v33 = vpop.f32.mrb[50].mxu0  ;;  %v2862_v13 = vadd.f32 %v5417_v3, %v2861_v28 }
0x13b7   :  { %v2864_v4 = vpop.f32.mrb[51].mxu0  ;;  %v2873_v19 = vadd.f32 %v5436_v11, %v4401_v33 }
0x13b8   :  { %v2865_v24 = vadd.f32 %v5429_v1, %v2864_v4  ;;  %v2876_v23 = vsel %vm86_vm0, %v2862_v13, -inf }
0x13b9   :  { %v2885_v32 = vsel %vm86_vm0, %v2873_v19, -inf }
0x13ba   :  { %v2879_v25 = vsel %vm86_vm0, %v2865_v24, -inf }
0x1436   :  { %v2583_v30 = vpop.xlane.xlu0 %2582 }
0x1437   :  { %v2593_v50 = vsub.f32 %v2567_v37, %v2583_v30  ;;  %v2882_v37 = vsel %vm86_vm0, %v2870_v20, -inf }
0x1438   :  { %v2586_v51 = vpop.xlane.xlu1 %2585 }
0x1439   :  { %v2597_v55 = vmul.f32 1.442695, %v2593_v50  ;;  %v2594_v60 = vsub.f32 %v2570_v29, %v2586_v51 }
0x143a   :  { %v2589_v52 = vpop.xlane.xlu0 %2588 }
0x143b   :  { %v2595_v53 = vsub.f32 %v2575_v17, %v2589_v52  ;;  %v2599_v0 = vmul.f32 1.442695, %v2594_v60 }
0x143d   :  { %v2601_v62 = vmul.f32 1.442695, %v2595_v53 }
0x143e   :  { %v2592_v49 = vpop.xlane.xlu0 %2591 }
0x143f   :  { %4687 = vpow2.f32 %v2601_v62  ;;  %v2596_v63 = vsub.f32 %v2578_v44, %v2592_v49 }
0x1440   :  { %4689 = vpow2.f32 %v2597_v55 }
0x1441   :  { %v2603_v2 = vmul.f32 1.442695, %v2596_v63 }
0x1443   :  { %4691 = vpow2.f32 %v2603_v2 }
0x1444   :  { %4693 = vpow2.f32 %v2599_v0 }
0x1449   :  { %v4688_v5 = vpop.eup %4687 }
0x144a   :  { %v2611_v58 = vsel %vm86_vm0, %v4688_v5, 0.0  ;;  %v4690_v6 = vpop.eup %4689 }
0x144b   :  { %2612 = vadd.xlane.f32.xlu1 %v2611_v58  ;;  %v2605_v9 = vsel %vm86_vm0, %v4690_v6, 0.0 }
0x144d   :  { %v4692_v8 = vpop.eup %4691 }
0x144e   :  { %v2614_v16 = vsel %vm86_vm0, %v4692_v8, 0.0  ;;  %v4694_v54 = vpop.eup %4693 }
0x144f   :  { %2606 = vadd.xlane.f32.xlu1 %v2605_v9  ;;  %2615 = vadd.xlane.f32.xlu0 %v2614_v16  ;;  %v2608_v14 = vsel %vm86_vm0, %v4694_v54, 0.0 }
0x1453   :  { %2609 = vadd.xlane.f32.xlu0 %v2608_v14 }
0x1460   :  { %2627 = vrot.lane.b32.xlu1 %v5400_v34, %s5775_s5 }
0x1464   :  { %3052 = vrot.lane.b32.xlu1 %v5400_v34, %s5776_s3 }
0x1468   :  { %3054 = vrot.lane.b32.xlu1 %v5398_v56, %s5776_s3 }
0x1469   :  { %2629 = vrot.lane.b32.xlu0 %v5398_v56, %s5775_s5 }
0x146c   :  { %3050 = vrot.lane.b32.xlu1 %v5398_v56, %s5777_s4 }
0x146d   :  { %3048 = vrot.lane.b32.xlu0 %v5400_v34, %s5777_s4 }
0x148c   :  { %2877 = vmax.xlane.f32.xlu0 %v2876_v23 }
0x1490   :  { %2880 = vmax.xlane.f32.xlu1 %v2879_v25  ;;  %2883 = vmax.xlane.f32.xlu0 %v2882_v37 }
0x1494   :  { %2886 = vmax.xlane.f32.xlu0 %v2885_v32 }
0x14d8   :  { %v2613_v35 = vpop.xlane.xlu1 %2612 }
0x14dc   :  { %v2616_v17 = vpop.xlane.xlu0 %2615  ;;  %v2607_v29 = vpop.xlane.xlu1 %2606 }
0x14dd   :  { %4695 = vrcp.f32 %v2616_v17 }
0x14de   :  { %4697 = vrcp.f32 %v2607_v29  ;;  %v3908_v29 = vld [vmem:[%s5724_s10 + $0x28] sm:$0xff] }
0x14df   :  { %4699 = vrcp.f32 %v2613_v35 }
0x14e0   :  { %v2610_v41 = vpop.xlane.xlu0 %2609  ;;  %v2628_v42 = vpop.permute.xlu1 %2627 }
0x14e1   :  { %4701 = vrcp.f32 %v2610_v41  ;;  %4374 = vmatprep.subr.bf16.mxu1 %v2628_v42  ;;  %v2690_v41 = vpack.c.bf16 %v3908_v29, %v3908_v29 }
0x14e2   :  { %4375 = vmatpush3.bf16.msra.mxu1 %v2628_v42 }
0x14e3   :  { %v2698_v42 = vsel %vm442_vm1, %v2690_v41, 0 }
0x14e4   :  { %v2630_v44 = vpop.permute.xlu0 %2629  ;;  %v3053_v57 = vpop.permute.xlu1 %3052 }
0x14e5   :  { %v3063_v48 = vsel %vm948_vm3, %v3053_v57, 0  ;;  %4376 = vmatprep.subr.bf16.mxu1 %v2630_v44  ;;  %4551 = vmatprep.subr.msk.bf16.mxu0 %vm948_vm3, %v3053_v57 }
0x14e6   :  { %4377 = vmatpush3.bf16.msra.mxu1 %v2630_v44  ;;  %4417 = vmatpush3.bf16.xpose.msra.mxu0 %v3063_v48  ;;  %v3907_v44 = vld [vmem:[%s5724_s10 + $0x20] sm:$0xff] }
0x14e7   :  { %v4696_v61 = vpop.eup %4695  ;;  %4546 = vmatprep.subr.msk.bf16.mxu1 %vm442_vm1, %v2690_v41  ;;  %v2511_v57 = vpack.c.bf16 %v3907_v44, %v3907_v44 }
0x14e8   :  { %v3049_v28 = vpop.permute.xlu0 %3048  ;;  %v3055_v33 = vpop.permute.xlu1 %3054  ;;  %v2624_v51 = vmul.f32 %v4696_v61, %v4692_v8 }
0x14e9   :  { %v4698_v4 = vpop.eup %4697  ;;  %4552 = vmatprep.subr.msk.bf16.mxu0 %vm948_vm3, %v3055_v33  ;;  %4420 = vmatprep.mubr.msk.bf16.mxu0 %vm948_vm3, %v3049_v28  ;;  %v3066_v60 = vsel %vm948_vm3, %v3055_v33, 0 }
0x14ea   :  { %v4700_v30 = vpop.eup %4699  ;;  %v2621_v52 = vmul.f32 %v4698_v4, %v4690_v6 }
0x14eb   :  { %v4702_v50 = vpop.eup %4701  ;;  %v2623_v55 = vmul.f32 %v4700_v30, %v4688_v5 }
0x14ec   :  { %v2622_v53 = vmul.f32 %v4702_v50, %v4694_v54  ;;  %v3051_v63 = vpop.permute.xlu1 %3050 }
0x14ed   :  { %v2626_v49 = vpack.c.bf16 %v2624_v51, %v2623_v55 }
0x14ee   :  { %4419 = vmatpush3.bf16.xpose.msra.mxu0 %v3066_v60  ;;  %v2625_v62 = vpack.c.bf16 %v2622_v53, %v2621_v52 }
0x14f0   :  { %4378 = vmatprep.mubr.msk.bf16.mxu1 %vm86_vm0, %v2625_v62  ;;  %v2756_v62 = vsel %vm442_vm1, %v2511_v57, 0 }
0x14f1   :  { %4379 = vmatmul.mubr.msk.bf16.vlgmr.msra.gmra.mrb[40].mxu1 %vm86_vm0, %v2626_v49 }
0x14f2   :  { %4383 = vmatpush3.bf16.msra.mxu1 %v2698_v42 }
0x14f3   :  { %4547 = vmatprep.subr.msk.bf16.mxu1 %vm442_vm1, %v2511_v57 }
0x14f5   :  { %4421 = vmatmul.mubr.msk.bf16.vlgmr.msra.gmra.mrb[52].mxu0 %vm948_vm3, %v3051_v63 }
0x1519   :  { %v2878_v0 = vpop.xlane.xlu0 %2877 }
0x151a   :  { %v2888_v2 = vsub.f32 %v2862_v13, %v2878_v0 }
0x151c   :  { %v2892_v6 = vmul.f32 1.442695, %v2888_v2 }
0x151d   :  { %v2884_v58 = vpop.xlane.xlu0 %2883  ;;  %v2881_v9 = vpop.xlane.xlu1 %2880 }
0x151e   :  { %v2890_v8 = vsub.f32 %v2870_v20, %v2884_v58  ;;  %v2889_v5 = vsub.f32 %v2865_v24, %v2881_v9 }
0x1520   :  { %v2896_v16 = vmul.f32 1.442695, %v2890_v8  ;;  %v2894_v23 = vmul.f32 1.442695, %v2889_v5 }
0x1521   :  { %v2887_v54 = vpop.xlane.xlu0 %2886 }
0x1522   :  { %4703 = vpow2.f32 %v2896_v16  ;;  %v2891_v14 = vsub.f32 %v2873_v19, %v2887_v54 }
0x1523   :  { %4705 = vpow2.f32 %v2892_v6 }
0x1524   :  { %v2898_v25 = vmul.f32 1.442695, %v2891_v14 }
0x1526   :  { %4707 = vpow2.f32 %v2898_v25 }
0x1527   :  { %4709 = vpow2.f32 %v2894_v23 }
0x152c   :  { %v5532_v37 = vpop.eup %4703 }
0x152d   :  { %v2906_v32 = vsel %vm86_vm0, %v5532_v37, 0.0  ;;  %v4706_v13 = vpop.eup %4705 }
0x152e   :  { %2907 = vadd.xlane.f32.xlu1 %v2906_v32  ;;  %v2900_v20 = vsel %vm86_vm0, %v4706_v13, 0.0 }
0x1530   :  { %v5536_v35 = vpop.eup %4707 }
0x1531   :  { %v2909_v24 = vsel %vm86_vm0, %v5536_v35, 0.0  ;;  %v4710_v19 = vpop.eup %4709 }
0x1532   :  { %2901 = vadd.xlane.f32.xlu1 %v2900_v20  ;;  %2910 = vadd.xlane.f32.xlu0 %v2909_v24  ;;  %v2903_v17 = vsel %vm86_vm0, %v4710_v19, 0.0 }
0x1536   :  { %2904 = vadd.xlane.f32.xlu0 %v2903_v17 }
0x1543   :  { %2922 = vrot.lane.b32.xlu1 %v5400_v34, %s5778_s27 }
0x154c   :  { %2924 = vrot.lane.b32.xlu0 %v5398_v56, %s5778_s27 }
0x15bb   :  { %v2908_v48 = vpop.xlane.xlu1 %2907 }
0x15bf   :  { %v2911_v61 = vpop.xlane.xlu0 %2910  ;;  %v2902_v33 = vpop.xlane.xlu1 %2901 }
0x15c3   :  { %v2905_v28 = vpop.xlane.xlu0 %2904  ;;  %v2923_v2 = vpop.permute.xlu1 %2922 }
0x15c4   :  { %v4380_v4 = vpop.f32.mrb[40].mxu1  ;;  %4711 = vrcp.f32 %v2905_v28 }
0x15c5   :  { %v2673_v30 = vpop.f32.mrb[41].mxu1  ;;  %4713 = vrcp.f32 %v2902_v33 }
0x15c6   :  { %v4381_v50 = vpop.f32.mrb[42].mxu1  ;;  %4715 = vrcp.f32 %v2911_v61 }
0x15c7   :  { %v2689_v51 = vpack.c.bf16 %v4381_v50, %v4380_v4  ;;  %v2676_v52 = vpop.f32.mrb[43].mxu1  ;;  %4717 = vrcp.f32 %v2908_v48  ;;  %v2925_v14 = vpop.permute.xlu0 %2924 }
0x15c8   :  { %v2688_v53 = vpack.c.bf16 %v2676_v52, %v2673_v30  ;;  %v4422_v55 = vpop.f32.mrb[52].mxu0 }
0x15c9   :  { %v3102_v60 = vpop.f32.mrb[53].mxu0  ;;  %v3111_v58 = vadd.f32 %v5423_v7, %v4422_v55 }
0x15ca   :  { %v3103_v49 = vadd.f32 %v5417_v3, %v3102_v60  ;;  %4384 = vmatprep.mubr.msk.bf16.mxu1 %vm948_vm3, %v2688_v53  ;;  %v4423_v63 = vpop.f32.mrb[54].mxu0 }
0x15cb   :  { %4385 = vmatmul.mubr.msk.bf16.vlgmr.msra.gmra.mrb[44].mxu1 %vm948_vm3, %v2689_v51  ;;  %v3105_v0 = vpop.f32.mrb[55].mxu0  ;;  %v3114_v8 = vadd.f32 %v5436_v11, %v4423_v63  ;;  %v3123_v7 = vsel %vm86_vm0, %v3111_v58, -inf }
0x15cc   :  { %4389 = vmatpush3.bf16.msra.mxu1 %v2756_v62  ;;  %v3106_v9 = vadd.f32 %v5429_v1, %v3105_v0  ;;  %4390 = vmatprep.mubr.msk.bf16.mxu1 %vm948_vm3, %v2509_v40  ;;  %v3117_v3 = vsel %vm86_vm0, %v3103_v49, -inf }
0x15cd   :  { %4402 = vmatprep.subr.bf16.mxu1 %v2923_v2  ;;  %3118 = vmax.xlane.f32.xlu1 %v3117_v3  ;;  %v3126_v1 = vsel %vm86_vm0, %v3114_v8, -inf }
0x15ce   :  { %v3120_v6 = vsel %vm86_vm0, %v3106_v9, -inf  ;;  %v4712_v16 = vpop.eup %4711 }
0x15cf   :  { %3121 = vmax.xlane.f32.xlu0 %v3120_v6  ;;  %v4714_v5 = vpop.eup %4713  ;;  %v2917_v27 = vmul.f32 %v4712_v16, %v4710_v19 }
0x15d0   :  { %v2916_v21 = vmul.f32 %v4714_v5, %v4706_v13  ;;  %v4716_v40 = vpop.eup %4715 }
0x15d1   :  { %3124 = vmax.xlane.f32.xlu1 %v3123_v7  ;;  %v4718_v11 = vpop.eup %4717  ;;  %v2919_v23 = vmul.f32 %v4716_v40, %v5536_v35 }
0x15d2   :  { %v2920_v54 = vpack.c.bf16 %v2917_v27, %v2916_v21  ;;  %v2918_v25 = vmul.f32 %v4718_v11, %v5532_v37 }
0x15d3   :  { %3127 = vmax.xlane.f32.xlu0 %v3126_v1 }
0x15d4   :  { %v2921_v32 = vpack.c.bf16 %v2919_v23, %v2918_v25 }
0x15d7   :  { %4391 = vmatmul.mubr.msk.bf16.vlgmr.msra.gmra.mrb[44].mxu1 %vm948_vm3, %v2510_v22  ;;  %v2993_v22 = vsel %vm442_vm1, %v2985_v39, 0 }
0x15d8   :  { %4403 = vmatpush3.bf16.msra.mxu1 %v2923_v2  ;;  %4406 = vmatprep.mubr.msk.bf16.mxu1 %vm86_vm0, %v2920_v54 }
0x15d9   :  { %4404 = vmatprep.subr.bf16.mxu1 %v2925_v14 }
0x15dc   :  { %4405 = vmatpush3.bf16.msra.mxu1 %v2925_v14 }
0x15dd   :  { %4550 = vmatprep.subr.msk.bf16.mxu1 %vm442_vm1, %v2985_v39 }
0x15df   :  { %4407 = vmatmul.mubr.msk.bf16.vlgmr.msra.gmra.mrb[48].mxu1 %vm86_vm0, %v2921_v32 }
0x15e0   :  { %4411 = vmatpush3.bf16.msra.mxu1 %v2993_v22  ;;  %v3936_v22 = vld [vmem:[%s5725_s11 + $0x1] ss:$0 sm:$0xff] }
0x165a   :  { %v3119_v13 = vpop.xlane.xlu1 %3118 }
0x165b   :  { %v3129_v20 = vsub.f32 %v3103_v49, %v3119_v13 }
0x165c   :  { %v3122_v35 = vpop.xlane.xlu0 %3121 }
0x165d   :  { %v3130_v19 = vsub.f32 %v3106_v9, %v3122_v35  ;;  %v3133_v17 = vmul.f32 1.442695, %v3129_v20 }
0x165e   :  { %v3125_v24 = vpop.xlane.xlu1 %3124 }
0x165f   :  { %v3131_v37 = vsub.f32 %v3111_v58, %v3125_v24  ;;  %v3135_v44 = vmul.f32 1.442695, %v3130_v19 }
0x1660   :  { %v3128_v29 = vpop.xlane.xlu0 %3127 }
0x1661   :  { %v3137_v41 = vmul.f32 1.442695, %v3131_v37  ;;  %v3132_v42 = vsub.f32 %v3114_v8, %v3128_v29 }
0x1663   :  { %4719 = vpow2.f32 %v3137_v41  ;;  %v3139_v57 = vmul.f32 1.442695, %v3132_v42 }
0x1664   :  { %4721 = vpow2.f32 %v3133_v17 }
0x1665   :  { %4723 = vpow2.f32 %v3139_v57 }
0x1666   :  { %4725 = vpow2.f32 %v3135_v44 }
0x166d   :  { %v4720_v48 = vpop.eup %4719 }
0x166e   :  { %v4722_v61 = vpop.eup %4721  ;;  %v3147_v28 = vsel %vm86_vm0, %v4720_v48, 0.0 }
0x166f   :  { %v4724_v33 = vpop.eup %4723  ;;  %3148 = vadd.xlane.f32.xlu1 %v3147_v28  ;;  %v3141_v50 = vsel %vm86_vm0, %v4722_v61, 0.0 }
0x1670   :  { %v3150_v4 = vsel %vm86_vm0, %v4724_v33, 0.0  ;;  %v4726_v30 = vpop.eup %4725 }
0x1671   :  { %3151 = vadd.xlane.f32.xlu0 %v3150_v4  ;;  %v3144_v51 = vsel %vm86_vm0, %v4726_v30, 0.0 }
0x1673   :  { %3142 = vadd.xlane.f32.xlu1 %v3141_v50 }
0x1675   :  { %3145 = vadd.xlane.f32.xlu0 %v3144_v51 }
0x1684   :  { %3163 = vrot.lane.b32.xlu1 %v5400_v34, %s5779_s30 }
0x168b   :  { %3165 = vrot.lane.b32.xlu0 %v5398_v56, %s5779_s30  ;;  %v3910_v56 = vld [vmem:[%s5724_s10 + $0x38] sm:$0xff] }
0x168c   :  { %v3226_v3 = vpack.c.bf16 %v3910_v56, %v3910_v56 }
0x168e   :  { %v3234_v11 = vsel %vm442_vm1, %v3226_v3, 0 }
0x16b2   :  { %v4408_v52 = vpop.f32.mrb[48].mxu1 }
0x16b3   :  { %v2968_v53 = vpop.f32.mrb[49].mxu1 }
0x16b4   :  { %v4409_v55 = vpop.f32.mrb[50].mxu1 }
0x16b5   :  { %v2984_v60 = vpack.c.bf16 %v4409_v55, %v4408_v52  ;;  %v2971_v62 = vpop.f32.mrb[51].mxu1 }
0x16b6   :  { %v2983_v49 = vpack.c.bf16 %v2971_v62, %v2968_v53 }
0x16b8   :  { %4412 = vmatprep.mubr.msk.bf16.mxu1 %vm948_vm3, %v2983_v49 }
0x16b9   :  { %4413 = vmatmul.mubr.msk.bf16.vlgmr.msra.gmra.mrb[44].mxu1 %vm948_vm3, %v2984_v60 }
0x16fc   :  { %v3149_v63 = vpop.xlane.xlu1 %3148 }
0x16fe   :  { %v3152_v0 = vpop.xlane.xlu0 %3151 }
0x16ff   :  { %4727 = vrcp.f32 %v3152_v0 }
0x1700   :  { %v3143_v2 = vpop.xlane.xlu1 %3142 }
0x1701   :  { %4729 = vrcp.f32 %v3143_v2 }
0x1702   :  { %4731 = vrcp.f32 %v3149_v63  ;;  %v3146_v34 = vpop.xlane.xlu0 %3145 }
0x1703   :  { %4733 = vrcp.f32 %v3146_v34 }
0x1704   :  { %v3164_v58 = vpop.permute.xlu1 %3163 }
0x1705   :  { %4424 = vmatprep.subr.bf16.mxu1 %v3164_v58 }
0x1706   :  { %v3166_v9 = vpop.permute.xlu0 %3165  ;;  %4425 = vmatpush3.bf16.msra.mxu1 %v3164_v58 }
0x1707   :  { %4426 = vmatprep.subr.bf16.mxu1 %v3166_v9 }
0x1709   :  { %v4728_v8 = vpop.eup %4727 }
0x170a   :  { %4427 = vmatpush3.bf16.msra.mxu1 %v3166_v9  ;;  %v3160_v5 = vmul.f32 %v4728_v8, %v4724_v33  ;;  %v4575_v9 = vld [vmem:[%s5726_s14 + $0x10] sm:$0xff]   ;;  %v4577_v8 = vld [vmem:[%s5727_s16 + $0x20] sm:$0xff]  }
0x170b   :  { %v4730_v6 = vpop.eup %4729  ;;  %4553 = vmatprep.subr.msk.bf16.mxu1 %vm442_vm1, %v3226_v3  ;;  %4438 = vmatprep.subr.bf16.mxu0 %v4575_v9  ;;  %v4576_v3 = vld [vmem:[%s5726_s14 + $0x18] sm:$0xff]  }
0x170c   :  { %v4732_v16 = vpop.eup %4731  ;;  %v3157_v1 = vmul.f32 %v4730_v6, %v4722_v61  ;;  %4439 = vmatpush3.bf16.msra.mxu0 %v4575_v9 }
0x170d   :  { %v4734_v7 = vpop.eup %4733  ;;  %v3159_v21 = vmul.f32 %v4732_v16, %v4720_v48  ;;  %4440 = vmatprep.subr.bf16.mxu0 %v4576_v3 }
0x170e   :  { %v3158_v27 = vmul.f32 %v4734_v7, %v4726_v30 }
0x170f   :  { %v3162_v54 = vpack.c.bf16 %v3160_v5, %v3159_v21 }
0x1710   :  { %v3161_v40 = vpack.c.bf16 %v3158_v27, %v3157_v1  ;;  %4441 = vmatpush3.bf16.msra.mxu0 %v4576_v3 }
0x1711   :  { %4446 = vmatprep.subr.bf16.mxu0 %v4577_v8 }
0x1712   :  { %4428 = vmatprep.mubr.msk.bf16.mxu1 %vm86_vm0, %v3161_v40 }
0x1713   :  { %4429 = vmatmul.mubr.msk.bf16.vlgmr.msra.gmra.mrb[52].mxu1 %vm86_vm0, %v3162_v54 }
0x1714   :  { %4433 = vmatpush3.bf16.msra.mxu1 %v3234_v11 }
0x17e6   :  { %v4430_v14 = vpop.f32.mrb[52].mxu1 }
0x17e7   :  { %v3209_v23 = vpop.f32.mrb[53].mxu1 }
0x17e8   :  { %v4431_v25 = vpop.f32.mrb[54].mxu1 }
0x17e9   :  { %v3225_v32 = vpack.c.bf16 %v4431_v25, %v4430_v14  ;;  %v3212_v26 = vpop.f32.mrb[55].mxu1 }
0x17ea   :  { %v3224_v39 = vpack.c.bf16 %v3212_v26, %v3209_v23 }
0x17ec   :  { %4434 = vmatprep.mubr.msk.bf16.mxu1 %vm948_vm3, %v3224_v39 }
0x17ed   :  { %4435 = vmatmul.mubr.msk.bf16.vlgmr.msra.gmra.mrb[44].mxu1 %vm948_vm3, %v3225_v32  ;;  %v3939_v32 = vld [vmem:[%s5728_s12 + $0x1] ss:$0 sm:$0xff] }
0x18c0   :  { %v4436_v13 = vpop.f32.mrb[44].mxu1 }
0x18c1   :  { %v3270_v20 = vpop.f32.mrb[45].mxu1  ;;  %v3299_v35 = vadd.f32 %v4436_v13, %v3936_v22 }
0x18c2   :  { %v3297_v24 = vadd.f32 %v3936_v22, %v3270_v20  ;;  %v4437_v19 = vpop.f32.mrb[46].mxu1 }
0x18c3   :  { %v3273_v37 = vpop.f32.mrb[47].mxu1  ;;  %v3300_v29 = vadd.f32 %v4437_v19, %v3936_v22  ;;  %v3303_v42 = vadd.f32 %v3299_v35, %v5388_v31  ;;  %v3940_v35 = vld [vmem:[%s5729_s13 + $0x1] ss:$0 sm:$0xff] }
0x18c4   :  { %v3301_v17 = vadd.f32 %v3297_v24, %v5381_v46  ;;  %v3298_v41 = vadd.f32 %v3936_v22, %v3273_v37 }
0x18c5   :  { %v3304_v48 = vadd.f32 %v3300_v29, %v5390_v59  ;;  %v3315_v28 = vsel %vm86_vm0, %v3303_v42, 0.0 }
0x18c6   :  { %v3302_v44 = vadd.f32 %v3298_v41, %v5383_v47  ;;  %v3309_v57 = vsel %vm86_vm0, %v3301_v17, 0.0 }
0x18c7   :  { %3310 = vadd.xlane.f32.xlu1 %v3309_v57  ;;  %v3318_v33 = vsel %vm86_vm0, %v3304_v48, 0.0 }
0x18c8   :  { %v3312_v61 = vsel %vm86_vm0, %v3302_v44, 0.0 }
0x18c9   :  { %3313 = vadd.xlane.f32.xlu0 %v3312_v61 }
0x18cb   :  { %3316 = vadd.xlane.f32.xlu1 %v3315_v28 }
0x18cd   :  { %3319 = vadd.xlane.f32.xlu0 %v3318_v33  ;;  %v4578_v33 = vld [vmem:[%s5727_s16 + $0x28] sm:$0xff]  }
0x1954   :  { %v3311_v46 = vpop.xlane.xlu1 %3310 }
0x1955   :  { %v3321_v4 = vmul.f32 0.03125, %v3311_v46  ;;  %v4579_v46 = vld [vmem:[%s5727_s16 + $0x30] sm:$0xff]  }
0x1956   :  { %v3314_v30 = vpop.xlane.xlu0 %3313 }
0x1957   :  { %v3325_v31 = vsub.f32 %v3301_v17, %v3321_v4  ;;  %v3322_v50 = vmul.f32 0.03125, %v3314_v30  ;;  %v4580_v4 = vld [vmem:[%s5727_s16 + $0x38] sm:$0xff]   ;;  %v3946_v30 = vld [vmem:[%s5730_s15 + $0x1] ss:$0 sm:$0xff] }
0x1958   :  { %v3317_v47 = vpop.xlane.xlu1 %3316 }
0x1959   :  { %v3326_v51 = vsub.f32 %v3302_v44, %v3322_v50  ;;  %v3323_v52 = vmul.f32 0.03125, %v3317_v47  ;;  %v3329_v53 = vmul.f32 %v3325_v31, %v3325_v31 }
0x195a   :  { %v3320_v55 = vpop.xlane.xlu0 %3319 }
0x195b   :  { %v3327_v59 = vsub.f32 %v3303_v42, %v3323_v52  ;;  %v3324_v60 = vmul.f32 0.03125, %v3320_v55  ;;  %v3333_v62 = vsel %vm86_vm0, %v3329_v53, 0.0  ;;  %v3330_v49 = vmul.f32 %v3326_v51, %v3326_v51 }
0x195c   :  { %3334 = vadd.xlane.f32.xlu1 %v3333_v62 }
0x195d   :  { %v3328_v63 = vsub.f32 %v3304_v48, %v3324_v60  ;;  %v3336_v0 = vsel %vm86_vm0, %v3330_v49, 0.0  ;;  %v3331_v2 = vmul.f32 %v3327_v59, %v3327_v59 }
0x195e   :  { %3337 = vadd.xlane.f32.xlu0 %v3336_v0 }
0x195f   :  { %v3339_v34 = vsel %vm86_vm0, %v3331_v2, 0.0  ;;  %v3332_v58 = vmul.f32 %v3328_v63, %v3328_v63 }
0x1960   :  { %3340 = vadd.xlane.f32.xlu1 %v3339_v34  ;;  %v3960_v34 = vld [vmem:[%s5731_s17 + $0x1] ss:$0 sm:$0xff] }
0x1961   :  { %v3342_v56 = vsel %vm86_vm0, %v3332_v58, 0.0 }
0x1962   :  { %3343 = vadd.xlane.f32.xlu0 %v3342_v56 }
0x19e9   :  { %v3335_v6 = vpop.xlane.xlu1 %3334 }
0x19ea   :  { %v3345_v16 = vmul.f32 0.03125, %v3335_v6 }
0x19eb   :  { %v3338_v7 = vpop.xlane.xlu0 %3337 }
0x19ec   :  { %v3349_v5 = vadd.f32 1e-05, %v3345_v16  ;;  %v3346_v1 = vmul.f32 0.03125, %v3338_v7 }
0x19ed   :  { %v3341_v27 = vpop.xlane.xlu1 %3340 }
0x19ee   :  { %4735 = vrsqrt.f32 %v3349_v5  ;;  %v3350_v21 = vadd.f32 1e-05, %v3346_v1  ;;  %v3347_v40 = vmul.f32 0.03125, %v3341_v27 }
0x19ef   :  { %v3344_v54 = vpop.xlane.xlu0 %3343 }
0x19f0   :  { %4737 = vrsqrt.f32 %v3350_v21  ;;  %v3351_v11 = vadd.f32 1e-05, %v3347_v40  ;;  %v3348_v14 = vmul.f32 0.03125, %v3344_v54 }
0x19f2   :  { %4739 = vrsqrt.f32 %v3351_v11  ;;  %v3352_v23 = vadd.f32 1e-05, %v3348_v14 }
0x19f4   :  { %4741 = vrsqrt.f32 %v3352_v23 }
0x19f8   :  { %v4736_v25 = vpop.eup %4735 }
0x19f9   :  { %v3357_v26 = vmul.f32 %v4736_v25, %v3325_v31 }
0x19fa   :  { %v4738_v39 = vpop.eup %4737 }
0x19fb   :  { %v3358_v22 = vmul.f32 %v4738_v39, %v3326_v51  ;;  %v3367_v13 = vmul.f32 %v3939_v32, %v3357_v26 }
0x19fc   :  { %v4740_v20 = vpop.eup %4739 }
0x19fd   :  { %v3359_v24 = vmul.f32 %v4740_v20, %v3327_v59  ;;  %v3368_v19 = vmul.f32 %v3939_v32, %v3358_v22  ;;  %v3377_v41 = vadd.f32 %v3940_v35, %v3367_v13 }
0x19fe   :  { %v4742_v37 = vpop.eup %4741 }
0x19ff   :  { %v3369_v17 = vmul.f32 %v3939_v32, %v3359_v24  ;;  %v3360_v29 = vmul.f32 %v4742_v37, %v3328_v63  ;;  %v3378_v42 = vadd.f32 %v3940_v35, %v3368_v19 }
0x1a01   :  { %v3370_v44 = vmul.f32 %v3939_v32, %v3360_v29  ;;  %v3386_v57 = vpack.c.bf16 %v3378_v42, %v3377_v41  ;;  %v3379_v48 = vadd.f32 %v3940_v35, %v3369_v17 }
0x1a03   :  { %4442 = vmatprep.mubr.msk.bf16.mxu0 %vm86_vm0, %v3386_v57  ;;  %v3380_v61 = vadd.f32 %v3940_v35, %v3370_v44 }
0x1a05   :  { %v3387_v28 = vpack.c.bf16 %v3380_v61, %v3379_v48 }
0x1a07   :  { %4443 = vmatmul.mubr.msk.bf16.vlgmr.msra.gmra.mrb[56].mxu0 %vm86_vm0, %v3387_v28 }
0x1a08   :  { %4447 = vmatpush3.bf16.msra.mxu0 %v4577_v8 }
0x1a09   :  { %4448 = vmatprep.subr.bf16.mxu0 %v4578_v33 }
0x1a0c   :  { %4449 = vmatpush3.bf16.msra.mxu0 %v4578_v33 }
0x1a0d   :  { %4450 = vmatprep.subr.bf16.mxu0 %v4579_v46 }
0x1a10   :  { %4451 = vmatpush3.bf16.msra.mxu0 %v4579_v46 }
0x1a11   :  { %4452 = vmatprep.subr.bf16.mxu0 %v4580_v4 }
0x1a14   :  { %4453 = vmatpush3.bf16.msra.mxu0 %v4580_v4 }
0x1ada   :  { %v4444_v31 = vpop.f32.mrb[56].mxu0 }
0x1adb   :  { %v3457_v50 = vadd.f32 %v4444_v31, %v3946_v30  ;;  %v3448_v47 = vpop.f32.mrb[57].mxu0 }
0x1adc   :  { %v3449_v51 = vadd.f32 %v3946_v30, %v3448_v47  ;;  %v4445_v52 = vpop.f32.mrb[58].mxu0 }
0x1add   :  { %v3460_v53 = vadd.f32 %v4445_v52, %v3946_v30  ;;  %v3451_v55 = vpop.f32.mrb[59].mxu0  ;;  %v3465_v60 = vmax.f32 %v3457_v50, 0.0 }
0x1ade   :  { %v3452_v59 = vadd.f32 %v3946_v30, %v3451_v55  ;;  %v3463_v49 = vmax.f32 %v3449_v51, 0.0 }
0x1adf   :  { %v3466_v62 = vmax.f32 %v3460_v53, 0.0 }
0x1ae0   :  { %v3464_v63 = vmax.f32 %v3452_v59, 0.0 }
0x1ae1   :  { %v3477_v0 = vpack.c.bf16 %v3466_v62, %v3465_v60  ;;  %v3969_v60 = vld [vmem:[%s5732_s18 + $0x1] ss:$0 sm:$0xff] }
0x1ae2   :  { %v3476_v2 = vpack.c.bf16 %v3464_v63, %v3463_v49  ;;  %v3970_v63 = vld [vmem:[%s5733_s19 + $0x1] ss:$0 sm:$0xff] }
0x1ae4   :  { %4454 = vmatprep.mubr.msk.bf16.mxu0 %vm2112_vm4, %v3476_v2 }
0x1ae5   :  { %4455 = vmatmul.mubr.msk.bf16.vlgmr.msra.gmra.mrb[60].mxu0 %vm2112_vm4, %v3477_v0 }
0x1bb8   :  { %v4456_v58 = vpop.f32.mrb[60].mxu0 }
0x1bb9   :  { %v3550_v56 = vpop.f32.mrb[61].mxu0  ;;  %v3559_v9 = vadd.f32 %v4456_v58, %v3960_v34 }
0x1bba   :  { %v3551_v3 = vadd.f32 %v3960_v34, %v3550_v56  ;;  %v4457_v8 = vpop.f32.mrb[62].mxu0 }
0x1bbb   :  { %v3553_v6 = vpop.f32.mrb[63].mxu0  ;;  %v3562_v7 = vadd.f32 %v4457_v8, %v3960_v34  ;;  %v3567_v1 = vadd.f32 %v3559_v9, %v3379_v48 }
0x1bbc   :  { %v3565_v16 = vadd.f32 %v3551_v3, %v3377_v41  ;;  %v3554_v5 = vadd.f32 %v3960_v34, %v3553_v6 }
0x1bbd   :  { %v3568_v40 = vadd.f32 %v3562_v7, %v3380_v61  ;;  %v3579_v11 = vsel %vm86_vm0, %v3567_v1, 0.0 }
0x1bbe   :  { %v3566_v27 = vadd.f32 %v3554_v5, %v3378_v42  ;;  %v3573_v21 = vsel %vm86_vm0, %v3565_v16, 0.0 }
0x1bbf   :  { %3574 = vadd.xlane.f32.xlu1 %v3573_v21  ;;  %v3582_v14 = vsel %vm86_vm0, %v3568_v40, 0.0 }
0x1bc0   :  { %v3576_v54 = vsel %vm86_vm0, %v3566_v27, 0.0 }
0x1bc1   :  { %3577 = vadd.xlane.f32.xlu0 %v3576_v54 }
0x1bc3   :  { %3580 = vadd.xlane.f32.xlu1 %v3579_v11 }
0x1bc5   :  { %3583 = vadd.xlane.f32.xlu0 %v3582_v14 }
0x1c4c   :  { %v3575_v23 = vpop.xlane.xlu1 %3574 }
0x1c4d   :  { %v3585_v25 = vmul.f32 0.03125, %v3575_v23 }
0x1c4e   :  { %v3578_v32 = vpop.xlane.xlu0 %3577 }
0x1c4f   :  { %v3589_v26 = vsub.f32 %v3565_v16, %v3585_v25  ;;  %v3586_v39 = vmul.f32 0.03125, %v3578_v32 }
0x1c50   :  { %v3581_v22 = vpop.xlane.xlu1 %3580 }
0x1c51   :  { %v3590_v13 = vsub.f32 %v3566_v27, %v3586_v39  ;;  %v3587_v20 = vmul.f32 0.03125, %v3581_v22  ;;  %v3593_v35 = vmul.f32 %v3589_v26, %v3589_v26 }
0x1c52   :  { %v3584_v24 = vpop.xlane.xlu0 %3583 }
0x1c53   :  { %v3591_v19 = vsub.f32 %v3567_v1, %v3587_v20  ;;  %v3588_v37 = vmul.f32 0.03125, %v3584_v24  ;;  %v3597_v17 = vsel %vm86_vm0, %v3593_v35, 0.0  ;;  %v3594_v29 = vmul.f32 %v3590_v13, %v3590_v13 }
0x1c54   :  { %3598 = vadd.xlane.f32.xlu1 %v3597_v17 }
0x1c55   :  { %v3592_v41 = vsub.f32 %v3568_v40, %v3588_v37  ;;  %v3600_v42 = vsel %vm86_vm0, %v3594_v29, 0.0  ;;  %v3595_v44 = vmul.f32 %v3591_v19, %v3591_v19 }
0x1c56   :  { %3601 = vadd.xlane.f32.xlu0 %v3600_v42 }
0x1c57   :  { %v3603_v57 = vsel %vm86_vm0, %v3595_v44, 0.0  ;;  %v3596_v48 = vmul.f32 %v3592_v41, %v3592_v41 }
0x1c58   :  { %3604 = vadd.xlane.f32.xlu1 %v3603_v57 }
0x1c59   :  { %v3606_v61 = vsel %vm86_vm0, %v3596_v48, 0.0  ;;  %v4581_v48 = vld [vmem:[%s5734_s22] sm:$0xff]  }
0x1c5a   :  { %3607 = vadd.xlane.f32.xlu0 %v3606_v61  ;;  %4458 = vmatprep.subr.bf16.mxu1 %v4581_v48  ;;  %v4582_v61 = vld [vmem:[%s5734_s22 + $0x8] sm:$0xff]  }
0x1c5b   :  { %4459 = vmatpush3.bf16.msra.mxu1 %v4581_v48 }
0x1c5c   :  { %4460 = vmatprep.subr.bf16.mxu1 %v4582_v61 }
0x1c5f   :  { %4461 = vmatpush3.bf16.msra.mxu1 %v4582_v61 }
0x1ce1   :  { %v3599_v28 = vpop.xlane.xlu1 %3598 }
0x1ce2   :  { %v3609_v33 = vmul.f32 0.03125, %v3599_v28 }
0x1ce3   :  { %v3602_v46 = vpop.xlane.xlu0 %3601 }
0x1ce4   :  { %v3613_v4 = vadd.f32 1e-05, %v3609_v33  ;;  %v3610_v30 = vmul.f32 0.03125, %v3602_v46 }
0x1ce5   :  { %v3605_v31 = vpop.xlane.xlu1 %3604 }
0x1ce6   :  { %4743 = vrsqrt.f32 %v3613_v4  ;;  %v3614_v50 = vadd.f32 1e-05, %v3610_v30  ;;  %v3611_v47 = vmul.f32 0.03125, %v3605_v31 }
0x1ce7   :  { %v3608_v51 = vpop.xlane.xlu0 %3607 }
0x1ce8   :  { %4745 = vrsqrt.f32 %v3614_v50  ;;  %v3615_v52 = vadd.f32 1e-05, %v3611_v47  ;;  %v3612_v53 = vmul.f32 0.03125, %v3608_v51 }
0x1cea   :  { %4747 = vrsqrt.f32 %v3615_v52  ;;  %v3616_v55 = vadd.f32 1e-05, %v3612_v53 }
0x1cec   :  { %4749 = vrsqrt.f32 %v3616_v55 }
0x1cf0   :  { %v4744_v59 = vpop.eup %4743 }
0x1cf1   :  { %v3621_v62 = vmul.f32 %v4744_v59, %v3589_v26 }
0x1cf2   :  { %v4746_v49 = vpop.eup %4745 }
0x1cf3   :  { %v3631_v0 = vmul.f32 %v3969_v60, %v3621_v62  ;;  %v3622_v2 = vmul.f32 %v4746_v49, %v3590_v13 }
0x1cf4   :  { %v4748_v34 = vpop.eup %4747 }
0x1cf5   :  { %v3641_v58 = vadd.f32 %v3970_v63, %v3631_v0  ;;  %v3632_v56 = vmul.f32 %v3969_v60, %v3622_v2  ;;  %v3623_v9 = vmul.f32 %v4748_v34, %v3591_v19  ;;  %v3972_v34 = vld [vmem:[%s5736_s21] ss:$0 sm:$0xff] }
0x1cf6   :  { %v4750_v3 = vpop.eup %4749 }
0x1cf7   :  { %v3647_v8 = vsel %vm86_vm0, %v3641_v58, 0.0  ;;  %v3642_v6 = vadd.f32 %v3970_v63, %v3632_v56  ;;  %v3633_v16 = vmul.f32 %v3969_v60, %v3623_v9  ;;  %v3624_v7 = vmul.f32 %v4750_v3, %v3592_v41 }
0x1cf8   :  { %3648 = vadd.xlane.f32.xlu1 %v3647_v8 }
0x1cf9   :  { %v3650_v5 = vsel %vm86_vm0, %v3642_v6, 0.0  ;;  %v3643_v1 = vadd.f32 %v3970_v63, %v3633_v16  ;;  %v3634_v27 = vmul.f32 %v3969_v60, %v3624_v7  ;;  %v3971_v60 = vld [vmem:[%s5735_s20] ss:$0 sm:$0xff] }
0x1cfa   :  { %3651 = vadd.xlane.f32.xlu0 %v3650_v5 }
0x1cfb   :  { %v3653_v21 = vsel %vm86_vm0, %v3643_v1, 0.0  ;;  %v3644_v40 = vadd.f32 %v3970_v63, %v3634_v27 }
0x1cfc   :  { %3654 = vadd.xlane.f32.xlu1 %v3653_v21 }
0x1cfd   :  { %v3656_v54 = vsel %vm86_vm0, %v3644_v40, 0.0 }
0x1cfe   :  { %3657 = vadd.xlane.f32.xlu0 %v3656_v54 }
0x1d85   :  { %v3649_v11 = vpop.xlane.xlu1 %3648 }
0x1d86   :  { %v3659_v14 = vmul.f32 0.03125, %v3649_v11 }
0x1d87   :  { %v3652_v23 = vpop.xlane.xlu0 %3651 }
0x1d88   :  { %v3663_v25 = vsub.f32 %v3641_v58, %v3659_v14  ;;  %v3660_v32 = vmul.f32 0.03125, %v3652_v23 }
0x1d89   :  { %v3655_v26 = vpop.xlane.xlu1 %3654 }
0x1d8a   :  { %v3664_v39 = vsub.f32 %v3642_v6, %v3660_v32  ;;  %v3661_v22 = vmul.f32 0.03125, %v3655_v26  ;;  %v3667_v13 = vmul.f32 %v3663_v25, %v3663_v25 }
0x1d8b   :  { %v3658_v20 = vpop.xlane.xlu0 %3657 }
0x1d8c   :  { %v3665_v35 = vsub.f32 %v3643_v1, %v3661_v22  ;;  %v3662_v24 = vmul.f32 0.03125, %v3658_v20  ;;  %v3671_v19 = vsel %vm86_vm0, %v3667_v13, 0.0  ;;  %v3668_v37 = vmul.f32 %v3664_v39, %v3664_v39 }
0x1d8d   :  { %3672 = vadd.xlane.f32.xlu1 %v3671_v19 }
0x1d8e   :  { %v3666_v17 = vsub.f32 %v3644_v40, %v3662_v24  ;;  %v3674_v29 = vsel %vm86_vm0, %v3668_v37, 0.0  ;;  %v3669_v41 = vmul.f32 %v3665_v35, %v3665_v35  ;;  %v3973_v40 = vld [vmem:[%s5737_s23] ss:$0 sm:$0xff] }
0x1d8f   :  { %3675 = vadd.xlane.f32.xlu0 %v3674_v29 }
0x1d90   :  { %v3677_v42 = vsel %vm86_vm0, %v3669_v41, 0.0  ;;  %v3670_v44 = vmul.f32 %v3666_v17, %v3666_v17 }
0x1d91   :  { %3678 = vadd.xlane.f32.xlu1 %v3677_v42 }
0x1d92   :  { %v3680_v57 = vsel %vm86_vm0, %v3670_v44, 0.0 }
0x1d93   :  { %3681 = vadd.xlane.f32.xlu0 %v3680_v57 }
0x1e1a   :  { %v3673_v28 = vpop.xlane.xlu1 %3672 }
0x1e1b   :  { %v3683_v33 = vmul.f32 0.03125, %v3673_v28 }
0x1e1c   :  { %v3676_v46 = vpop.xlane.xlu0 %3675 }
0x1e1d   :  { %v3687_v4 = vadd.f32 1e-05, %v3683_v33  ;;  %v3684_v30 = vmul.f32 0.03125, %v3676_v46 }
0x1e1e   :  { %v3679_v31 = vpop.xlane.xlu1 %3678 }
0x1e1f   :  { %4751 = vrsqrt.f32 %v3687_v4  ;;  %v3688_v50 = vadd.f32 1e-05, %v3684_v30  ;;  %v3685_v47 = vmul.f32 0.03125, %v3679_v31 }
0x1e20   :  { %v3682_v51 = vpop.xlane.xlu0 %3681 }
0x1e21   :  { %4753 = vrsqrt.f32 %v3688_v50  ;;  %v3689_v52 = vadd.f32 1e-05, %v3685_v47  ;;  %v3686_v53 = vmul.f32 0.03125, %v3682_v51 }
0x1e23   :  { %4755 = vrsqrt.f32 %v3689_v52  ;;  %v3690_v55 = vadd.f32 1e-05, %v3686_v53 }
0x1e25   :  { %4757 = vrsqrt.f32 %v3690_v55 }
0x1e29   :  { %v4752_v59 = vpop.eup %4751 }
0x1e2a   :  { %v3695_v62 = vmul.f32 %v4752_v59, %v3663_v25 }
0x1e2b   :  { %v4754_v49 = vpop.eup %4753 }
0x1e2c   :  { %v3696_v63 = vmul.f32 %v4754_v49, %v3664_v39  ;;  %v3705_v0 = vmul.f32 %v3971_v60, %v3695_v62 }
0x1e2d   :  { %v4756_v2 = vpop.eup %4755 }
0x1e2e   :  { %v3697_v58 = vmul.f32 %v4756_v2, %v3665_v35  ;;  %v3706_v56 = vmul.f32 %v3971_v60, %v3696_v63  ;;  %v3715_v6 = vadd.f32 %v3972_v34, %v3705_v0 }
0x1e2f   :  { %v4758_v9 = vpop.eup %4757 }
0x1e30   :  { %v3707_v3 = vmul.f32 %v3971_v60, %v3697_v58  ;;  %v3698_v8 = vmul.f32 %v4758_v9, %v3666_v17  ;;  %v3716_v16 = vadd.f32 %v3972_v34, %v3706_v56 }
0x1e32   :  { %v3708_v7 = vmul.f32 %v3971_v60, %v3698_v8  ;;  %v3723_v5 = vpack.c.bf16 %v3716_v16, %v3715_v6  ;;  %v3717_v1 = vadd.f32 %v3972_v34, %v3707_v3 }
0x1e34   :  { %4462 = vmatprep.mubr.msk.bf16.mxu1 %vm86_vm0, %v3723_v5  ;;  %v3718_v27 = vadd.f32 %v3972_v34, %v3708_v7 }
0x1e36   :  { %v3724_v21 = vpack.c.bf16 %v3718_v27, %v3717_v1 }
0x1e38   :  { %4463 = vmatmul.mubr.msk.bf16.vlgmr.msra.gmra.mrb[56].mxu1 %vm86_vm0, %v3724_v21 }
0x1f0b   :  { %v4464_v54 = vpop.f32.mrb[56].mxu1 }
0x1f0c   :  { %v3793_v11 = vadd.f32 %v4464_v54, %v3973_v40  ;;  %v3784_v14 = vpop.f32.mrb[57].mxu1 }
0x1f0d   :  { %v3785_v23 = vadd.f32 %v3973_v40, %v3784_v14  ;;  %v4465_v25 = vpop.f32.mrb[58].mxu1 }
0x1f0e   :  { %v3801_v32 = vmul.f32 %v3793_v11, %v4957_v45  ;;  %v3796_v26 = vadd.f32 %v4465_v25, %v3973_v40  ;;  %v3787_v39 = vpop.f32.mrb[59].mxu1 }
0x1f0f   :  { %v3799_v22 = vmul.f32 %v3785_v23, %v4953_v38  ;;  %v3788_v13 = vadd.f32 %v3973_v40, %v3787_v39 }
0x1f10   :  { %v3805_v20 = vadd.f32 %v3801_v32, %v4937_v18  ;;  %v3802_v35 = vmul.f32 %v3796_v26, %v4955_v43 }
0x1f11   :  { %v3803_v24 = vadd.f32 %v3799_v22, %v4931_v12  ;;  %v3800_v19 = vmul.f32 %v3788_v13, %v4951_v36 }
0x1f12   :  { %3809 = vst.msk [vmem:[%s5738_s24 + $0x10] sm:$0xff] %vm429_vm2, %v3805_v20  ;;  %v3806_v45 = vadd.f32 %v4934_v15, %v3802_v35 }
0x1f13   :  { %3807 = vst.msk [vmem:[%s5738_s24] sm:$0xff] %vm429_vm2, %v3803_v24  ;;  %v3804_v18 = vadd.f32 %v4928_v10, %v3800_v19 }
0x1f14   :  { %3810 = vst.msk [vmem:[%s5738_s24 + $0x18] sm:$0xff] %vm429_vm2, %v3806_v45 }
0x1f15   :  { %3808 = vst.msk [vmem:[%s5738_s24 + $0x8] sm:$0xff] %vm429_vm2, %v3804_v18 }

</bundles_post_ra>
